<compile_context>
chip_gen: v7x
topology: tpu7x:2x2x1
jax: 0.10.0
libtpu: 0.0.40
codegen_flags: <defaults>
</compile_context>

<pallas_src>
import functools

import jax
import jax.numpy as jnp
from jax.experimental import pallas as pl
from jax.experimental.pallas import tpu as pltpu

EPAD = 8      # router score lanes (E padded to a sublane multiple)
ECPAD = 128   # E*Cout padded to full lane width


@functools.lru_cache(maxsize=1)
def _bf16_vpu_ok():
    """bf16 VPU math only on v6e / v7x (v5e and older have no bf16 VPU)."""
    try:
        kind = jax.devices()[0].device_kind.lower()
    except Exception:
        return True
    return not any(v in kind for v in ("v2", "v3", "v4", "v5"))


# --------------------------------------------------------------------------
# Pallas kernel: all-expert 3x3 conv + ReLU + score mixing + fused 1x1 conv
# --------------------------------------------------------------------------
def _fused_layer_kernel(T, S, bf16_mix, cols_ref, scr_ref, expand_ref,
                        wall_ref, ball_ref, wf_ref, bf_ref, out_ref):
    """One grid step = T patches (T*S im2col rows).

    cols_ref   : (T*S, K)       bf16 im2col rows (K = 9*Cin)
    scr_ref    : (T, EPAD)      f32 per-patch router scores (E real lanes)
    expand_ref : (EPAD, ECPAD)  f32 constant 0/1 matrix: score e -> lanes
                                 [e*Cout, (e+1)*Cout)
    wall_ref   : (K, ECPAD)     bf16 all experts' conv weights (zero pad cols)
    ball_ref   : (1, ECPAD)     f32 all experts' biases (zero pad)
    wf_ref     : (ECPAD, Cout)  bf16 final 1x1 conv weight tiled over experts
                                 (zero pad rows) -> folds the expert sum
    bf_ref     : (1, Cout)      f32 final conv bias
    out_ref    : (T*S, Cout)    f32 fused layer output rows
    """
    # Expert 3x3 conv (per-patch zero pad) for ALL experts in one MXU pass,
    # lane-dense N=128.
    y = jnp.dot(cols_ref[...], wall_ref[...], preferred_element_type=jnp.float32)
    y = jnp.maximum(y + ball_ref[...], 0.0)                     # (T*S, 128)

    # Expand per-patch scores to per-channel lanes with a tiny constant matmul
    # (cheaper than a host-side repeat + per-step DMA of (T, E*Cout)).
    sexp = jnp.dot(scr_ref[...], expand_ref[...],
                   preferred_element_type=jnp.float32)          # (T, 128)

    if bf16_mix:
        y = y.astype(jnp.bfloat16)
        sexp = sexp.astype(jnp.bfloat16)

    # Broadcast per-patch scores over the S rows of each patch (VPU).
    sexp = jnp.broadcast_to(sexp[:, None, :], (T, S, sexp.shape[-1]))
    sexp = sexp.reshape(T * S, sexp.shape[-1])
    yw = y * sexp
    if not bf16_mix:
        yw = yw.astype(jnp.bfloat16)

    # Fused 1x1 final conv; the sum over experts is folded into wf (its rows
    # are final_w tiled E times, zero rows in the pad), K=128 lane-dense.
    out_ref[...] = (jnp.dot(yw, wf_ref[...], preferred_element_type=jnp.float32)
                    + bf_ref[...])


def _choose_patch_tile(BP, S, K, Cout, Epad):
    """Largest patch tile T that fits the double-buffered block budget;
    prefer an even grid count (v7x has 2 TensorCores) when it costs <=2x."""
    budget = 20 * 1024 * 1024

    def est(t):
        cols = t * S * K * 2          # bf16
        scr = t * Epad * 4            # f32
        out = t * S * Cout * 4        # f32
        return 2 * (cols + scr + out)  # x2 pipeline buffers

    cands = [t for t in range(1, BP + 1)
             if BP % t == 0 and (t % 8 == 0 or t == BP)]
    fits = [t for t in cands if est(t) <= budget]
    if not fits:
        return min(cands)
    best = max(fits)
    even = [t for t in fits if (BP // t) % 2 == 0]
    if even and 2 * max(even) >= best:
        return max(even)
    return best


def fused_layer(cols, scores_p, expand, w_all, b_all, wf, bf, *, S, Cout):
    """cols: (BP*S, K) bf16, scores_p: (BP, EPAD) f32 -> (BP*S, Cout) f32."""
    R, K = cols.shape
    BP = R // S
    Epad = scores_p.shape[1]
    T = _choose_patch_tile(BP, S, K, Cout, Epad)
    kernel = functools.partial(_fused_layer_kernel, T, S, _bf16_vpu_ok())
    vmem = pl.BlockSpec(memory_space=pltpu.MemorySpace.VMEM)  # whole-array, no double buffer
    return pl.pallas_call(
        kernel,
        out_shape=jax.ShapeDtypeStruct((R, Cout), jnp.float32),
        grid_spec=pltpu.PrefetchScalarGridSpec(
            num_scalar_prefetch=0,
            grid=(BP // T,),
            in_specs=[
                pl.BlockSpec((T * S, K), lambda i: (i, 0)),
                pl.BlockSpec((T, Epad), lambda i: (i, 0)),
                vmem,   # expand  (EPAD, 128)
                vmem,   # w_all   (K, 128)
                vmem,   # b_all   (1, 128)
                vmem,   # wf      (128, Cout)
                vmem,   # bf      (1, Cout)
            ],
            out_specs=pl.BlockSpec((T * S, Cout), lambda i: (i, 0)),
        ),
        compiler_params=pltpu.CompilerParams(
            dimension_semantics=("parallel",),
            vmem_limit_bytes=32 * 1024 * 1024),
    )(cols, scores_p, expand, w_all, b_all, wf, bf)


# --------------------------------------------------------------------------
# JAX glue (patching, im2col, coordinate/Fourier features, router, pooling)
# --------------------------------------------------------------------------
def make_coord_patches(H, W, p, num_frequencies):
    """Batch-invariant coordinate map (4 base + 8*F Fourier channels) split
    into patches: returns (P, Fc, p*p)."""
    gy = jnp.broadcast_to(((jnp.arange(H, dtype=jnp.float32) + 0.5) / H)[:, None], (H, W))
    gx = jnp.broadcast_to(((jnp.arange(W, dtype=jnp.float32) + 0.5) / W)[None, :], (H, W))
    ly = jnp.broadcast_to((((jnp.arange(H) % p).astype(jnp.float32) + 0.5) / p)[:, None], (H, W))
    lx = jnp.broadcast_to((((jnp.arange(W) % p).astype(jnp.float32) + 0.5) / p)[None, :], (H, W))
    base = [gy, gx, ly, lx]
    chans = list(base)
    for f in range(num_frequencies):
        freq = (2.0 ** f) * jnp.pi
        for b in base:
            chans.append(jnp.sin(freq * b))
            chans.append(jnp.cos(freq * b))
    coord = jnp.stack(chans, axis=0)                               # (Fc, H, W)
    Fc = coord.shape[0]
    hP, wP = H // p, W // p
    cp = coord.reshape(Fc, hP, p, wP, p).transpose(1, 3, 0, 2, 4)  # (hP, wP, Fc, p, p)
    return cp.reshape(hP * wP, Fc, p * p)                          # (P, Fc, S)


def router_scores(coords_flat, rp):
    """Tiny MLP + softmax over pooled coord features (plain jnp; geometry-only
    input, batch-invariant)."""
    feat = coords_flat.mean(axis=-1)                               # (P, Fc)
    h = jnp.maximum(feat @ rp["w1"] + rp["b1"], 0.0)
    logits = h @ rp["w2"] + rp["b2"]
    return jax.nn.softmax(logits, axis=-1)                         # (P, E)


def im2col3x3_cl(xp):
    """Channels-last per-patch im2col: (N, p, p, C) -> (N*p*p, 9*C) rows for a
    3x3 same-padded conv (zero padding at patch boundaries).
    # TODO(synk): could be built inside the kernel from (p+2)-padded patch
    # blocks to cut input HBM reads ~9x; kept host-side (fuses under jit and
    # is negligible at these demo shapes)."""
    N, ph, pw, C = xp.shape
    xpad = jnp.pad(xp, ((0, 0), (1, 1), (1, 1), (0, 0)))
    taps = [xpad[:, ky:ky + ph, kx:kx + pw, :]
            for ky in range(3) for kx in range(3)]
    cols = jnp.concatenate(taps, axis=-1)                          # (N, p, p, 9C)
    return cols.reshape(N * ph * pw, 9 * C)


def adaptive_avg_pool_8(x):
    """x: (B, C, H, W) -> (B, C, 8, 8) (H, W divisible by 8 here, exact match)."""
    B, C, H, W = x.shape
    return x.reshape(B, C, 8, H // 8, 8, W // 8).mean(axis=(3, 5))


# --------------------------------------------------------------------------
# Network construction (mirrors PCENetwork.create_layers) and forward
# --------------------------------------------------------------------------
def make_layer_cfgs(layer_number, patch_size):
    cfgs = []
    in_ch = 3          # create_layers hardcodes inpt_channel = 3
    out_ch = 8
    p = patch_size
    for l in range(layer_number):
        cfgs.append(dict(in_ch=in_ch, out_ch=out_ch, patch_size=p))
        p = p - 3 if p - 3 >= 8 else p
        in_ch = out_ch
        if l % 2 == 0:
            out_ch *= 2
    return cfgs


def init_params(key, cfgs, embed_dim, num_experts, num_classes, feat_dim, fourier_channel):
    layers = []
    for cfg in cfgs:
        key, k1, k2, k3, k4, k5, k6, k7, k8 = jax.random.split(key, 9)
        Cin, Cout = cfg["in_ch"], cfg["out_ch"]
        K = Cin * 9
        E = num_experts
        EC = E * Cout
        w_all = 0.1 * jax.random.normal(k1, (K, EC), jnp.float32)
        b_all = 0.1 * jax.random.normal(k2, (EC,), jnp.float32)
        final_w = 0.1 * jax.random.normal(k3, (Cout, Cout), jnp.float32)
        final_b = 0.1 * jax.random.normal(k4, (Cout,), jnp.float32)

        # EC lane-padded to 128 (zero columns: free on the MXU, lane-dense VPU).
        w_all_p = jnp.zeros((K, ECPAD), jnp.float32).at[:, :EC].set(w_all)
        b_all_p = jnp.zeros((1, ECPAD), jnp.float32).at[:, :EC].set(b_all[None])
        # Final 1x1 conv folded into matmul #2: rows are final_w tiled over
        # experts (expert-major EC ordering), zero rows in the pad.
        wf = jnp.zeros((ECPAD, Cout), jnp.float32).at[:EC, :].set(
            jnp.tile(final_w, (E, 1)))
        bf = final_b.reshape(1, Cout)
        # Constant 0/1 expansion matrix: score e -> lanes [e*Cout, (e+1)*Cout).
        expand = jnp.zeros((EPAD, ECPAD), jnp.float32).at[:E, :EC].set(
            jnp.repeat(jnp.eye(E, dtype=jnp.float32), Cout, axis=1))

        layers.append(dict(
            w_all=w_all_p.astype(jnp.bfloat16),
            b_all=b_all_p,
            wf=wf.astype(jnp.bfloat16),
            bf=bf,
            expand=expand,
            router=dict(
                w1=0.1 * jax.random.normal(k5, (fourier_channel, embed_dim), jnp.float32),
                b1=0.1 * jax.random.normal(k6, (embed_dim,), jnp.float32),
                w2=0.1 * jax.random.normal(k7, (embed_dim, num_experts), jnp.float32),
                b2=0.1 * jax.random.normal(k8, (num_experts,), jnp.float32),
            ),
        ))
    key, kc1, kc2 = jax.random.split(key, 3)
    cls_w = 0.05 * jax.random.normal(kc1, (feat_dim, num_classes), jnp.float32)
    cls_b = 0.05 * jax.random.normal(kc2, (num_classes,), jnp.float32)
    return dict(layers=layers, cls_w=cls_w, cls_b=cls_b)


def pce_forward(X, params, cfgs, num_frequencies):
    B, _, H, W = X.shape
    nlayers = len(cfgs)
    Xp = None      # channels-last patches (BP, p, p, C) carried between layers
    cur_p = None

    for l, cfg in enumerate(cfgs):
        p = cfg["patch_size"]
        Cout = cfg["out_ch"]
        hP, wP = H // p, W // p
        P = hP * wP
        BP = B * P
        S = p * p
        lp = params["layers"][l]

        if Xp is None or cur_p != p:
            # (Re-)extract non-overlapping patches from the dense image,
            # channels-last: (B, C, H, W) -> (BP, p, p, C).
            C = X.shape[1]
            Xp = (X.reshape(B, C, hP, p, wP, p)
                   .transpose(0, 2, 4, 3, 5, 1)
                   .reshape(BP, p, p, C))
        cur_p = p

        # Router scores (coords are batch-invariant: compute over P patches
        # once, broadcast over the batch, pad E -> EPAD lanes).
        coords = make_coord_patches(H, W, p, num_frequencies)       # (P, Fc, S)
        scores = router_scores(coords, lp["router"])                # (P, E)
        E = scores.shape[-1]
        scores = jnp.broadcast_to(scores[None], (B, P, E)).reshape(BP, E)
        scores_p = jnp.pad(scores, ((0, 0), (0, EPAD - E)))         # (BP, EPAD)
        # TODO(synk): per-layer threshold / hard_threshold_router not modeled.

        # im2col rows over per-patch zero-padded patches (matches the
        # reference, where each expert Conv2d sees the reshaped patch tensor).
        cols = im2col3x3_cl(Xp).astype(jnp.bfloat16)                # (BP*S, 9C)

        # Fused Pallas kernel: all-expert conv + ReLU + score mixing + 1x1 conv.
        out = fused_layer(cols, scores_p, lp["expand"], lp["w_all"],
                          lp["b_all"], lp["wf"], lp["bf"],
                          S=S, Cout=Cout)                            # (BP*S, Cout)

        next_same = (l + 1 < nlayers) and (cfgs[l + 1]["patch_size"] == p)
        if next_same:
            # Same patch decomposition next layer: the fold -> unfold round
            # trip is an identity re-packing; stay in patch-row layout.
            Xp = out.reshape(BP, p, p, Cout)
        else:
            # rearrange 'b (h w) c ph pw -> b c (h ph) (w pw)'
            X = (out.reshape(B, hP, wP, p, p, Cout)
                    .transpose(0, 5, 1, 3, 2, 4)
                    .reshape(B, Cout, H, W))
            Xp = None

    pooled = adaptive_avg_pool_8(X)                                  # (B, C_last, 8, 8)
    flat = pooled.reshape(B, -1)                                     # nn.Flatten
    logits = flat @ params["cls_w"] + params["cls_b"]                # LazyLinear (plain jnp)
    return logits


# --------------------------------------------------------------------------
if __name__ == "__main__":
    B, C, H, W = 2, 3, 32, 32
    num_experts = 4
    layer_number = 2
    patch_size = 8
    num_classes = 10
    embed_dim = 32
    num_frequencies = 1
    fourier_channel = 4 + 8 * num_frequencies

    cfgs = make_layer_cfgs(layer_number, patch_size)
    feat_dim = cfgs[-1]["out_ch"] * 8 * 8

    key = jax.random.PRNGKey(0)
    key, kx = jax.random.split(key)
    X = jax.random.normal(kx, (B, C, H, W), jnp.float32)
    params = init_params(key, cfgs, embed_dim, num_experts, num_classes,
                         feat_dim, fourier_channel)

    fwd = jax.jit(functools.partial(pce_forward, cfgs=cfgs,
                                    num_frequencies=num_frequencies))
    logits = fwd(X, params)
    logits = jax.block_until_ready(logits)
    assert logits.shape == (B, num_classes), logits.shape
    assert bool(jnp.all(jnp.isfinite(logits)))
    print("KERNEL_OK")
</pallas_src>

<mosaic_0001>
module attributes {stable_mosaic.version = 11 : i64} {
  func.func @_fused_layer_kernel(%arg0: i32, %arg1: memref<1024x27xbf16, #tpu.memory_space<vmem>>, %arg2: memref<16x8xf32, #tpu.memory_space<vmem>>, %arg3: memref<8x128xf32, #tpu.memory_space<vmem>>, %arg4: memref<27x128xbf16, #tpu.memory_space<vmem>>, %arg5: memref<1x128xf32, #tpu.memory_space<vmem>>, %arg6: memref<128x8xbf16, #tpu.memory_space<vmem>>, %arg7: memref<1x8xf32, #tpu.memory_space<vmem>>, %arg8: memref<1024x8xf32, #tpu.memory_space<vmem>>) attributes {dimension_semantics = [#tpu.dimension_semantics<parallel>], iteration_bounds = array<i64: 2>, scalar_prefetch = 0 : i64, scratch_operands = 0 : i64, tpu.core_type = #tpu.core_type<tc>, window_params = [{transform_indices = @transform_0, window_bounds = array<i64: 1024, 27>}, {transform_indices = @transform_1, window_bounds = array<i64: 16, 8>}, {pipeline_mode = #tpu.pipeline_mode<synchronous>, transform_indices = @transform_2, window_bounds = array<i64: 8, 128>}, {pipeline_mode = #tpu.pipeline_mode<synchronous>, transform_indices = @transform_3, window_bounds = array<i64: 27, 128>}, {pipeline_mode = #tpu.pipeline_mode<synchronous>, transform_indices = @transform_4, window_bounds = array<i64: 1, 128>}, {pipeline_mode = #tpu.pipeline_mode<synchronous>, transform_indices = @transform_5, window_bounds = array<i64: 128, 8>}, {pipeline_mode = #tpu.pipeline_mode<synchronous>, transform_indices = @transform_6, window_bounds = array<i64: 1, 8>}, {transform_indices = @transform_7, window_bounds = array<i64: 1024, 8>}]} {
    %c0 = arith.constant 0 : index
    %c0_0 = arith.constant 0 : index
    %0 = vector.load %arg1[%c0, %c0_0] : memref<1024x27xbf16, #tpu.memory_space<vmem>>, vector<1024x27xbf16>
    %c0_1 = arith.constant 0 : index
    %c0_2 = arith.constant 0 : index
    %1 = vector.load %arg4[%c0_1, %c0_2] : memref<27x128xbf16, #tpu.memory_space<vmem>>, vector<27x128xbf16>
    %cst = arith.constant dense<0.000000e+00> : vector<1024x128xf32>
    %2 = tpu.matmul %0, %1, %cst {dimension_numbers = #tpu.dot_dimension_numbers<[1], [0], [0], [1], [0, 0, 1, 1], [], []>} : vector<1024x27xbf16>, vector<27x128xbf16>, vector<1024x128xf32> -> vector<1024x128xf32>
    %c0_3 = arith.constant 0 : index
    %c0_4 = arith.constant 0 : index
    %3 = vector.load %arg5[%c0_3, %c0_4] : memref<1x128xf32, #tpu.memory_space<vmem>>, vector<1x128xf32>
    %4 = vector.broadcast %3 : vector<1x128xf32> to vector<1024x128xf32>
    %5 = arith.addf %2, %4 : vector<1024x128xf32>
    %cst_5 = arith.constant 0.000000e+00 : f32
    %6 = vector.broadcast %cst_5 : f32 to vector<1024x128xf32>
    %7 = arith.maximumf %5, %6 : vector<1024x128xf32>
    %c0_6 = arith.constant 0 : index
    %c0_7 = arith.constant 0 : index
    %8 = vector.load %arg2[%c0_6, %c0_7] : memref<16x8xf32, #tpu.memory_space<vmem>>, vector<16x8xf32>
    %c0_8 = arith.constant 0 : index
    %c0_9 = arith.constant 0 : index
    %9 = vector.load %arg3[%c0_8, %c0_9] : memref<8x128xf32, #tpu.memory_space<vmem>>, vector<8x128xf32>
    %cst_10 = arith.constant dense<0.000000e+00> : vector<16x128xf32>
    %10 = tpu.matmul %8, %9, %cst_10 {dimension_numbers = #tpu.dot_dimension_numbers<[1], [0], [0], [1], [0, 0, 1, 1], [], []>} : vector<16x8xf32>, vector<8x128xf32>, vector<16x128xf32> -> vector<16x128xf32>
    %11 = arith.truncf %7 : vector<1024x128xf32> to vector<1024x128xbf16>
    %12 = arith.truncf %10 : vector<16x128xf32> to vector<16x128xbf16>
    %13 = vector.shape_cast %12 : vector<16x128xbf16> to vector<16x1x128xbf16>
    %14 = vector.shape_cast %13 : vector<16x1x128xbf16> to vector<16x1x128xbf16>
    %15 = vector.broadcast %14 : vector<16x1x128xbf16> to vector<16x64x128xbf16>
    %16 = vector.shape_cast %15 : vector<16x64x128xbf16> to vector<1024x128xbf16>
    %17 = arith.mulf %11, %16 : vector<1024x128xbf16>
    %c0_11 = arith.constant 0 : index
    %c0_12 = arith.constant 0 : index
    %18 = vector.load %arg6[%c0_11, %c0_12] : memref<128x8xbf16, #tpu.memory_space<vmem>>, vector<128x8xbf16>
    %cst_13 = arith.constant dense<0.000000e+00> : vector<1024x8xf32>
    %19 = tpu.matmul %17, %18, %cst_13 {dimension_numbers = #tpu.dot_dimension_numbers<[1], [0], [0], [1], [0, 0, 1, 1], [], []>} : vector<1024x128xbf16>, vector<128x8xbf16>, vector<1024x8xf32> -> vector<1024x8xf32>
    %c0_14 = arith.constant 0 : index
    %c0_15 = arith.constant 0 : index
    %20 = vector.load %arg7[%c0_14, %c0_15] : memref<1x8xf32, #tpu.memory_space<vmem>>, vector<1x8xf32>
    %21 = vector.broadcast %20 : vector<1x8xf32> to vector<1024x8xf32>
    %22 = arith.addf %19, %21 : vector<1024x8xf32>
    %c0_16 = arith.constant 0 : index
    %c0_17 = arith.constant 0 : index
    %23 = vector.load %arg8[%c0_16, %c0_17] : memref<1024x8xf32, #tpu.memory_space<vmem>>, vector<1024x8xf32>
    tpu.vector_store %arg8[%c0_16, %c0_17], %22 {strides = array<i32>} : memref<1024x8xf32, #tpu.memory_space<vmem>>, vector<1024x8xf32>,
    return
  }
  func.func @transform_0(%arg0: i32) -> (i32, i32) {
    %c0_i32 = arith.constant 0 : i32
    %c0_i32_0 = arith.constant 0 : i32
    return %arg0, %c0_i32 : i32, i32
  }
  func.func @transform_1(%arg0: i32) -> (i32, i32) {
    %c0_i32 = arith.constant 0 : i32
    %c0_i32_0 = arith.constant 0 : i32
    return %arg0, %c0_i32 : i32, i32
  }
  func.func @transform_2(%arg0: i32) -> (i32, i32) {
    %c0_i32 = arith.constant 0 : i32
    %c0_i32_0 = arith.constant 0 : i32
    %c0_i32_1 = arith.constant 0 : i32
    return %c0_i32, %c0_i32_0 : i32, i32
  }
  func.func @transform_3(%arg0: i32) -> (i32, i32) {
    %c0_i32 = arith.constant 0 : i32
    %c0_i32_0 = arith.constant 0 : i32
    %c0_i32_1 = arith.constant 0 : i32
    return %c0_i32, %c0_i32_0 : i32, i32
  }
  func.func @transform_4(%arg0: i32) -> (i32, i32) {
    %c0_i32 = arith.constant 0 : i32
    %c0_i32_0 = arith.constant 0 : i32
    %c0_i32_1 = arith.constant 0 : i32
    return %c0_i32, %c0_i32_0 : i32, i32
  }
  func.func @transform_5(%arg0: i32) -> (i32, i32) {
    %c0_i32 = arith.constant 0 : i32
    %c0_i32_0 = arith.constant 0 : i32
    %c0_i32_1 = arith.constant 0 : i32
    return %c0_i32, %c0_i32_0 : i32, i32
  }
  func.func @transform_6(%arg0: i32) -> (i32, i32) {
    %c0_i32 = arith.constant 0 : i32
    %c0_i32_0 = arith.constant 0 : i32
    %c0_i32_1 = arith.constant 0 : i32
    return %c0_i32, %c0_i32_0 : i32, i32
  }
  func.func @transform_7(%arg0: i32) -> (i32, i32) {
    %c0_i32 = arith.constant 0 : i32
    %c0_i32_0 = arith.constant 0 : i32
    return %arg0, %c0_i32 : i32, i32
  }
}

module attributes {stable_mosaic.version = 11 : i64} {
  func.func @_fused_layer_kernel(%arg0: i32, %arg1: memref<1024x72xbf16, #tpu.memory_space<vmem>>, %arg2: memref<16x8xf32, #tpu.memory_space<vmem>>, %arg3: memref<8x128xf32, #tpu.memory_space<vmem>>, %arg4: memref<72x128xbf16, #tpu.memory_space<vmem>>, %arg5: memref<1x128xf32, #tpu.memory_space<vmem>>, %arg6: memref<128x16xbf16, #tpu.memory_space<vmem>>, %arg7: memref<1x16xf32, #tpu.memory_space<vmem>>, %arg8: memref<1024x16xf32, #tpu.memory_space<vmem>>) attributes {dimension_semantics = [#tpu.dimension_semantics<parallel>], iteration_bounds = array<i64: 2>, scalar_prefetch = 0 : i64, scratch_operands = 0 : i64, tpu.core_type = #tpu.core_type<tc>, window_params = [{transform_indices = @transform_0, window_bounds = array<i64: 1024, 72>}, {transform_indices = @transform_1, window_bounds = array<i64: 16, 8>}, {pipeline_mode = #tpu.pipeline_mode<synchronous>, transform_indices = @transform_2, window_bounds = array<i64: 8, 128>}, {pipeline_mode = #tpu.pipeline_mode<synchronous>, transform_indices = @transform_3, window_bounds = array<i64: 72, 128>}, {pipeline_mode = #tpu.pipeline_mode<synchronous>, transform_indices = @transform_4, window_bounds = array<i64: 1, 128>}, {pipeline_mode = #tpu.pipeline_mode<synchronous>, transform_indices = @transform_5, window_bounds = array<i64: 128, 16>}, {pipeline_mode = #tpu.pipeline_mode<synchronous>, transform_indices = @transform_6, window_bounds = array<i64: 1, 16>}, {transform_indices = @transform_7, window_bounds = array<i64: 1024, 16>}]} {
    %c0 = arith.constant 0 : index
    %c0_0 = arith.constant 0 : index
    %0 = vector.load %arg1[%c0, %c0_0] : memref<1024x72xbf16, #tpu.memory_space<vmem>>, vector<1024x72xbf16>
    %c0_1 = arith.constant 0 : index
    %c0_2 = arith.constant 0 : index
    %1 = vector.load %arg4[%c0_1, %c0_2] : memref<72x128xbf16, #tpu.memory_space<vmem>>, vector<72x128xbf16>
    %cst = arith.constant dense<0.000000e+00> : vector<1024x128xf32>
    %2 = tpu.matmul %0, %1, %cst {dimension_numbers = #tpu.dot_dimension_numbers<[1], [0], [0], [1], [0, 0, 1, 1], [], []>} : vector<1024x72xbf16>, vector<72x128xbf16>, vector<1024x128xf32> -> vector<1024x128xf32>
    %c0_3 = arith.constant 0 : index
    %c0_4 = arith.constant 0 : index
    %3 = vector.load %arg5[%c0_3, %c0_4] : memref<1x128xf32, #tpu.memory_space<vmem>>, vector<1x128xf32>
    %4 = vector.broadcast %3 : vector<1x128xf32> to vector<1024x128xf32>
    %5 = arith.addf %2, %4 : vector<1024x128xf32>
    %cst_5 = arith.constant 0.000000e+00 : f32
    %6 = vector.broadcast %cst_5 : f32 to vector<1024x128xf32>
    %7 = arith.maximumf %5, %6 : vector<1024x128xf32>
    %c0_6 = arith.constant 0 : index
    %c0_7 = arith.constant 0 : index
    %8 = vector.load %arg2[%c0_6, %c0_7] : memref<16x8xf32, #tpu.memory_space<vmem>>, vector<16x8xf32>
    %c0_8 = arith.constant 0 : index
    %c0_9 = arith.constant 0 : index
    %9 = vector.load %arg3[%c0_8, %c0_9] : memref<8x128xf32, #tpu.memory_space<vmem>>, vector<8x128xf32>
    %cst_10 = arith.constant dense<0.000000e+00> : vector<16x128xf32>
    %10 = tpu.matmul %8, %9, %cst_10 {dimension_numbers = #tpu.dot_dimension_numbers<[1], [0], [0], [1], [0, 0, 1, 1], [], []>} : vector<16x8xf32>, vector<8x128xf32>, vector<16x128xf32> -> vector<16x128xf32>
    %11 = arith.truncf %7 : vector<1024x128xf32> to vector<1024x128xbf16>
    %12 = arith.truncf %10 : vector<16x128xf32> to vector<16x128xbf16>
    %13 = vector.shape_cast %12 : vector<16x128xbf16> to vector<16x1x128xbf16>
    %14 = vector.shape_cast %13 : vector<16x1x128xbf16> to vector<16x1x128xbf16>
    %15 = vector.broadcast %14 : vector<16x1x128xbf16> to vector<16x64x128xbf16>
    %16 = vector.shape_cast %15 : vector<16x64x128xbf16> to vector<1024x128xbf16>
    %17 = arith.mulf %11, %16 : vector<1024x128xbf16>
    %c0_11 = arith.constant 0 : index
    %c0_12 = arith.constant 0 : index
    %18 = vector.load %arg6[%c0_11, %c0_12] : memref<128x16xbf16, #tpu.memory_space<vmem>>, vector<128x16xbf16>
    %cst_13 = arith.constant dense<0.000000e+00> : vector<1024x16xf32>
    %19 = tpu.matmul %17, %18, %cst_13 {dimension_numbers = #tpu.dot_dimension_numbers<[1], [0], [0], [1], [0, 0, 1, 1], [], []>} : vector<1024x128xbf16>, vector<128x16xbf16>, vector<1024x16xf32> -> vector<1024x16xf32>
    %c0_14 = arith.constant 0 : index
    %c0_15 = arith.constant 0 : index
    %20 = vector.load %arg7[%c0_14, %c0_15] : memref<1x16xf32, #tpu.memory_space<vmem>>, vector<1x16xf32>
    %21 = vector.broadcast %20 : vector<1x16xf32> to vector<1024x16xf32>
    %22 = arith.addf %19, %21 : vector<1024x16xf32>
    %c0_16 = arith.constant 0 : index
    %c0_17 = arith.constant 0 : index
    %23 = vector.load %arg8[%c0_16, %c0_17] : memref<1024x16xf32, #tpu.memory_space<vmem>>, vector<1024x16xf32>
    tpu.vector_store %arg8[%c0_16, %c0_17], %22 {strides = array<i32>} : memref<1024x16xf32, #tpu.memory_space<vmem>>, vector<1024x16xf32>,
    return
  }
  func.func @transform_0(%arg0: i32) -> (i32, i32) {
    %c0_i32 = arith.constant 0 : i32
    %c0_i32_0 = arith.constant 0 : i32
    return %arg0, %c0_i32 : i32, i32
  }
  func.func @transform_1(%arg0: i32) -> (i32, i32) {
    %c0_i32 = arith.constant 0 : i32
    %c0_i32_0 = arith.constant 0 : i32
    return %arg0, %c0_i32 : i32, i32
  }
  func.func @transform_2(%arg0: i32) -> (i32, i32) {
    %c0_i32 = arith.constant 0 : i32
    %c0_i32_0 = arith.constant 0 : i32
    %c0_i32_1 = arith.constant 0 : i32
    return %c0_i32, %c0_i32_0 : i32, i32
  }
  func.func @transform_3(%arg0: i32) -> (i32, i32) {
    %c0_i32 = arith.constant 0 : i32
    %c0_i32_0 = arith.constant 0 : i32
    %c0_i32_1 = arith.constant 0 : i32
    return %c0_i32, %c0_i32_0 : i32, i32
  }
  func.func @transform_4(%arg0: i32) -> (i32, i32) {
    %c0_i32 = arith.constant 0 : i32
    %c0_i32_0 = arith.constant 0 : i32
    %c0_i32_1 = arith.constant 0 : i32
    return %c0_i32, %c0_i32_0 : i32, i32
  }
  func.func @transform_5(%arg0: i32) -> (i32, i32) {
    %c0_i32 = arith.constant 0 : i32
    %c0_i32_0 = arith.constant 0 : i32
    %c0_i32_1 = arith.constant 0 : i32
    return %c0_i32, %c0_i32_0 : i32, i32
  }
  func.func @transform_6(%arg0: i32) -> (i32, i32) {
    %c0_i32 = arith.constant 0 : i32
    %c0_i32_0 = arith.constant 0 : i32
    %c0_i32_1 = arith.constant 0 : i32
    return %c0_i32, %c0_i32_0 : i32, i32
  }
  func.func @transform_7(%arg0: i32) -> (i32, i32) {
    %c0_i32 = arith.constant 0 : i32
    %c0_i32_0 = arith.constant 0 : i32
    return %arg0, %c0_i32 : i32, i32
  }
}

</mosaic_0001>

<bundles_post_ra>
// kernel: pce_forward.2
= control target key start
LH: loop header
LB: loop body
LE: loop exit
PB: predicated region body
PF: predicated region fallthrough
CT: control target
= control target key end

     0   :  { %s3669_s24 = smov 0   ;;  %s4569_s0 = inlined_call_operand.vmem [shape: bf16[2048,27], index: 0, kind: input, shape index: {}]   ;;  %s4570_s1 = inlined_call_operand.vmem [shape: f32[32,8], index: 1, kind: input, shape index: {}]   ;;  %s4571_s2 = inlined_call_operand.vmem [shape: f32[8,128], index: 2, kind: input, shape index: {}]   ;;  %s4572_s3 = inlined_call_operand.vmem [shape: bf16[27,128], index: 3, kind: input, shape index: {}]   ;;  %s4573_s4 = inlined_call_operand.vmem [shape: f32[1,128], index: 4, kind: input, shape index: {}]   ;;  %s4574_s5 = inlined_call_operand.vmem [shape: bf16[128,8], index: 5, kind: input, shape index: {}]   ;;  %s4575_s6 = inlined_call_operand.vmem [shape: f32[1,8], index: 6, kind: input, shape index: {}]   ;;  %s4576_s7 = inlined_call_operand.vmem [shape: f32[2048,8], index: 7, kind: output, shape index: {}]  }
   0x1 LB: > { %s2932_s25 = sadd.s32 4294967295, %s3625_s24   ;;  %p2936_p0 = scmp.ge.s32.totalorder %s3625_s24, 1  ;;  %s3625_s24 = sphi %s3669_s24, %s17_s24  }
   0x2   : > { %p249_p1 = scmp.lt.s32.totalorder %s3625_s24, 3 }
   0x4   : > { %p250_p2 = pnand %p2936_p0, %p249_p1 }
   0x5   : > { %v3544_v0 = vld [vmem:[%s4572_s3] sm:$0xff] (!%p250_p2)   ;;  %vm968_vm0 = vcmask (!%p250_p2), 1044480   ;;  %v3545_v1 = vld [vmem:[%s4572_s3 + $0x8] sm:$0x3f] (!%p250_p2)   ;;  %vm969_vm1 = vcmask (!%p250_p2), 1045504   ;;  %s2939_s9 = sshll.u32 (!%p250_p2), %s2932_s25, 1 }
   0x6   : > { %253 = sbr.rel (%p250_p2) target bundleno = 713 (0x2c9), region = 48  ;;  %3237 = vmatprep.subr.bf16.mxu0 (!%p250_p2), %v3544_v0  ;;  %v1650_v2 = vld [vmem:[%s4571_s2] sm:$0xff] (!%p250_p2)  ;;  %s2937_s10 = sshll.u32 (!%p250_p2), %s2932_s25, 7  ;;  %v3627_v3 = vmov (!%p250_p2), 65535   ;;  %vm1651_vm2 = vcmask (!%p250_p2), 64512   ;;  %vm775_vm3 = vcmask (!%p250_p2), 220160  }
   0x7   : > { %3238 = vmatpush3.bf16.msra.mxu0 (!%p250_p2), %v3544_v0  ;;  %v970_v4 = vsel (!%p250_p2), %vm968_vm0, 4294967295, %v3627_v3  ;;  %3369 = vmatprep.subr.mxu1 (!%p250_p2), %v1650_v2  ;;  %p293_p3 = scmp.lt.s32.totalorder (!%p250_p2), %s2939_s9, 3  ;;  %p287_p4 = scmp.lt.s32.totalorder (!%p250_p2), %s2937_s10, 255  ;;  %v3598_v30 = vld [vmem:[%s4574_s5] sm:$0xff] (!%p250_p2)   ;;  %v3599_v31 = vld [vmem:[%s4574_s5 + $0x8] sm:$0xff] (!%p250_p2)   ;;  %v3602_v34 = vld [vmem:[%s4574_s5 + $0x10] sm:$0xff] (!%p250_p2)  }
   0x8   : > { %v971_v5 = vsel (!%p250_p2), %vm969_vm1, %v970_v4, 0  ;;  %3370 = vmatpush3.msra.mxu1 (!%p250_p2), %v1650_v2  ;;  %v3603_v37 = vld [vmem:[%s4574_s5 + $0x18] sm:$0xff] (!%p250_p2)   ;;  %v3606_v40 = vld [vmem:[%s4574_s5 + $0x20] sm:$0xff] (!%p250_p2)   ;;  %v3607_v42 = vld [vmem:[%s4574_s5 + $0x28] sm:$0xff] (!%p250_p2)  }
   0x9   : > { %v973_v6 = vand.u32 (!%p250_p2), %v3545_v1, %v971_v5  ;;  %3518 = vmatprep.subr.bf16.mxu1 (!%p250_p2), %v3598_v30  ;;  %v3610_v44 = vld [vmem:[%s4574_s5 + $0x30] sm:$0xff] (!%p250_p2)   ;;  %v3611_v45 = vld [vmem:[%s4574_s5 + $0x38] sm:$0xff] (!%p250_p2)  }
   0xb   : > { %3239 = vmatprep.subr.bf16.mxu0 (!%p250_p2), %v973_v6 }
   0xc   : > { %3240 = vmatpush3.bf16.msra.mxu0 (!%p250_p2), %v973_v6  ;;  %v3628_v6 = vmov (!%p250_p2), 1966171168  }
   0xd   : > { %s4578_s9 = smov (!%p293_p3, %s2939_s9), 3  ;;  %s4580_s10 = smov (!%p287_p4, %s2937_s10), 255  ;;  %3374 = vmatprep.subr.bf16.mxu0 %v3598_v30 }
   0xe   : > { %s2940_s11 = sshll.u32 %s4578_s9, 3  ;;  %s2938_s15 = sshll.u32 %s4580_s10, 2 }
   0xf   : > { %s296_s14 = scalar_lea.vmem %s4570_s1, %s2940_s11  ;;  %s3695_s18 = scalar_lea.vmem %s4569_s0, %s2938_s15 }
  0x10   : > { %v1648_v7 = vld [vmem:[%s296_s14] sm:$0xff]  ;;  %v1649_v8 = vld [vmem:[%s296_s14 + $0x8] sm:$0xff]  ;;  %v3548_v11 = vld [vmem:[%s3695_s18 + $0x10] sm:$0xff]  }
  0x11   : > { %3371 = vmatprep.mubr.msk.f32.mxu1 %vm1651_vm2, %v1648_v7  ;;  %v3546_v9 = vld [vmem:[%s3695_s18] sm:$0xff]   ;;  %v3547_v10 = vld [vmem:[%s3695_s18 + $0x8] sm:$0xff]   ;;  %v3549_v12 = vld [vmem:[%s3695_s18 + $0x18] sm:$0xff]   ;;  %v1801_v7 = vunpack.c.l.s4 %v3628_v6 }
  0x12   : > { %3372 = vmatmul.mubr.msk.f32.vlgmr.msra.gmra.mrb[0].mxu1 %vm1651_vm2, %v1649_v8  ;;  %3241 = vmatprep.mubr.msk.bf16.mxu0 %vm775_vm3, %v3546_v9  ;;  %v3550_v13 = vld [vmem:[%s3695_s18 + $0x20] sm:$0xff]   ;;  %v3551_v14 = vld [vmem:[%s3695_s18 + $0x28] sm:$0xff]   ;;  %v3552_v15 = vld [vmem:[%s3695_s18 + $0x30] sm:$0xff]   ;;  %v1803_v8 = vlaneseq }
  0x13   : > { %3242 = vmatmul.mubr.msk.bf16.vlgmr.msra.gmra.mrb[0].mxu0 %vm775_vm3, %v3547_v10  ;;  %v3553_v16 = vld [vmem:[%s3695_s18 + $0x38] sm:$0xff]   ;;  %v3554_v17 = vld [vmem:[%s3695_s18 + $0x40] sm:$0xff]   ;;  %v3555_v18 = vld [vmem:[%s3695_s18 + $0x48] sm:$0xff]   ;;  %3526 = vmatpush3.bf16.msra.mxu1 %v3598_v30  ;;  %v1802_v10 = vunpack.c.0.s8 %v1801_v7 }
  0x14   : > { %3245 = vmatprep.mubr.msk.bf16.mxu0 %vm775_vm3, %v3548_v11  ;;  %v3556_v19 = vld [vmem:[%s3695_s18 + $0x50] sm:$0xff]   ;;  %v3557_v20 = vld [vmem:[%s3695_s18 + $0x58] sm:$0xff]   ;;  %v3558_v21 = vld [vmem:[%s3695_s18 + $0x60] sm:$0xff]   ;;  %3519 = vmatprep.subr.bf16.mxu1 %v3599_v31  ;;  %v1804_v11 = vshrl.u32 %v1803_v8, 7 }
  0x15   : > { %v3559_v22 = vld [vmem:[%s3695_s18 + $0x68] sm:$0xff]   ;;  %v3560_v23 = vld [vmem:[%s3695_s18 + $0x70] sm:$0xff]   ;;  %v3561_v24 = vld [vmem:[%s3695_s18 + $0x78] sm:$0xff]   ;;  %3375 = vmatpush3.bf16.msra.mxu0 %v3598_v30 }
  0x16   : > { %v3562_v25 = vld [vmem:[%s3695_s18 + $0x80] sm:$0xff]   ;;  %v3563_v26 = vld [vmem:[%s3695_s18 + $0x88] sm:$0xff]   ;;  %v3564_v27 = vld [vmem:[%s3695_s18 + $0x90] sm:$0xff]   ;;  %3376 = vmatprep.subr.bf16.mxu0 %v3599_v31 }
  0x17   : > { %v3565_v28 = vld [vmem:[%s3695_s18 + $0x98] sm:$0xff]   ;;  %v3566_v29 = vld [vmem:[%s3695_s18 + $0xa0] sm:$0xff]   ;;  %v3567_v32 = vld [vmem:[%s3695_s18 + $0xa8] sm:$0xff]   ;;  %3527 = vmatpush3.bf16.msra.mxu1 %v3599_v31 }
  0x18   : > { %v3568_v33 = vld [vmem:[%s3695_s18 + $0xb0] sm:$0xff]   ;;  %3520 = vmatprep.subr.bf16.mxu1 %v3602_v34  ;;  %v3569_v35 = vld [vmem:[%s3695_s18 + $0xb8] sm:$0xff]   ;;  %v3570_v36 = vld [vmem:[%s3695_s18 + $0xc0] sm:$0xff]  }
  0x19   : > { %3377 = vmatpush3.bf16.msra.mxu0 %v3599_v31  ;;  %v3571_v38 = vld [vmem:[%s3695_s18 + $0xc8] sm:$0xff]   ;;  %v3572_v39 = vld [vmem:[%s3695_s18 + $0xd0] sm:$0xff]   ;;  %v3573_v41 = vld [vmem:[%s3695_s18 + $0xd8] sm:$0xff]  }
  0x1a   : > { %3378 = vmatprep.subr.bf16.mxu0 %v3602_v34  ;;  %v3574_v43 = vld [vmem:[%s3695_s18 + $0xe0] sm:$0xff]   ;;  %v3575_v46 = vld [vmem:[%s3695_s18 + $0xe8] sm:$0xff]   ;;  %v3576_v47 = vld [vmem:[%s3695_s18 + $0xf0] sm:$0xff]  }
  0x1b   : > { %3246 = vmatmul.mubr.msk.bf16.gmra.mrb[4].mxu0 %vm775_vm3, %v3549_v12  ;;  %3528 = vmatpush3.bf16.msra.mxu1 %v3602_v34  ;;  %v3577_v48 = vld [vmem:[%s3695_s18 + $0xf8] sm:$0xff]   ;;  %v3578_v49 = vld [vmem:[%s3695_s18 + $0x100] sm:$0xff]   ;;  %v3579_v50 = vld [vmem:[%s3695_s18 + $0x108] sm:$0xff]  }
  0x1c   : > { %3249 = vmatprep.mubr.msk.bf16.mxu0 %vm775_vm3, %v3550_v13  ;;  %3521 = vmatprep.subr.bf16.mxu1 %v3603_v37  ;;  %v3580_v51 = vld [vmem:[%s3695_s18 + $0x110] sm:$0xff]   ;;  %v3581_v52 = vld [vmem:[%s3695_s18 + $0x118] sm:$0xff]   ;;  %v3582_v53 = vld [vmem:[%s3695_s18 + $0x120] sm:$0xff]  }
  0x1d   : > { %3379 = vmatpush3.bf16.msra.mxu0 %v3602_v34  ;;  %v3583_v54 = vld [vmem:[%s3695_s18 + $0x128] sm:$0xff]   ;;  %v3584_v55 = vld [vmem:[%s3695_s18 + $0x130] sm:$0xff]   ;;  %v3585_v56 = vld [vmem:[%s3695_s18 + $0x138] sm:$0xff]  }
  0x1e   : > { %3380 = vmatprep.subr.bf16.mxu0 %v3603_v37  ;;  %v3586_v57 = vld [vmem:[%s3695_s18 + $0x140] sm:$0xff]   ;;  %v3587_v58 = vld [vmem:[%s3695_s18 + $0x148] sm:$0xff]   ;;  %v3588_v59 = vld [vmem:[%s3695_s18 + $0x150] sm:$0xff]  }
  0x1f   : > { %3529 = vmatpush3.bf16.msra.mxu1 %v3603_v37  ;;  %v3589_v60 = vld [vmem:[%s3695_s18 + $0x158] sm:$0xff]   ;;  %v3590_v61 = vld [vmem:[%s3695_s18 + $0x160] sm:$0xff]   ;;  %v3591_v62 = vld [vmem:[%s3695_s18 + $0x168] sm:$0xff]  }
  0x20   : > { %3522 = vmatprep.subr.bf16.mxu1 %v3606_v40  ;;  %v3592_v63 = vld [vmem:[%s3695_s18 + $0x170] sm:$0xff]   ;;  %v3593_v0 = vld [vmem:[%s3695_s18 + $0x178] sm:$0xff]   ;;  %v3594_v1 = vld [vmem:[%s3695_s18 + $0x180] sm:$0xff]  }
  0x21   : > { %3381 = vmatpush3.bf16.msra.mxu0 %v3603_v37  ;;  %v3595_v2 = vld [vmem:[%s3695_s18 + $0x188] sm:$0xff]   ;;  %v3596_v3 = vld [vmem:[%s3695_s18 + $0x190] sm:$0xff]   ;;  %v3597_v4 = vld [vmem:[%s3695_s18 + $0x198] sm:$0xff]  }
  0x22   : > { %3382 = vmatprep.subr.bf16.mxu0 %v3606_v40  ;;  %v3600_v5 = vld [vmem:[%s3695_s18 + $0x1a0] sm:$0xff]   ;;  %v3601_v9 = vld [vmem:[%s3695_s18 + $0x1a8] sm:$0xff]   ;;  %v3604_v12 = vld [vmem:[%s3695_s18 + $0x1b0] sm:$0xff]  }
  0x23   : > { %3250 = vmatmul.mubr.msk.bf16.gmra.mrb[8].mxu0 %vm775_vm3, %v3551_v14  ;;  %3530 = vmatpush3.bf16.msra.mxu1 %v3606_v40  ;;  %v1805_v14 = vsub.s32 %v1802_v10, %v1804_v11 }
  0x24   : > { %3253 = vmatprep.mubr.msk.bf16.mxu0 %vm775_vm3, %v3552_v15  ;;  %3523 = vmatprep.subr.bf16.mxu1 %v3607_v42 }
  0x25   : > { %3383 = vmatpush3.bf16.msra.mxu0 %v3606_v40 }
  0x26   : > { %3384 = vmatprep.subr.bf16.mxu0 %v3607_v42 }
  0x27   : > { %3531 = vmatpush3.bf16.msra.mxu1 %v3607_v42 }
  0x28   : > { %3524 = vmatprep.subr.bf16.mxu1 %v3610_v44 }
  0x29   : > { %3385 = vmatpush3.bf16.msra.mxu0 %v3607_v42 }
  0x2a   : > { %3386 = vmatprep.subr.bf16.mxu0 %v3610_v44 }
  0x2b   : > { %3254 = vmatmul.mubr.msk.bf16.gmra.mrb[12].mxu0 %vm775_vm3, %v3553_v16  ;;  %3532 = vmatpush3.bf16.msra.mxu1 %v3610_v44 }
  0x2c   : > { %3257 = vmatprep.mubr.msk.bf16.mxu0 %vm775_vm3, %v3554_v17  ;;  %3525 = vmatprep.subr.bf16.mxu1 %v3611_v45 }
  0x2d   : > { %3387 = vmatpush3.bf16.msra.mxu0 %v3610_v44 }
  0x2e   : > { %3388 = vmatprep.subr.bf16.mxu0 %v3611_v45 }
  0x2f   : > { %3533 = vmatpush3.bf16.msra.mxu1 %v3611_v45 }
  0x31   : > { %3389 = vmatpush3.bf16.msra.mxu0 %v3611_v45 }
  0x33   : > { %3258 = vmatmul.mubr.msk.bf16.gmra.mrb[16].mxu0 %vm775_vm3, %v3555_v18 }
  0x34   : > { %3261 = vmatprep.mubr.msk.bf16.mxu0 %vm775_vm3, %v3556_v19 }
  0x3b   : > { %3262 = vmatmul.mubr.msk.bf16.gmra.mrb[20].mxu0 %vm775_vm3, %v3557_v20 }
  0x3c   : > { %3265 = vmatprep.mubr.msk.bf16.mxu0 %vm775_vm3, %v3558_v21  ;;  %v3605_v21 = vld [vmem:[%s3695_s18 + $0x1b8] sm:$0xff]  }
  0x43   : > { %3266 = vmatmul.mubr.msk.bf16.gmra.mrb[24].mxu0 %vm775_vm3, %v3559_v22 }
  0x44   : > { %3269 = vmatprep.mubr.msk.bf16.mxu0 %vm775_vm3, %v3560_v23 }
  0x4b   : > { %3270 = vmatmul.mubr.msk.bf16.gmra.mrb[28].mxu0 %vm775_vm3, %v3561_v24  ;;  %v3608_v24 = vld [vmem:[%s3695_s18 + $0x1c0] sm:$0xff]  }
  0x4c   : > { %3273 = vmatprep.mubr.msk.bf16.mxu0 %vm775_vm3, %v3562_v25 }
  0x53   : > { %3274 = vmatmul.mubr.msk.bf16.gmra.mrb[32].mxu0 %vm775_vm3, %v3563_v26 }
  0x54   : > { %3277 = vmatprep.mubr.msk.bf16.mxu0 %vm775_vm3, %v3564_v27  ;;  %v3838_v27 = vld [vmem:[%s4573_s4] ss:$0 sm:$0xff] }
  0x5b   : > { %3278 = vmatmul.mubr.msk.bf16.gmra.mrb[36].mxu0 %vm775_vm3, %v3565_v28 }
  0x5c   : > { %3281 = vmatprep.mubr.msk.bf16.mxu0 %vm775_vm3, %v3566_v29 }
  0x63   : > { %3282 = vmatmul.mubr.msk.bf16.gmra.mrb[40].mxu0 %vm775_vm3, %v3567_v32 }
  0x64   : > { %3285 = vmatprep.mubr.msk.bf16.mxu0 %vm775_vm3, %v3568_v33 }
  0x6b   : > { %3286 = vmatmul.mubr.msk.bf16.gmra.mrb[44].mxu0 %vm775_vm3, %v3569_v35  ;;  %v3841_v35 = vsub.s32 0, %v1804_v11 }
  0x6c   : > { %3289 = vmatprep.mubr.msk.bf16.mxu0 %vm775_vm3, %v3570_v36 }
  0x73   : > { %3290 = vmatmul.mubr.msk.bf16.gmra.mrb[48].mxu0 %vm775_vm3, %v3571_v38 }
  0x74   : > { %3293 = vmatprep.mubr.msk.bf16.mxu0 %vm775_vm3, %v3572_v39 }
  0x7b   : > { %3294 = vmatmul.mubr.msk.bf16.gmra.mrb[52].mxu0 %vm775_vm3, %v3573_v41 }
  0x7c   : > { %3297 = vmatprep.mubr.msk.bf16.mxu0 %vm775_vm3, %v3574_v43 }
  0x83   : > { %3298 = vmatmul.mubr.msk.bf16.gmra.mrb[56].mxu0 %vm775_vm3, %v3575_v46 }
  0x84   : > { %3301 = vmatprep.mubr.msk.bf16.mxu0 %vm775_vm3, %v3576_v47 }
  0x8b   : > { %3302 = vmatmul.mubr.msk.bf16.gmra.mrb[60].mxu0 %vm775_vm3, %v3577_v48 }
  0x8c   : > { %3305 = vmatprep.mubr.msk.bf16.mxu0 %vm775_vm3, %v3578_v49 }
  0x93   : > { %3306 = vmatmul.mubr.msk.bf16.gmra.mrb[64].mxu0 %vm775_vm3, %v3579_v50 }
  0x94   : > { %3309 = vmatprep.mubr.msk.bf16.mxu0 %vm775_vm3, %v3580_v51  ;;  %v3609_v51 = vld [vmem:[%s3695_s18 + $0x1c8] sm:$0xff]  }
  0x9b   : > { %3310 = vmatmul.mubr.msk.bf16.gmra.mrb[68].mxu0 %vm775_vm3, %v3581_v52 }
  0x9c   : > { %3313 = vmatprep.mubr.msk.bf16.mxu0 %vm775_vm3, %v3582_v53 }
  0xa3   : > { %3314 = vmatmul.mubr.msk.bf16.gmra.mrb[72].mxu0 %vm775_vm3, %v3583_v54 }
  0xa4   : > { %3317 = vmatprep.mubr.msk.bf16.mxu0 %vm775_vm3, %v3584_v55 }
  0xab   : > { %3318 = vmatmul.mubr.msk.bf16.gmra.mrb[76].mxu0 %vm775_vm3, %v3585_v56 }
  0xac   : > { %3321 = vmatprep.mubr.msk.bf16.mxu0 %vm775_vm3, %v3586_v57  ;;  %v3612_v57 = vld [vmem:[%s3695_s18 + $0x1d0] sm:$0xff]  }
  0xb3   : > { %3322 = vmatmul.mubr.msk.bf16.gmra.mrb[80].mxu0 %vm775_vm3, %v3587_v58 }
  0xb4   : > { %3325 = vmatprep.mubr.msk.bf16.mxu0 %vm775_vm3, %v3588_v59 }
  0xbb   : > { %3326 = vmatmul.mubr.msk.bf16.gmra.mrb[84].mxu0 %vm775_vm3, %v3589_v60 }
  0xbc   : > { %3329 = vmatprep.mubr.msk.bf16.mxu0 %vm775_vm3, %v3590_v61 }
  0xc3   : > { %3330 = vmatmul.mubr.msk.bf16.gmra.mrb[88].mxu0 %vm775_vm3, %v3591_v62 }
  0xc4   : > { %3333 = vmatprep.mubr.msk.bf16.mxu0 %vm775_vm3, %v3592_v63 }
  0xcb   : > { %3334 = vmatmul.mubr.msk.bf16.gmra.mrb[92].mxu0 %vm775_vm3, %v3593_v0 }
  0xcc   : > { %3337 = vmatprep.mubr.msk.bf16.mxu0 %vm775_vm3, %v3594_v1 }
  0xd3   : > { %3338 = vmatmul.mubr.msk.bf16.gmra.mrb[96].mxu0 %vm775_vm3, %v3595_v2 }
  0xd4   : > { %3341 = vmatprep.mubr.msk.bf16.mxu0 %vm775_vm3, %v3596_v3 }
  0xdb   : > { %3342 = vmatmul.mubr.msk.bf16.gmra.mrb[100].mxu0 %vm775_vm3, %v3597_v4 }
  0xdc   : > { %3345 = vmatprep.mubr.msk.bf16.mxu0 %vm775_vm3, %v3600_v5 }
  0xe3   : > { %3346 = vmatmul.mubr.msk.bf16.gmra.mrb[104].mxu0 %vm775_vm3, %v3601_v9 }
  0xe4   : > { %3349 = vmatprep.mubr.msk.bf16.mxu0 %vm775_vm3, %v3604_v12 }
  0xe5   : > { %v3373_v13 = vpop.f32.mrb[0].mxu1 }
  0xe6   : > { %v3076_v15 = vpack.c.bf16 %v3373_v13, %v3373_v13  ;;  %v1724_v16 = vpop.f32.mrb[1].mxu1  ;;  %v3243_v18 = vpop.f32.mrb[0].mxu0 }
  0xe7   : > { %v1797_v17 = vpack.c.bf16 %v3373_v13, %v1724_v16  ;;  %v1009_v20 = vpop.f32.mrb[1].mxu0  ;;  %v1018_v36 = vadd.f32 %v3243_v18, %v3838_v27 }
  0xe8   : > { %v1813_v19 = vrot.slane %v3076_v15, %v1805_v14  ;;  %v3244_v23 = vpop.f32.mrb[2].mxu0  ;;  %v1010_v49 = vadd.f32 %v3838_v27, %v1009_v20 }
  0xe9   : > { %v1806_v22 = vrot.slane %v1797_v17, %v1805_v14  ;;  %v1012_v28 = vpop.f32.mrb[3].mxu0  ;;  %v1021_v59 = vadd.f32 %v3244_v23, %v3838_v27  ;;  %v1522_v0 = vmax.f32 %v1018_v36, 0.0  ;;  %v3613_v23 = vld [vmem:[%s3695_s18 + $0x1d8] sm:$0xff]  }
  0xea   : > { %v1815_v25 = vcombine.high %v1813_v19, %v1813_v19  ;;  %v1829_v26 = vrot.slane %v1813_v19, %v1805_v14  ;;  %v1013_v60 = vadd.f32 %v3838_v27, %v1012_v28  ;;  %v1520_v4 = vmax.f32 %v1010_v49, 0.0 }
  0xeb   : > { %v1814_v29 = vcombine.high %v1806_v22, %v1806_v22  ;;  %v1822_v30 = vrot.slane %v1806_v22, %v1805_v14  ;;  %3350 = vmatmul.mubr.msk.bf16.gmra.mrb[108].mxu0 %vm775_vm3, %v3605_v21  ;;  %v1523_v11 = vmax.f32 %v1021_v59, 0.0 }
  0xec   : > { %v1843_v31 = vrot.slane %v1815_v25, %v1805_v14  ;;  %v1845_v32 = vcombine.high %v1829_v26, %v1829_v26  ;;  %v1857_v33 = vunpack.i.h.s16 %v1829_v26  ;;  %v3081_v34 = vpack.i.b16 %v1829_v26, %v1829_v26  ;;  %3353 = vmatprep.mubr.msk.bf16.mxu0 %vm775_vm3, %v3608_v24 }
  0xed   : > { %v3847_v39 = vrot.slane %v1814_v29, %v1805_v14  ;;  %v3849_v40 = vcombine.high %v1822_v30, %v1822_v30  ;;  %v1849_v44 = vunpack.i.h.s16 %v1822_v30  ;;  %v3077_v48 = vpack.i.b16 %v1822_v30, %v1822_v30  ;;  %v3614_v30 = vld [vmem:[%s3695_s18 + $0x1e0] sm:$0xff]  }
  0xee   : > { %v3845_v37 = vcombine.high %v1843_v31, %v1843_v31  ;;  %v1873_v38 = vpack.i.b16 %v1857_v33, %v1857_v33  ;;  %v3082_v41 = vpack.i.b16 %v1843_v31, %v1843_v31  ;;  %v3083_v42 = vpack.i.b16 %v1845_v32, %v1845_v32  ;;  %v3247_v45 = vpop.f32.mrb[4].mxu0 }
  0xef   : > { %v3852_v43 = vrot.slane %v3081_v34, %v3841_v35  ;;  %v1859_v46 = vunpack.i.h.s16 %v1843_v31  ;;  %v1861_v47 = vunpack.i.h.s16 %v1845_v32  ;;  %v1025_v50 = vpop.f32.mrb[5].mxu0  ;;  %v1853_v58 = vunpack.i.h.s16 %v3849_v40 }
  0xf0   : > { %v1863_v52 = vunpack.i.h.s16 %v3845_v37  ;;  %v3858_v53 = vrot.slane %v1873_v38, %v3841_v35  ;;  %v3861_v54 = vrot.slane %v3082_v41, %v3841_v35  ;;  %v3864_v55 = vrot.slane %v3083_v42, %v3841_v35  ;;  %v3248_v56 = vpop.f32.mrb[6].mxu0 }
  0xf1   : > { %v1028_v61 = vpop.f32.mrb[7].mxu0  ;;  %v1846_v62 = vcombine.high %v3847_v39, %v3847_v39  ;;  %v1865_v63 = vpack.i.b16 %v1849_v44, %v1849_v44  ;;  %v3872_v1 = vpack.i.b16 %v1859_v46, %v1859_v46  ;;  %v3874_v2 = vpack.i.b16 %v1861_v47, %v1861_v47 }
  0xf2   : > { %v1869_v3 = vpack.i.b16 %v1853_v58, %v1853_v58  ;;  %v3084_v5 = vpack.i.b16 %v3845_v37, %v3845_v37  ;;  %v3879_v6 = vpack.i.b16 %v1863_v52, %v1863_v52  ;;  %v2001_v7 = vpack.i.b16 %v3852_v43, %v3852_v43 }
  0xf3   : > { %3354 = vmatmul.mubr.msk.bf16.gmra.mrb[112].mxu0 %vm775_vm3, %v3609_v51  ;;  %v1883_v8 = vrot.slane %v3077_v48, %v3841_v35  ;;  %v1887_v9 = vrot.slane %v1865_v63, %v3841_v35  ;;  %v1521_v12 = vmax.f32 %v1013_v60, 0.0  ;;  %v2008_v13 = vpack.i.b16 %v3858_v53, %v3858_v53 }
  0xf4   : > { %3357 = vmatprep.mubr.msk.bf16.mxu0 %vm775_vm3, %v3612_v57  ;;  %v1903_v10 = vrot.slane %v1869_v3, %v3841_v35  ;;  %v1855_v14 = vunpack.i.h.s16 %v1846_v62  ;;  %v3080_v15 = vpack.i.b16 %v1846_v62, %v1846_v62  ;;  %v3889_v18 = vpack.c.bf16 %v1523_v11, %v1522_v0  ;;  %v3615_v11 = vld [vmem:[%s3695_s18 + $0x1e8] sm:$0xff]  }
  0xf5   : > { %v1945_v16 = vpack.i.b16 %v1883_v8, %v1883_v8  ;;  %v3891_v19 = vpack.c.bf16 %v1521_v12, %v1520_v4  ;;  %v1034_v20 = vadd.f32 %v3247_v45, %v3838_v27  ;;  %v1026_v21 = vadd.f32 %v3838_v27, %v1025_v50 }
  0xf6   : > { %v3251_v17 = vpop.f32.mrb[8].mxu0  ;;  %v1037_v25 = vadd.f32 %v3248_v56, %v3838_v27  ;;  %v1029_v26 = vadd.f32 %v3838_v27, %v1028_v61  ;;  %v1952_v31 = vpack.i.b16 %v1887_v9, %v1887_v9  ;;  %v3078_v45 = vpack.i.b16 %v3847_v39, %v3847_v39 }
  0xf7   : > { %v1041_v22 = vpop.f32.mrb[9].mxu0  ;;  %v3897_v24 = vrot.slane %v1945_v16, %v3841_v35  ;;  %v1050_v28 = vadd.f32 %v3251_v17, %v3838_v27  ;;  %v1526_v32 = vmax.f32 %v1034_v20, 0.0  ;;  %v1524_v41 = vmax.f32 %v1026_v21, 0.0  ;;  %v3616_v17 = vld [vmem:[%s3695_s18 + $0x1f0] sm:$0xff]  }
  0xf8   : > { %v3252_v29 = vpop.f32.mrb[10].mxu0  ;;  %v1042_v33 = vadd.f32 %v3838_v27, %v1041_v22  ;;  %v1527_v42 = vmax.f32 %v1037_v25, 0.0  ;;  %v1525_v44 = vmax.f32 %v1029_v26, 0.0  ;;  %v1871_v49 = vpack.i.b16 %v1855_v14, %v1855_v14 }
  0xf9   : > { %v1053_v34 = vadd.f32 %v3252_v29, %v3838_v27  ;;  %v1044_v36 = vpop.f32.mrb[11].mxu0  ;;  %v2057_v38 = vmul.bf16 %v3897_v24, %v3889_v18  ;;  %v1530_v46 = vmax.f32 %v1050_v28, 0.0  ;;  %v2056_v52 = vmul.bf16 %v3897_v24, %v3891_v19 }
  0xfa   : > { %v1045_v48 = vadd.f32 %v3838_v27, %v1044_v36  ;;  %v1736_v50 = vpack.c.bf16 %v1527_v42, %v1526_v32  ;;  %v1735_v51 = vpack.c.bf16 %v1525_v44, %v1524_v41  ;;  %v1528_v56 = vmax.f32 %v1042_v33, 0.0 }
  0xfb   : > { %v1531_v47 = vmax.f32 %v1053_v34, 0.0  ;;  %3358 = vmatmul.mubr.msk.bf16.gmra.mrb[116].mxu0 %vm775_vm3, %v3613_v23  ;;  %v3917_v59 = vrot.slane %v1952_v31, %v3841_v35  ;;  %v1980_v63 = vpack.i.b16 %v1903_v10, %v1903_v10  ;;  %v1907_v0 = vrot.slane %v3080_v15, %v3841_v35 }
  0xfc   : > { %3361 = vmatprep.mubr.msk.bf16.mxu0 %vm775_vm3, %v3614_v30  ;;  %v1529_v58 = vmax.f32 %v1045_v48, 0.0  ;;  %v2059_v60 = vmul.bf16 %v3897_v24, %v1736_v50  ;;  %v2058_v61 = vmul.bf16 %v3897_v24, %v1735_v51  ;;  %v3923_v3 = vrot.slane %v3078_v45, %v3841_v35 }
  0xfd   : > { %v3914_v57 = vpack.c.bf16 %v1531_v47, %v1530_v46  ;;  %v3932_v10 = vrot.slane %v1980_v63, %v3841_v35  ;;  %v1987_v15 = vpack.i.b16 %v1907_v0, %v1907_v0  ;;  %v1911_v20 = vrot.slane %v1871_v49, %v3841_v35  ;;  %v3617_v49 = vld [vmem:[%s3695_s18 + $0x1f8] sm:$0xff]   ;;  %s2942_s18 = sshll.u32 %s4580_s10, 3 }
  0xfe   : > { %v3255_v62 = vpop.f32.mrb[12].mxu0  ;;  %v1737_v4 = vpack.c.bf16 %v1529_v58, %v1528_v56  ;;  %3394 = vmatprep.mubr.bf16.mxu1 %v2058_v61  ;;  %v3941_v26 = vrot.slane %v2001_v7, %v3841_v35  ;;  %v3952_v33 = vrot.slane %v2008_v13, %v3841_v35  ;;  %v2015_v43 = vpack.i.b16 %v3861_v54, %v3861_v54  ;;  %s4166_s23 = scalar_lea.vmem %s4576_s7, %s2942_s18 }
  0xff   : > { %v1066_v8 = vadd.f32 %v3255_v62, %v3838_v27  ;;  %v1057_v9 = vpop.f32.mrb[13].mxu0  ;;  %v2061_v12 = vmul.bf16 %v3917_v59, %v3914_v57  ;;  %3395 = vmatmul.mubr.bf16.vlgmr.msra.gmra.mrb[4].mxu1 %v2059_v60  ;;  %v3945_v30 = vrot.slane %v1987_v15, %v3841_v35  ;;  %v1994_v31 = vpack.i.b16 %v1911_v20, %v1911_v20 }
 0x100   : > { %v1058_v14 = vadd.f32 %v3838_v27, %v1057_v9  ;;  %v3256_v16 = vpop.f32.mrb[14].mxu0  ;;  %v2060_v25 = vmul.bf16 %v3917_v59, %v1737_v4  ;;  %v1927_v7 = vrot.slane %v3872_v1, %v3841_v35  ;;  %v2029_v41 = vpack.i.b16 %v3864_v55, %v3864_v55 }
 0x101   : > { %v1534_v21 = vmax.f32 %v1066_v8, 0.0  ;;  %v1069_v22 = vadd.f32 %v3256_v16, %v3838_v27  ;;  %v1060_v23 = vpop.f32.mrb[15].mxu0  ;;  %v3960_v36 = vrot.slane %v1994_v31, %v3841_v35  ;;  %v1935_v53 = vrot.slane %v3874_v2, %v3841_v35 }
 0x102   : > { %v1532_v28 = vmax.f32 %v1058_v14, 0.0  ;;  %v1061_v29 = vadd.f32 %v3838_v27, %v1060_v23  ;;  %3398 = vmatprep.mubr.bf16.mxu1 %v2060_v25  ;;  %v3967_v42 = vrot.slane %v2015_v43, %v3841_v35  ;;  %v2022_v54 = vpack.i.b16 %v1927_v7, %v1927_v7 }
 0x103   : > { %v1535_v32 = vmax.f32 %v1069_v22, 0.0  ;;  %3362 = vmatmul.mubr.msk.bf16.gmra.mrb[120].mxu0 %vm775_vm3, %v3615_v11  ;;  %v1939_v1 = vrot.slane %v3084_v5, %v3841_v35  ;;  %v3974_v46 = vrot.slane %v2029_v41, %v3841_v35  ;;  %v2036_v47 = vpack.i.b16 %v1935_v53, %v1935_v53 }
 0x104   : > { %v1533_v34 = vmax.f32 %v1061_v29, 0.0  ;;  %3365 = vmatprep.mubr.msk.bf16.mxu0 %vm775_vm3, %v3616_v17  ;;  %v1943_v55 = vrot.slane %v3879_v6, %v3841_v35  ;;  %v3982_v51 = vrot.slane %v2022_v54, %v3841_v35  ;;  %v1959_v6 = vpack.i.b16 %v3923_v3, %v3923_v3 }
 0x105   : > { %v1740_v13 = vpack.c.bf16 %v1535_v32, %v1534_v21  ;;  %v2043_v37 = vpack.i.b16 %v1939_v1, %v1939_v1  ;;  %v3987_v58 = vrot.slane %v2036_v47, %v3841_v35  ;;  %v1851_v3 = vunpack.i.h.s16 %v3847_v39 }
 0x106   : > { %v1739_v44 = vpack.c.bf16 %v1533_v34, %v1532_v28  ;;  %v3259_v45 = vpop.f32.mrb[16].mxu0  ;;  %v2050_v60 = vpack.i.b16 %v1943_v55, %v1943_v55  ;;  %v1964_v14 = vrot.slane %v1959_v6, %v3841_v35 }
 0x107   : > { %v1082_v2 = vadd.f32 %v3259_v45, %v3838_v27  ;;  %v1073_v48 = vpop.f32.mrb[17].mxu0  ;;  %v2063_v50 = vmul.bf16 %v3917_v59, %v1740_v13  ;;  %3399 = vmatmul.mubr.bf16.gmra.mrb[8].mxu1 %v2061_v12  ;;  %v3993_v63 = vrot.slane %v2043_v37, %v3841_v35  ;;  %v1867_v28 = vpack.i.b16 %v1851_v3, %v1851_v3 }
 0x108   : > { %v1074_v5 = vadd.f32 %v3838_v27, %v1073_v48  ;;  %v3260_v56 = vpop.f32.mrb[18].mxu0  ;;  %v2062_v57 = vmul.bf16 %v3917_v59, %v1739_v44  ;;  %v3997_v4 = vrot.slane %v2050_v60, %v3841_v35 }
 0x109   : > { %v1085_v61 = vadd.f32 %v3260_v56, %v3838_v27  ;;  %v1076_v62 = vpop.f32.mrb[19].mxu0  ;;  %v1538_v59 = vmax.f32 %v1082_v2, 0.0  ;;  %v1895_v7 = vrot.slane %v1867_v28, %v3841_v35 }
 0x10a   : > { %v1077_v0 = vadd.f32 %v3838_v27, %v1076_v62  ;;  %3402 = vmatprep.mubr.bf16.mxu1 %v2062_v57  ;;  %v1536_v9 = vmax.f32 %v1074_v5, 0.0 }
 0x10b   : > { %v1539_v8 = vmax.f32 %v1085_v61, 0.0  ;;  %3366 = vmatmul.mubr.msk.bf16.gmra.mrb[124].mxu0 %vm775_vm3, %v3617_v49  ;;  %v1966_v24 = vpack.i.b16 %v1895_v7, %v1895_v7 }
 0x10c   : > { %v1537_v11 = vmax.f32 %v1077_v0, 0.0  ;;  %3390 = vmatprep.mubr.bf16.mxu0 %v2056_v52 }
 0x10d   : > { %v1742_v12 = vpack.c.bf16 %v1539_v8, %v1538_v59  ;;  %v1971_v5 = vrot.slane %v1966_v24, %v3841_v35  ;;  %v3079_v8 = vpack.i.b16 %v3849_v40, %v3849_v40 }
 0x10e   : > { %v1741_v16 = vpack.c.bf16 %v1537_v11, %v1536_v9  ;;  %v3263_v17 = vpop.f32.mrb[20].mxu0 }
 0x10f   : > { %v1098_v15 = vadd.f32 %v3263_v17, %v3838_v27  ;;  %v1089_v20 = vpop.f32.mrb[21].mxu0  ;;  %v2065_v21 = vmul.bf16 %v1964_v14, %v1742_v12  ;;  %3403 = vmatmul.mubr.bf16.gmra.mrb[12].mxu1 %v2063_v50 }
 0x110   : > { %v1090_v22 = vadd.f32 %v3838_v27, %v1089_v20  ;;  %v3264_v23 = vpop.f32.mrb[22].mxu0  ;;  %v2064_v25 = vmul.bf16 %v1964_v14, %v1741_v16 }
 0x111   : > { %v1101_v19 = vadd.f32 %v3264_v23, %v3838_v27  ;;  %v1092_v52 = vpop.f32.mrb[23].mxu0  ;;  %v1542_v29 = vmax.f32 %v1098_v15, 0.0  ;;  %v1899_v15 = vrot.slane %v3079_v8, %v3841_v35 }
 0x112   : > { %v1093_v39 = vadd.f32 %v3838_v27, %v1092_v52  ;;  %3406 = vmatprep.mubr.bf16.mxu1 %v2064_v25  ;;  %v1540_v32 = vmax.f32 %v1090_v22, 0.0 }
 0x113   : > { %v1543_v31 = vmax.f32 %v1101_v19, 0.0  ;;  %3391 = vmatmul.mubr.bf16.vlgmr.msra.gmra.mrb[128].mxu0 %v2057_v38 }
 0x114   : > { %v1541_v43 = vmax.f32 %v1093_v39, 0.0  ;;  %v1973_v39 = vpack.i.b16 %v1899_v15, %v1899_v15 }
 0x115   : > { %v1744_v34 = vpack.c.bf16 %v1543_v31, %v1542_v29 }
 0x116   : > { %v1743_v41 = vpack.c.bf16 %v1541_v43, %v1540_v32  ;;  %v3267_v53 = vpop.f32.mrb[24].mxu0 }
 0x117   : > { %v1114_v13 = vadd.f32 %v3267_v53, %v3838_v27  ;;  %v1105_v54 = vpop.f32.mrb[25].mxu0  ;;  %v2067_v1 = vmul.bf16 %v1964_v14, %v1744_v34  ;;  %3407 = vmatmul.mubr.bf16.gmra.mrb[16].mxu1 %v2065_v21 }
 0x118   : > { %v1106_v44 = vadd.f32 %v3838_v27, %v1105_v54  ;;  %v3268_v45 = vpop.f32.mrb[26].mxu0  ;;  %v2066_v47 = vmul.bf16 %v1964_v14, %v1743_v41 }
 0x119   : > { %v1117_v55 = vadd.f32 %v3268_v45, %v3838_v27  ;;  %v1108_v18 = vpop.f32.mrb[27].mxu0  ;;  %v1546_v2 = vmax.f32 %v1114_v13, 0.0  ;;  %v1978_v13 = vrot.slane %v1973_v39, %v3841_v35 }
 0x11a   : > { %v1109_v38 = vadd.f32 %v3838_v27, %v1108_v18  ;;  %3410 = vmatprep.mubr.bf16.mxu1 %v2066_v47  ;;  %v1544_v49 = vmax.f32 %v1106_v44, 0.0 }
 0x11b   : > { %v1547_v48 = vmax.f32 %v1117_v55, 0.0 }
 0x11c   : > { %v1545_v50 = vmax.f32 %v1109_v38, 0.0 }
 0x11d   : > { %v1746_v37 = vpack.c.bf16 %v1547_v48, %v1546_v2 }
 0x11e   : > { %v1745_v56 = vpack.c.bf16 %v1545_v50, %v1544_v49  ;;  %v3271_v57 = vpop.f32.mrb[28].mxu0 }
 0x11f   : > { %v1130_v60 = vadd.f32 %v3271_v57, %v3838_v27  ;;  %v1121_v6 = vpop.f32.mrb[29].mxu0  ;;  %v2069_v61 = vmul.bf16 %v1971_v5, %v1746_v37  ;;  %3411 = vmatmul.mubr.bf16.gmra.mrb[20].mxu1 %v2067_v1 }
 0x120   : > { %v1122_v62 = vadd.f32 %v3838_v27, %v1121_v6  ;;  %v3272_v0 = vpop.f32.mrb[30].mxu0  ;;  %v2068_v59 = vmul.bf16 %v1971_v5, %v1745_v56 }
 0x121   : > { %v1133_v9 = vadd.f32 %v3272_v0, %v3838_v27  ;;  %v1124_v11 = vpop.f32.mrb[31].mxu0  ;;  %v1550_v12 = vmax.f32 %v1130_v60, 0.0 }
 0x122   : > { %v1125_v3 = vadd.f32 %v3838_v27, %v1124_v11  ;;  %3414 = vmatprep.mubr.bf16.mxu1 %v2068_v59  ;;  %v1548_v16 = vmax.f32 %v1122_v62, 0.0 }
 0x123   : > { %v1551_v14 = vmax.f32 %v1133_v9, 0.0 }
 0x124   : > { %v1549_v17 = vmax.f32 %v1125_v3, 0.0 }
 0x125   : > { %v1748_v20 = vpack.c.bf16 %v1551_v14, %v1550_v12 }
 0x126   : > { %v1747_v21 = vpack.c.bf16 %v1549_v17, %v1548_v16  ;;  %v3275_v22 = vpop.f32.mrb[32].mxu0 }
 0x127   : > { %v1146_v23 = vadd.f32 %v3275_v22, %v3838_v27  ;;  %v1137_v25 = vpop.f32.mrb[33].mxu0  ;;  %v2071_v40 = vmul.bf16 %v1971_v5, %v1748_v20  ;;  %3415 = vmatmul.mubr.bf16.gmra.mrb[24].mxu1 %v2069_v61 }
 0x128   : > { %v1138_v28 = vadd.f32 %v3838_v27, %v1137_v25  ;;  %v3276_v19 = vpop.f32.mrb[34].mxu0  ;;  %v2070_v52 = vmul.bf16 %v1971_v5, %v1747_v21 }
 0x129   : > { %v1149_v29 = vadd.f32 %v3276_v19, %v3838_v27  ;;  %v1140_v31 = vpop.f32.mrb[35].mxu0  ;;  %v1554_v43 = vmax.f32 %v1146_v23, 0.0 }
 0x12a   : > { %v1141_v32 = vadd.f32 %v3838_v27, %v1140_v31  ;;  %3418 = vmatprep.mubr.bf16.mxu1 %v2070_v52  ;;  %v1552_v34 = vmax.f32 %v1138_v28, 0.0 }
 0x12b   : > { %v1555_v7 = vmax.f32 %v1149_v29, 0.0 }
 0x12c   : > { %v1553_v41 = vmax.f32 %v1141_v32, 0.0 }
 0x12d   : > { %v1750_v53 = vpack.c.bf16 %v1555_v7, %v1554_v43 }
 0x12e   : > { %v1749_v54 = vpack.c.bf16 %v1553_v41, %v1552_v34  ;;  %v3279_v1 = vpop.f32.mrb[36].mxu0 }
 0x12f   : > { %v1162_v44 = vadd.f32 %v3279_v1, %v3838_v27  ;;  %v1153_v45 = vpop.f32.mrb[37].mxu0  ;;  %v2073_v47 = vmul.bf16 %v1978_v13, %v1750_v53  ;;  %3419 = vmatmul.mubr.bf16.gmra.mrb[28].mxu1 %v2071_v40 }
 0x130   : > { %v1154_v55 = vadd.f32 %v3838_v27, %v1153_v45  ;;  %v3280_v18 = vpop.f32.mrb[38].mxu0  ;;  %v2072_v24 = vmul.bf16 %v1978_v13, %v1749_v54 }
 0x131   : > { %v1165_v38 = vadd.f32 %v3280_v18, %v3838_v27  ;;  %v1156_v2 = vpop.f32.mrb[39].mxu0  ;;  %v1558_v49 = vmax.f32 %v1162_v44, 0.0 }
 0x132   : > { %v1157_v48 = vadd.f32 %v3838_v27, %v1156_v2  ;;  %3422 = vmatprep.mubr.bf16.mxu1 %v2072_v24  ;;  %v1556_v35 = vmax.f32 %v1154_v55, 0.0 }
 0x133   : > { %v1559_v50 = vmax.f32 %v1165_v38, 0.0 }
 0x134   : > { %v1557_v37 = vmax.f32 %v1157_v48, 0.0 }
 0x135   : > { %v1752_v5 = vpack.c.bf16 %v1559_v50, %v1558_v49 }
 0x136   : > { %v1751_v56 = vpack.c.bf16 %v1557_v37, %v1556_v35  ;;  %v3283_v57 = vpop.f32.mrb[40].mxu0 }
 0x137   : > { %v1178_v60 = vadd.f32 %v3283_v57, %v3838_v27  ;;  %v1169_v6 = vpop.f32.mrb[41].mxu0  ;;  %v2075_v61 = vmul.bf16 %v1978_v13, %v1752_v5  ;;  %3423 = vmatmul.mubr.bf16.gmra.mrb[32].mxu1 %v2073_v47 }
 0x138   : > { %v1170_v62 = vadd.f32 %v3838_v27, %v1169_v6  ;;  %v3284_v0 = vpop.f32.mrb[42].mxu0  ;;  %v2074_v59 = vmul.bf16 %v1978_v13, %v1751_v56 }
 0x139   : > { %v1181_v8 = vadd.f32 %v3284_v0, %v3838_v27  ;;  %v1172_v9 = vpop.f32.mrb[43].mxu0  ;;  %v1562_v3 = vmax.f32 %v1178_v60, 0.0 }
 0x13a   : > { %v1173_v11 = vadd.f32 %v3838_v27, %v1172_v9  ;;  %3426 = vmatprep.mubr.bf16.mxu1 %v2074_v59  ;;  %v1560_v14 = vmax.f32 %v1170_v62, 0.0 }
 0x13b   : > { %v1563_v12 = vmax.f32 %v1181_v8, 0.0 }
 0x13c   : > { %v1561_v16 = vmax.f32 %v1173_v11, 0.0 }
 0x13d   : > { %v1754_v17 = vpack.c.bf16 %v1563_v12, %v1562_v3 }
 0x13e   : > { %v1753_v15 = vpack.c.bf16 %v1561_v16, %v1560_v14  ;;  %v3287_v20 = vpop.f32.mrb[44].mxu0 }
 0x13f   : > { %v1194_v21 = vadd.f32 %v3287_v20, %v3838_v27  ;;  %v1185_v22 = vpop.f32.mrb[45].mxu0  ;;  %v2077_v23 = vmul.bf16 %v3932_v10, %v1754_v17  ;;  %3427 = vmatmul.mubr.bf16.gmra.mrb[36].mxu1 %v2075_v61 }
 0x140   : > { %v1186_v25 = vadd.f32 %v3838_v27, %v1185_v22  ;;  %v3288_v40 = vpop.f32.mrb[46].mxu0  ;;  %v2076_v28 = vmul.bf16 %v3932_v10, %v1753_v15 }
 0x141   : > { %v1197_v19 = vadd.f32 %v3288_v40, %v3838_v27  ;;  %v1188_v52 = vpop.f32.mrb[47].mxu0  ;;  %v1566_v29 = vmax.f32 %v1194_v21, 0.0 }
 0x142   : > { %v1189_v39 = vadd.f32 %v3838_v27, %v1188_v52  ;;  %3430 = vmatprep.mubr.bf16.mxu1 %v2076_v28  ;;  %v1564_v32 = vmax.f32 %v1186_v25, 0.0 }
 0x143   : > { %v1567_v31 = vmax.f32 %v1197_v19, 0.0 }
 0x144   : > { %v1565_v43 = vmax.f32 %v1189_v39, 0.0 }
 0x145   : > { %v1756_v7 = vpack.c.bf16 %v1567_v31, %v1566_v29 }
 0x146   : > { %v1755_v34 = vpack.c.bf16 %v1565_v43, %v1564_v32  ;;  %v3291_v41 = vpop.f32.mrb[48].mxu0 }
 0x147   : > { %v1210_v53 = vadd.f32 %v3291_v41, %v3838_v27  ;;  %v1201_v13 = vpop.f32.mrb[49].mxu0  ;;  %v2079_v54 = vmul.bf16 %v3932_v10, %v1756_v7  ;;  %3431 = vmatmul.mubr.bf16.gmra.mrb[40].mxu1 %v2077_v23 }
 0x148   : > { %v1202_v1 = vadd.f32 %v3838_v27, %v1201_v13  ;;  %v3292_v44 = vpop.f32.mrb[50].mxu0  ;;  %v2078_v45 = vmul.bf16 %v3932_v10, %v1755_v34 }
 0x149   : > { %v1213_v47 = vadd.f32 %v3292_v44, %v3838_v27  ;;  %v1204_v55 = vpop.f32.mrb[51].mxu0  ;;  %v1570_v24 = vmax.f32 %v1210_v53, 0.0 }
 0x14a   : > { %v1205_v18 = vadd.f32 %v3838_v27, %v1204_v55  ;;  %3434 = vmatprep.mubr.bf16.mxu1 %v2078_v45  ;;  %v1568_v2 = vmax.f32 %v1202_v1, 0.0 }
 0x14b   : > { %v1571_v38 = vmax.f32 %v1213_v47, 0.0 }
 0x14c   : > { %v1569_v48 = vmax.f32 %v1205_v18, 0.0 }
 0x14d   : > { %v1758_v49 = vpack.c.bf16 %v1571_v38, %v1570_v24 }
 0x14e   : > { %v1757_v50 = vpack.c.bf16 %v1569_v48, %v1568_v2  ;;  %v3295_v35 = vpop.f32.mrb[52].mxu0 }
 0x14f   : > { %v1226_v37 = vadd.f32 %v3295_v35, %v3838_v27  ;;  %v1217_v5 = vpop.f32.mrb[53].mxu0  ;;  %v2081_v56 = vmul.bf16 %v3945_v30, %v1758_v49  ;;  %3435 = vmatmul.mubr.bf16.gmra.mrb[44].mxu1 %v2079_v54 }
 0x150   : > { %v1218_v10 = vadd.f32 %v3838_v27, %v1217_v5  ;;  %v3296_v57 = vpop.f32.mrb[54].mxu0  ;;  %v2080_v60 = vmul.bf16 %v3945_v30, %v1757_v50 }
 0x151   : > { %v1229_v6 = vadd.f32 %v3296_v57, %v3838_v27  ;;  %v1220_v61 = vpop.f32.mrb[55].mxu0  ;;  %v1574_v0 = vmax.f32 %v1226_v37, 0.0 }
 0x152   : > { %v1221_v62 = vadd.f32 %v3838_v27, %v1220_v61  ;;  %3438 = vmatprep.mubr.bf16.mxu1 %v2080_v60  ;;  %v1572_v8 = vmax.f32 %v1218_v10, 0.0 }
 0x153   : > { %v1575_v59 = vmax.f32 %v1229_v6, 0.0 }
 0x154   : > { %v1573_v9 = vmax.f32 %v1221_v62, 0.0 }
 0x155   : > { %v1760_v11 = vpack.c.bf16 %v1575_v59, %v1574_v0 }
 0x156   : > { %v1759_v3 = vpack.c.bf16 %v1573_v9, %v1572_v8  ;;  %v3299_v12 = vpop.f32.mrb[56].mxu0 }
 0x157   : > { %v1242_v14 = vadd.f32 %v3299_v12, %v3838_v27  ;;  %v1233_v16 = vpop.f32.mrb[57].mxu0  ;;  %v2083_v17 = vmul.bf16 %v3945_v30, %v1760_v11  ;;  %3439 = vmatmul.mubr.bf16.gmra.mrb[48].mxu1 %v2081_v56 }
 0x158   : > { %v1234_v15 = vadd.f32 %v3838_v27, %v1233_v16  ;;  %v3300_v20 = vpop.f32.mrb[58].mxu0  ;;  %v2082_v21 = vmul.bf16 %v3945_v30, %v1759_v3 }
 0x159   : > { %v1245_v22 = vadd.f32 %v3300_v20, %v3838_v27  ;;  %v1236_v23 = vpop.f32.mrb[59].mxu0  ;;  %v1578_v40 = vmax.f32 %v1242_v14, 0.0 }
 0x15a   : > { %v1237_v25 = vadd.f32 %v3838_v27, %v1236_v23  ;;  %3442 = vmatprep.mubr.bf16.mxu1 %v2082_v21  ;;  %v1576_v19 = vmax.f32 %v1234_v15, 0.0 }
 0x15b   : > { %v1579_v28 = vmax.f32 %v1245_v22, 0.0 }
 0x15c   : > { %v1577_v52 = vmax.f32 %v1237_v25, 0.0 }
 0x15d   : > { %v1762_v39 = vpack.c.bf16 %v1579_v28, %v1578_v40 }
 0x15e   : > { %v1761_v29 = vpack.c.bf16 %v1577_v52, %v1576_v19  ;;  %v3303_v31 = vpop.f32.mrb[60].mxu0 }
 0x15f   : > { %v1258_v32 = vadd.f32 %v3303_v31, %v3838_v27  ;;  %v1249_v43 = vpop.f32.mrb[61].mxu0  ;;  %v2085_v7 = vmul.bf16 %v3960_v36, %v1762_v39  ;;  %3443 = vmatmul.mubr.bf16.gmra.mrb[52].mxu1 %v2083_v17 }
 0x160   : > { %v1250_v30 = vadd.f32 %v3838_v27, %v1249_v43  ;;  %v3304_v34 = vpop.f32.mrb[62].mxu0  ;;  %v2084_v41 = vmul.bf16 %v3960_v36, %v1761_v29 }
 0x161   : > { %v1261_v53 = vadd.f32 %v3304_v34, %v3838_v27  ;;  %v1252_v13 = vpop.f32.mrb[63].mxu0  ;;  %v1582_v1 = vmax.f32 %v1258_v32, 0.0 }
 0x162   : > { %v1253_v54 = vadd.f32 %v3838_v27, %v1252_v13  ;;  %3446 = vmatprep.mubr.bf16.mxu1 %v2084_v41  ;;  %v1580_v45 = vmax.f32 %v1250_v30, 0.0 }
 0x163   : > { %v1583_v44 = vmax.f32 %v1261_v53, 0.0 }
 0x164   : > { %v1581_v47 = vmax.f32 %v1253_v54, 0.0 }
 0x165   : > { %v1764_v55 = vpack.c.bf16 %v1583_v44, %v1582_v1 }
 0x166   : > { %v1763_v18 = vpack.c.bf16 %v1581_v47, %v1580_v45  ;;  %v3307_v24 = vpop.f32.mrb[64].mxu0 }
 0x167   : > { %v1274_v38 = vadd.f32 %v3307_v24, %v3838_v27  ;;  %v1265_v2 = vpop.f32.mrb[65].mxu0  ;;  %v2087_v48 = vmul.bf16 %v3960_v36, %v1764_v55  ;;  %3447 = vmatmul.mubr.bf16.gmra.mrb[56].mxu1 %v2085_v7 }
 0x168   : > { %v1266_v49 = vadd.f32 %v3838_v27, %v1265_v2  ;;  %v3308_v50 = vpop.f32.mrb[66].mxu0  ;;  %v2086_v35 = vmul.bf16 %v3960_v36, %v1763_v18 }
 0x169   : > { %v1277_v37 = vadd.f32 %v3308_v50, %v3838_v27  ;;  %v1268_v5 = vpop.f32.mrb[67].mxu0  ;;  %v1586_v10 = vmax.f32 %v1274_v38, 0.0 }
 0x16a   : > { %v1269_v56 = vadd.f32 %v3838_v27, %v1268_v5  ;;  %3450 = vmatprep.mubr.bf16.mxu1 %v2086_v35  ;;  %v1584_v60 = vmax.f32 %v1266_v49, 0.0 }
 0x16b   : > { %v1587_v57 = vmax.f32 %v1277_v37, 0.0 }
 0x16c   : > { %v1585_v6 = vmax.f32 %v1269_v56, 0.0 }
 0x16d   : > { %v1766_v61 = vpack.c.bf16 %v1587_v57, %v1586_v10 }
 0x16e   : > { %v1765_v62 = vpack.c.bf16 %v1585_v6, %v1584_v60  ;;  %v3311_v0 = vpop.f32.mrb[68].mxu0 }
 0x16f   : > { %v1290_v59 = vadd.f32 %v3311_v0, %v3838_v27  ;;  %v1281_v8 = vpop.f32.mrb[69].mxu0  ;;  %v2089_v9 = vmul.bf16 %v3941_v26, %v1766_v61  ;;  %3451 = vmatmul.mubr.bf16.gmra.mrb[60].mxu1 %v2087_v48 }
 0x170   : > { %v1282_v36 = vadd.f32 %v3838_v27, %v1281_v8  ;;  %v3312_v11 = vpop.f32.mrb[70].mxu0  ;;  %v2088_v3 = vmul.bf16 %v3941_v26, %v1765_v62 }
 0x171   : > { %v1293_v12 = vadd.f32 %v3312_v11, %v3838_v27  ;;  %v1284_v14 = vpop.f32.mrb[71].mxu0  ;;  %v1590_v17 = vmax.f32 %v1290_v59, 0.0 }
 0x172   : > { %v1285_v16 = vadd.f32 %v3838_v27, %v1284_v14  ;;  %3454 = vmatprep.mubr.bf16.mxu1 %v2088_v3  ;;  %v1588_v20 = vmax.f32 %v1282_v36, 0.0 }
 0x173   : > { %v1591_v15 = vmax.f32 %v1293_v12, 0.0 }
 0x174   : > { %v1589_v21 = vmax.f32 %v1285_v16, 0.0 }
 0x175   : > { %v1768_v22 = vpack.c.bf16 %v1591_v15, %v1590_v17 }
 0x176   : > { %v1767_v23 = vpack.c.bf16 %v1589_v21, %v1588_v20  ;;  %v3315_v25 = vpop.f32.mrb[72].mxu0 }
 0x177   : > { %v1306_v40 = vadd.f32 %v3315_v25, %v3838_v27  ;;  %v1297_v28 = vpop.f32.mrb[73].mxu0  ;;  %v2091_v19 = vmul.bf16 %v3941_v26, %v1768_v22  ;;  %3455 = vmatmul.mubr.bf16.gmra.mrb[64].mxu1 %v2089_v9 }
 0x178   : > { %v1298_v52 = vadd.f32 %v3838_v27, %v1297_v28  ;;  %v3316_v39 = vpop.f32.mrb[74].mxu0  ;;  %v2090_v29 = vmul.bf16 %v3941_v26, %v1767_v23 }
 0x179   : > { %v1309_v31 = vadd.f32 %v3316_v39, %v3838_v27  ;;  %v1300_v32 = vpop.f32.mrb[75].mxu0  ;;  %v1594_v7 = vmax.f32 %v1306_v40, 0.0 }
 0x17a   : > { %v1301_v43 = vadd.f32 %v3838_v27, %v1300_v32  ;;  %3458 = vmatprep.mubr.bf16.mxu1 %v2090_v29  ;;  %v1592_v34 = vmax.f32 %v1298_v52, 0.0 }
 0x17b   : > { %v1595_v30 = vmax.f32 %v1309_v31, 0.0 }
 0x17c   : > { %v1593_v41 = vmax.f32 %v1301_v43, 0.0 }
 0x17d   : > { %v1770_v53 = vpack.c.bf16 %v1595_v30, %v1594_v7 }
 0x17e   : > { %v1769_v13 = vpack.c.bf16 %v1593_v41, %v1592_v34  ;;  %v3319_v54 = vpop.f32.mrb[76].mxu0 }
 0x17f   : > { %v1322_v1 = vadd.f32 %v3319_v54, %v3838_v27  ;;  %v1313_v44 = vpop.f32.mrb[77].mxu0  ;;  %v2093_v45 = vmul.bf16 %v3952_v33, %v1770_v53  ;;  %3459 = vmatmul.mubr.bf16.gmra.mrb[68].mxu1 %v2091_v19 }
 0x180   : > { %v1314_v26 = vadd.f32 %v3838_v27, %v1313_v44  ;;  %v3320_v47 = vpop.f32.mrb[78].mxu0  ;;  %v2092_v55 = vmul.bf16 %v3952_v33, %v1769_v13 }
 0x181   : > { %v1325_v18 = vadd.f32 %v3320_v47, %v3838_v27  ;;  %v1316_v24 = vpop.f32.mrb[79].mxu0  ;;  %v1598_v2 = vmax.f32 %v1322_v1, 0.0 }
 0x182   : > { %v1317_v38 = vadd.f32 %v3838_v27, %v1316_v24  ;;  %3462 = vmatprep.mubr.bf16.mxu1 %v2092_v55  ;;  %v1596_v49 = vmax.f32 %v1314_v26, 0.0 }
 0x183   : > { %v1599_v48 = vmax.f32 %v1325_v18, 0.0 }
 0x184   : > { %v1597_v50 = vmax.f32 %v1317_v38, 0.0 }
 0x185   : > { %v1772_v35 = vpack.c.bf16 %v1599_v48, %v1598_v2 }
 0x186   : > { %v1771_v37 = vpack.c.bf16 %v1597_v50, %v1596_v49  ;;  %v3323_v5 = vpop.f32.mrb[80].mxu0  ;;  %v4117_v50 = vld [vmem:[%s4573_s4] ss:$0 sm:$0xff] }
 0x187   : > { %v1338_v56 = vadd.f32 %v3323_v5, %v3838_v27  ;;  %v1329_v10 = vpop.f32.mrb[81].mxu0  ;;  %v2095_v57 = vmul.bf16 %v3952_v33, %v1772_v35  ;;  %3463 = vmatmul.mubr.bf16.gmra.mrb[72].mxu1 %v2093_v45 }
 0x188   : > { %v1330_v60 = vadd.f32 %v3838_v27, %v1329_v10  ;;  %v3324_v6 = vpop.f32.mrb[82].mxu0  ;;  %v2094_v61 = vmul.bf16 %v3952_v33, %v1771_v37 }
 0x189   : > { %v1341_v62 = vadd.f32 %v3324_v6, %v3838_v27  ;;  %v1332_v0 = vpop.f32.mrb[83].mxu0  ;;  %v1602_v8 = vmax.f32 %v1338_v56, 0.0 }
 0x18a   : > { %v1333_v59 = vadd.f32 %v3838_v27, %v1332_v0  ;;  %3466 = vmatprep.mubr.bf16.mxu1 %v2094_v61  ;;  %v1600_v36 = vmax.f32 %v1330_v60, 0.0 }
 0x18b   : > { %v1603_v9 = vmax.f32 %v1341_v62, 0.0 }
 0x18c   : > { %v1601_v11 = vmax.f32 %v1333_v59, 0.0 }
 0x18d   : > { %v1774_v3 = vpack.c.bf16 %v1603_v9, %v1602_v8 }
 0x18e   : > { %v1773_v12 = vpack.c.bf16 %v1601_v11, %v1600_v36  ;;  %v3327_v14 = vpop.f32.mrb[84].mxu0 }
 0x18f   : > { %v1354_v16 = vadd.f32 %v3327_v14, %v3838_v27  ;;  %v1345_v17 = vpop.f32.mrb[85].mxu0  ;;  %v2097_v15 = vmul.bf16 %v3967_v42, %v1774_v3  ;;  %3467 = vmatmul.mubr.bf16.gmra.mrb[76].mxu1 %v2095_v57 }
 0x190   : > { %v1346_v33 = vadd.f32 %v3838_v27, %v1345_v17  ;;  %v3328_v20 = vpop.f32.mrb[86].mxu0  ;;  %v2096_v21 = vmul.bf16 %v3967_v42, %v1773_v12 }
 0x191   : > { %v1357_v22 = vadd.f32 %v3328_v20, %v3838_v27  ;;  %v1348_v23 = vpop.f32.mrb[87].mxu0  ;;  %v1606_v40 = vmax.f32 %v1354_v16, 0.0 }
 0x192   : > { %v1349_v25 = vadd.f32 %v3838_v27, %v1348_v23  ;;  %3470 = vmatprep.mubr.bf16.mxu1 %v2096_v21  ;;  %v1604_v19 = vmax.f32 %v1346_v33, 0.0 }
 0x193   : > { %v1607_v28 = vmax.f32 %v1357_v22, 0.0 }
 0x194   : > { %v1605_v52 = vmax.f32 %v1349_v25, 0.0 }
 0x195   : > { %v1776_v39 = vpack.c.bf16 %v1607_v28, %v1606_v40 }
 0x196   : > { %v1775_v29 = vpack.c.bf16 %v1605_v52, %v1604_v19  ;;  %v3331_v31 = vpop.f32.mrb[88].mxu0 }
 0x197   : > { %v1370_v32 = vadd.f32 %v3331_v31, %v3838_v27  ;;  %v1361_v43 = vpop.f32.mrb[89].mxu0  ;;  %v2099_v7 = vmul.bf16 %v3967_v42, %v1776_v39  ;;  %3471 = vmatmul.mubr.bf16.gmra.mrb[80].mxu1 %v2097_v15 }
 0x198   : > { %v1362_v30 = vadd.f32 %v3838_v27, %v1361_v43  ;;  %v3332_v34 = vpop.f32.mrb[90].mxu0  ;;  %v2098_v41 = vmul.bf16 %v3967_v42, %v1775_v29 }
 0x199   : > { %v1373_v53 = vadd.f32 %v3332_v34, %v3838_v27  ;;  %v1364_v13 = vpop.f32.mrb[91].mxu0  ;;  %v1610_v1 = vmax.f32 %v1370_v32, 0.0 }
 0x19a   : > { %v1365_v54 = vadd.f32 %v3838_v27, %v1364_v13  ;;  %3474 = vmatprep.mubr.bf16.mxu1 %v2098_v41  ;;  %v1608_v45 = vmax.f32 %v1362_v30, 0.0 }
 0x19b   : > { %v1611_v44 = vmax.f32 %v1373_v53, 0.0 }
 0x19c   : > { %v1609_v26 = vmax.f32 %v1365_v54, 0.0 }
 0x19d   : > { %v1778_v47 = vpack.c.bf16 %v1611_v44, %v1610_v1 }
 0x19e   : > { %v1777_v55 = vpack.c.bf16 %v1609_v26, %v1608_v45  ;;  %v3335_v18 = vpop.f32.mrb[92].mxu0 }
 0x19f   : > { %v1386_v24 = vadd.f32 %v3335_v18, %v3838_v27  ;;  %v1377_v38 = vpop.f32.mrb[93].mxu0  ;;  %v2101_v2 = vmul.bf16 %v3982_v51, %v1778_v47  ;;  %3475 = vmatmul.mubr.bf16.gmra.mrb[84].mxu1 %v2099_v7 }
 0x1a0   : > { %v1378_v42 = vadd.f32 %v3838_v27, %v1377_v38  ;;  %v3336_v48 = vpop.f32.mrb[94].mxu0  ;;  %v2100_v49 = vmul.bf16 %v3982_v51, %v1777_v55 }
 0x1a1   : > { %v1389_v35 = vadd.f32 %v4117_v50, %v3336_v48  ;;  %v1380_v37 = vpop.f32.mrb[95].mxu0  ;;  %v1614_v56 = vmax.f32 %v1386_v24, 0.0 }
 0x1a2   : > { %v1381_v5 = vadd.f32 %v4117_v50, %v1380_v37  ;;  %3478 = vmatprep.mubr.bf16.mxu1 %v2100_v49  ;;  %v1612_v57 = vmax.f32 %v1378_v42, 0.0 }
 0x1a3   : > { %v1615_v10 = vmax.f32 %v1389_v35, 0.0 }
 0x1a4   : > { %v1613_v60 = vmax.f32 %v1381_v5, 0.0 }
 0x1a5   : > { %v1780_v27 = vpack.c.bf16 %v1615_v10, %v1614_v56 }
 0x1a6   : > { %v1779_v6 = vpack.c.bf16 %v1613_v60, %v1612_v57  ;;  %v3339_v61 = vpop.f32.mrb[96].mxu0 }
 0x1a7   : > { %v1402_v62 = vadd.f32 %v4117_v50, %v3339_v61  ;;  %v1393_v0 = vpop.f32.mrb[97].mxu0  ;;  %v2103_v59 = vmul.bf16 %v3982_v51, %v1780_v27  ;;  %3479 = vmatmul.mubr.bf16.gmra.mrb[88].mxu1 %v2101_v2 }
 0x1a8   : > { %v1394_v8 = vadd.f32 %v4117_v50, %v1393_v0  ;;  %v3340_v9 = vpop.f32.mrb[98].mxu0  ;;  %v2102_v36 = vmul.bf16 %v3982_v51, %v1779_v6 }
 0x1a9   : > { %v1405_v11 = vadd.f32 %v4117_v50, %v3340_v9  ;;  %v1396_v3 = vpop.f32.mrb[99].mxu0  ;;  %v1618_v14 = vmax.f32 %v1402_v62, 0.0 }
 0x1aa   : > { %v1397_v12 = vadd.f32 %v4117_v50, %v1396_v3  ;;  %3482 = vmatprep.mubr.bf16.mxu1 %v2102_v36  ;;  %v1616_v17 = vmax.f32 %v1394_v8, 0.0 }
 0x1ab   : > { %v1619_v16 = vmax.f32 %v1405_v11, 0.0 }
 0x1ac   : > { %v1617_v15 = vmax.f32 %v1397_v12, 0.0 }
 0x1ad   : > { %v1782_v33 = vpack.c.bf16 %v1619_v16, %v1618_v14 }
 0x1ae   : > { %v1781_v20 = vpack.c.bf16 %v1617_v15, %v1616_v17  ;;  %v3343_v21 = vpop.f32.mrb[100].mxu0 }
 0x1af   : > { %v1418_v22 = vadd.f32 %v4117_v50, %v3343_v21  ;;  %v1409_v23 = vpop.f32.mrb[101].mxu0  ;;  %v2105_v25 = vmul.bf16 %v3974_v46, %v1782_v33  ;;  %3483 = vmatmul.mubr.bf16.gmra.mrb[92].mxu1 %v2103_v59 }
 0x1b0   : > { %v1410_v51 = vadd.f32 %v4117_v50, %v1409_v23  ;;  %v3344_v40 = vpop.f32.mrb[102].mxu0  ;;  %v2104_v28 = vmul.bf16 %v3974_v46, %v1781_v20 }
 0x1b1   : > { %v1421_v19 = vadd.f32 %v4117_v50, %v3344_v40  ;;  %v1412_v52 = vpop.f32.mrb[103].mxu0  ;;  %v1622_v29 = vmax.f32 %v1418_v22, 0.0 }
 0x1b2   : > { %v1413_v39 = vadd.f32 %v4117_v50, %v1412_v52  ;;  %3486 = vmatprep.mubr.bf16.mxu1 %v2104_v28  ;;  %v1620_v32 = vmax.f32 %v1410_v51, 0.0 }
 0x1b3   : > { %v1623_v31 = vmax.f32 %v1421_v19, 0.0 }
 0x1b4   : > { %v1621_v43 = vmax.f32 %v1413_v39, 0.0 }
 0x1b5   : > { %v1784_v7 = vpack.c.bf16 %v1623_v31, %v1622_v29 }
 0x1b6   : > { %v1783_v30 = vpack.c.bf16 %v1621_v43, %v1620_v32  ;;  %v3347_v34 = vpop.f32.mrb[104].mxu0  ;;  %v4160_v32 = vld [vmem:[%s4575_s6] ss:$0 sm:$0xff] }
 0x1b7   : > { %v1434_v41 = vadd.f32 %v4117_v50, %v3347_v34  ;;  %v1425_v53 = vpop.f32.mrb[105].mxu0  ;;  %v2107_v13 = vmul.bf16 %v3974_v46, %v1784_v7  ;;  %3487 = vmatmul.mubr.bf16.gmra.mrb[96].mxu1 %v2105_v25 }
 0x1b8   : > { %v1426_v54 = vadd.f32 %v4117_v50, %v1425_v53  ;;  %v3348_v1 = vpop.f32.mrb[106].mxu0  ;;  %v2106_v44 = vmul.bf16 %v3974_v46, %v1783_v30 }
 0x1b9   : > { %v1437_v45 = vadd.f32 %v4117_v50, %v3348_v1  ;;  %v1428_v26 = vpop.f32.mrb[107].mxu0  ;;  %v1626_v55 = vmax.f32 %v1434_v41, 0.0 }
 0x1ba   : > { %v1429_v47 = vadd.f32 %v4117_v50, %v1428_v26  ;;  %3490 = vmatprep.mubr.bf16.mxu1 %v2106_v44  ;;  %v1624_v24 = vmax.f32 %v1426_v54, 0.0 }
 0x1bb   : > { %v1627_v18 = vmax.f32 %v1437_v45, 0.0 }
 0x1bc   : > { %v1625_v38 = vmax.f32 %v1429_v47, 0.0 }
 0x1bd   : > { %v1786_v2 = vpack.c.bf16 %v1627_v18, %v1626_v55 }
 0x1be   : > { %v1785_v42 = vpack.c.bf16 %v1625_v38, %v1624_v24  ;;  %v3351_v48 = vpop.f32.mrb[108].mxu0 }
 0x1bf   : > { %v1450_v49 = vadd.f32 %v4117_v50, %v3351_v48  ;;  %v1441_v35 = vpop.f32.mrb[109].mxu0  ;;  %v2109_v37 = vmul.bf16 %v3987_v58, %v1786_v2  ;;  %3491 = vmatmul.mubr.bf16.gmra.mrb[100].mxu1 %v2107_v13 }
 0x1c0   : > { %v1442_v46 = vadd.f32 %v4117_v50, %v1441_v35  ;;  %v3352_v5 = vpop.f32.mrb[110].mxu0  ;;  %v2108_v56 = vmul.bf16 %v3987_v58, %v1785_v42 }
 0x1c1   : > { %v1453_v10 = vadd.f32 %v4117_v50, %v3352_v5  ;;  %v1444_v57 = vpop.f32.mrb[111].mxu0  ;;  %v1630_v27 = vmax.f32 %v1450_v49, 0.0 }
 0x1c2   : > { %v1445_v60 = vadd.f32 %v4117_v50, %v1444_v57  ;;  %3494 = vmatprep.mubr.bf16.mxu1 %v2108_v56  ;;  %v1628_v61 = vmax.f32 %v1442_v46, 0.0 }
 0x1c3   : > { %v1631_v6 = vmax.f32 %v1453_v10, 0.0 }
 0x1c4   : > { %v1629_v62 = vmax.f32 %v1445_v60, 0.0 }
 0x1c5   : > { %v1788_v0 = vpack.c.bf16 %v1631_v6, %v1630_v27 }
 0x1c6   : > { %v1787_v59 = vpack.c.bf16 %v1629_v62, %v1628_v61  ;;  %v3355_v8 = vpop.f32.mrb[112].mxu0 }
 0x1c7   : > { %v1466_v9 = vadd.f32 %v4117_v50, %v3355_v8  ;;  %v1457_v36 = vpop.f32.mrb[113].mxu0  ;;  %v2111_v11 = vmul.bf16 %v3987_v58, %v1788_v0  ;;  %3495 = vmatmul.mubr.bf16.gmra.mrb[104].mxu1 %v2109_v37 }
 0x1c8   : > { %v1458_v3 = vadd.f32 %v4117_v50, %v1457_v36  ;;  %v3356_v12 = vpop.f32.mrb[114].mxu0  ;;  %v2110_v14 = vmul.bf16 %v3987_v58, %v1787_v59 }
 0x1c9   : > { %v1469_v16 = vadd.f32 %v4117_v50, %v3356_v12  ;;  %v1460_v17 = vpop.f32.mrb[115].mxu0  ;;  %v1634_v33 = vmax.f32 %v1466_v9, 0.0 }
 0x1ca   : > { %v1461_v15 = vadd.f32 %v4117_v50, %v1460_v17  ;;  %3498 = vmatprep.mubr.bf16.mxu1 %v2110_v14  ;;  %v1632_v21 = vmax.f32 %v1458_v3, 0.0 }
 0x1cb   : > { %v1635_v20 = vmax.f32 %v1469_v16, 0.0 }
 0x1cc   : > { %v1633_v22 = vmax.f32 %v1461_v15, 0.0 }
 0x1cd   : > { %v1790_v23 = vpack.c.bf16 %v1635_v20, %v1634_v33 }
 0x1ce   : > { %v1789_v25 = vpack.c.bf16 %v1633_v22, %v1632_v21  ;;  %v3359_v51 = vpop.f32.mrb[116].mxu0 }
 0x1cf   : > { %v1482_v40 = vadd.f32 %v4117_v50, %v3359_v51  ;;  %v1473_v28 = vpop.f32.mrb[117].mxu0  ;;  %v2113_v58 = vmul.bf16 %v3993_v63, %v1790_v23  ;;  %3499 = vmatmul.mubr.bf16.gmra.mrb[108].mxu1 %v2111_v11 }
 0x1d0   : > { %v1474_v19 = vadd.f32 %v4117_v50, %v1473_v28  ;;  %v3360_v52 = vpop.f32.mrb[118].mxu0  ;;  %v2112_v39 = vmul.bf16 %v3993_v63, %v1789_v25 }
 0x1d1   : > { %v1485_v29 = vadd.f32 %v4117_v50, %v3360_v52  ;;  %v1476_v31 = vpop.f32.mrb[119].mxu0  ;;  %v1638_v7 = vmax.f32 %v1482_v40, 0.0 }
 0x1d2   : > { %v1477_v43 = vadd.f32 %v4117_v50, %v1476_v31  ;;  %3502 = vmatprep.mubr.bf16.mxu1 %v2112_v39  ;;  %v3396_v34 = vpop.f32.mrb[4].mxu1  ;;  %v1636_v41 = vmax.f32 %v1474_v19, 0.0 }
 0x1d3   : > { %v1639_v30 = vmax.f32 %v1485_v29, 0.0  ;;  %v2250_v13 = vadd.f32 %v3396_v34, %v4160_v32  ;;  %v2241_v54 = vpop.f32.mrb[5].mxu1 }
 0x1d4   : > { %v1637_v53 = vmax.f32 %v1477_v43, 0.0  ;;  %v2242_v44 = vadd.f32 %v4160_v32, %v2241_v54  ;;  %v3397_v45 = vpop.f32.mrb[6].mxu1 }
 0x1d5   : > { %v1792_v1 = vpack.c.bf16 %v1639_v30, %v1638_v7  ;;  %2742 = vst.msk [vmem:[%s4166_s23 + $0x30] sm:$0xff] %vm1651_vm2, %v2250_v13  ;;  %v2253_v55 = vadd.f32 %v3397_v45, %v4160_v32  ;;  %v2244_v18 = vpop.f32.mrb[7].mxu1 }
 0x1d6   : > { %v1791_v26 = vpack.c.bf16 %v1637_v53, %v1636_v41  ;;  %v3363_v47 = vpop.f32.mrb[120].mxu0  ;;  %2740 = vst.msk [vmem:[%s4166_s23 + $0x20] sm:$0xff] %vm1651_vm2, %v2242_v44  ;;  %v2245_v42 = vadd.f32 %v4160_v32, %v2244_v18 }
 0x1d7   : > { %v1498_v24 = vadd.f32 %v4117_v50, %v3363_v47  ;;  %v1489_v38 = vpop.f32.mrb[121].mxu0  ;;  %v2115_v2 = vmul.bf16 %v3993_v63, %v1792_v1  ;;  %2743 = vst.msk [vmem:[%s4166_s23 + $0x38] sm:$0xff] %vm1651_vm2, %v2253_v55  ;;  %3503 = vmatmul.mubr.bf16.gmra.mrb[112].mxu1 %v2113_v58 }
 0x1d8   : > { %v1490_v48 = vadd.f32 %v4117_v50, %v1489_v38  ;;  %v3364_v49 = vpop.f32.mrb[122].mxu0  ;;  %v2114_v35 = vmul.bf16 %v3993_v63, %v1791_v26  ;;  %2741 = vst.msk [vmem:[%s4166_s23 + $0x28] sm:$0xff] %vm1651_vm2, %v2245_v42 }
 0x1d9   : > { %v1501_v37 = vadd.f32 %v4117_v50, %v3364_v49  ;;  %v1492_v46 = vpop.f32.mrb[123].mxu0  ;;  %v1642_v56 = vmax.f32 %v1498_v24, 0.0 }
 0x1da   : > { %v1493_v5 = vadd.f32 %v4117_v50, %v1492_v46  ;;  %3506 = vmatprep.mubr.bf16.mxu1 %v2114_v35  ;;  %v3400_v57 = vpop.f32.mrb[8].mxu1  ;;  %v1640_v60 = vmax.f32 %v1490_v48, 0.0 }
 0x1db   : > { %v1643_v10 = vmax.f32 %v1501_v37, 0.0  ;;  %v2266_v63 = vadd.f32 %v3400_v57, %v4160_v32  ;;  %v2257_v6 = vpop.f32.mrb[9].mxu1 }
 0x1dc   : > { %v1641_v27 = vmax.f32 %v1493_v5, 0.0  ;;  %v2258_v62 = vadd.f32 %v4160_v32, %v2257_v6  ;;  %v3401_v0 = vpop.f32.mrb[10].mxu1 }
 0x1dd   : > { %v1794_v61 = vpack.c.bf16 %v1643_v10, %v1642_v56  ;;  %2746 = vst.msk [vmem:[%s4166_s23 + $0x50] sm:$0xff] %vm1651_vm2, %v2266_v63  ;;  %v2269_v9 = vadd.f32 %v3401_v0, %v4160_v32  ;;  %v2260_v36 = vpop.f32.mrb[11].mxu1 }
 0x1de   : > { %v1793_v59 = vpack.c.bf16 %v1641_v27, %v1640_v60  ;;  %v3367_v8 = vpop.f32.mrb[124].mxu0  ;;  %2744 = vst.msk [vmem:[%s4166_s23 + $0x40] sm:$0xff] %vm1651_vm2, %v2258_v62  ;;  %v2261_v14 = vadd.f32 %v4160_v32, %v2260_v36 }
 0x1df   : > { %v1514_v11 = vadd.f32 %v4117_v50, %v3367_v8  ;;  %v1505_v3 = vpop.f32.mrb[125].mxu0  ;;  %v2117_v12 = vmul.bf16 %v3997_v4, %v1794_v61  ;;  %2747 = vst.msk [vmem:[%s4166_s23 + $0x58] sm:$0xff] %vm1651_vm2, %v2269_v9  ;;  %3507 = vmatmul.mubr.bf16.gmra.mrb[116].mxu1 %v2115_v2 }
 0x1e0   : > { %v1506_v16 = vadd.f32 %v4117_v50, %v1505_v3  ;;  %v3368_v17 = vpop.f32.mrb[126].mxu0  ;;  %v2116_v15 = vmul.bf16 %v3997_v4, %v1793_v59  ;;  %2745 = vst.msk [vmem:[%s4166_s23 + $0x48] sm:$0xff] %vm1651_vm2, %v2261_v14 }
 0x1e1   : > { %v1517_v33 = vadd.f32 %v4117_v50, %v3368_v17  ;;  %v1508_v20 = vpop.f32.mrb[127].mxu0  ;;  %v1646_v22 = vmax.f32 %v1514_v11, 0.0 }
 0x1e2   : > { %v1509_v21 = vadd.f32 %v4117_v50, %v1508_v20  ;;  %3510 = vmatprep.mubr.bf16.mxu1 %v2116_v15  ;;  %v3404_v25 = vpop.f32.mrb[12].mxu1  ;;  %v1644_v51 = vmax.f32 %v1506_v16, 0.0 }
 0x1e3   : > { %v1647_v23 = vmax.f32 %v1517_v33, 0.0  ;;  %v2282_v28 = vadd.f32 %v3404_v25, %v4160_v32  ;;  %v2273_v58 = vpop.f32.mrb[13].mxu1 }
 0x1e4   : > { %v1645_v40 = vmax.f32 %v1509_v21, 0.0  ;;  %v2274_v52 = vadd.f32 %v4160_v32, %v2273_v58  ;;  %v3405_v39 = vpop.f32.mrb[14].mxu1 }
 0x1e5   : > { %v1796_v19 = vpack.c.bf16 %v1647_v23, %v1646_v22  ;;  %2750 = vst.msk [vmem:[%s4166_s23 + $0x70] sm:$0xff] %vm1651_vm2, %v2282_v28  ;;  %v2285_v50 = vadd.f32 %v3405_v39, %v4160_v32  ;;  %v2276_v43 = vpop.f32.mrb[15].mxu1 }
 0x1e6   : > { %v1795_v29 = vpack.c.bf16 %v1645_v40, %v1644_v51  ;;  %v3392_v31 = vpop.f32.mrb[128].mxu0  ;;  %2748 = vst.msk [vmem:[%s4166_s23 + $0x60] sm:$0xff] %vm1651_vm2, %v2274_v52  ;;  %v2277_v41 = vadd.f32 %v4160_v32, %v2276_v43 }
 0x1e7   : > { %v2234_v7 = vadd.f32 %v3392_v31, %v4160_v32  ;;  %v2225_v30 = vpop.f32.mrb[129].mxu0  ;;  %v2119_v34 = vmul.bf16 %v3997_v4, %v1796_v19  ;;  %2751 = vst.msk [vmem:[%s4166_s23 + $0x78] sm:$0xff] %vm1651_vm2, %v2285_v50  ;;  %3511 = vmatmul.mubr.bf16.gmra.mrb[120].mxu1 %v2117_v12 }
 0x1e8   : > { %v2226_v53 = vadd.f32 %v4160_v32, %v2225_v30  ;;  %v3393_v13 = vpop.f32.mrb[130].mxu0  ;;  %v2118_v54 = vmul.bf16 %v3997_v4, %v1795_v29  ;;  %2749 = vst.msk [vmem:[%s4166_s23 + $0x68] sm:$0xff] %vm1651_vm2, %v2277_v41 }
 0x1e9   : > { %2738 = vst.msk [vmem:[%s4166_s23 + $0x10] sm:$0xff] %vm1651_vm2, %v2234_v7  ;;  %v2237_v1 = vadd.f32 %v3393_v13, %v4160_v32  ;;  %v2228_v44 = vpop.f32.mrb[131].mxu0 }
 0x1ea   : > { %2736 = vst.msk [vmem:[%s4166_s23] sm:$0xff] %vm1651_vm2, %v2226_v53  ;;  %v2229_v45 = vadd.f32 %v4160_v32, %v2228_v44  ;;  %3514 = vmatprep.mubr.bf16.mxu1 %v2118_v54  ;;  %v3408_v4 = vpop.f32.mrb[16].mxu1 }
 0x1eb   : > { %2739 = vst.msk [vmem:[%s4166_s23 + $0x18] sm:$0xff] %vm1651_vm2, %v2237_v1  ;;  %v2298_v26 = vadd.f32 %v3408_v4, %v4160_v32  ;;  %v2289_v47 = vpop.f32.mrb[17].mxu1 }
 0x1ec   : > { %2737 = vst.msk [vmem:[%s4166_s23 + $0x8] sm:$0xff] %vm1651_vm2, %v2229_v45  ;;  %v2290_v55 = vadd.f32 %v4160_v32, %v2289_v47  ;;  %v3409_v18 = vpop.f32.mrb[18].mxu1 }
 0x1ed   : > { %2754 = vst.msk [vmem:[%s4166_s23 + $0x90] sm:$0xff] %vm1651_vm2, %v2298_v26  ;;  %v2301_v24 = vadd.f32 %v3409_v18, %v4160_v32  ;;  %v2292_v38 = vpop.f32.mrb[19].mxu1 }
 0x1ee   : > { %2752 = vst.msk [vmem:[%s4166_s23 + $0x80] sm:$0xff] %vm1651_vm2, %v2290_v55  ;;  %v2293_v2 = vadd.f32 %v4160_v32, %v2292_v38 }
 0x1ef   : > { %2755 = vst.msk [vmem:[%s4166_s23 + $0x98] sm:$0xff] %vm1651_vm2, %v2301_v24  ;;  %3515 = vmatmul.mubr.bf16.gmra.mrb[124].mxu1 %v2119_v34 }
 0x1f0   : > { %2753 = vst.msk [vmem:[%s4166_s23 + $0x88] sm:$0xff] %vm1651_vm2, %v2293_v2 }
 0x1f2   : > { %v3412_v42 = vpop.f32.mrb[20].mxu1 }
 0x1f3   : > { %v2314_v48 = vadd.f32 %v3412_v42, %v4160_v32  ;;  %v2305_v49 = vpop.f32.mrb[21].mxu1 }
 0x1f4   : > { %v2306_v35 = vadd.f32 %v4160_v32, %v2305_v49  ;;  %v3413_v37 = vpop.f32.mrb[22].mxu1 }
 0x1f5   : > { %2758 = vst.msk [vmem:[%s4166_s23 + $0xb0] sm:$0xff] %vm1651_vm2, %v2314_v48  ;;  %v2317_v46 = vadd.f32 %v3413_v37, %v4160_v32  ;;  %v2308_v5 = vpop.f32.mrb[23].mxu1 }
 0x1f6   : > { %2756 = vst.msk [vmem:[%s4166_s23 + $0xa0] sm:$0xff] %vm1651_vm2, %v2306_v35  ;;  %v2309_v56 = vadd.f32 %v4160_v32, %v2308_v5 }
 0x1f7   : > { %2759 = vst.msk [vmem:[%s4166_s23 + $0xb8] sm:$0xff] %vm1651_vm2, %v2317_v46 }
 0x1f8   : > { %2757 = vst.msk [vmem:[%s4166_s23 + $0xa8] sm:$0xff] %vm1651_vm2, %v2309_v56 }
 0x1fa   : > { %v3416_v10 = vpop.f32.mrb[24].mxu1 }
 0x1fb   : > { %v2330_v57 = vadd.f32 %v3416_v10, %v4160_v32  ;;  %v2321_v60 = vpop.f32.mrb[25].mxu1 }
 0x1fc   : > { %v2322_v27 = vadd.f32 %v4160_v32, %v2321_v60  ;;  %v3417_v63 = vpop.f32.mrb[26].mxu1 }
 0x1fd   : > { %2762 = vst.msk [vmem:[%s4166_s23 + $0xd0] sm:$0xff] %vm1651_vm2, %v2330_v57  ;;  %v2333_v6 = vadd.f32 %v3417_v63, %v4160_v32  ;;  %v2324_v61 = vpop.f32.mrb[27].mxu1 }
 0x1fe   : > { %2760 = vst.msk [vmem:[%s4166_s23 + $0xc0] sm:$0xff] %vm1651_vm2, %v2322_v27  ;;  %v2325_v62 = vadd.f32 %v4160_v32, %v2324_v61 }
 0x1ff   : > { %2763 = vst.msk [vmem:[%s4166_s23 + $0xd8] sm:$0xff] %vm1651_vm2, %v2333_v6 }
 0x200   : > { %2761 = vst.msk [vmem:[%s4166_s23 + $0xc8] sm:$0xff] %vm1651_vm2, %v2325_v62 }
 0x202   : > { %v3420_v0 = vpop.f32.mrb[28].mxu1 }
 0x203   : > { %v2346_v59 = vadd.f32 %v3420_v0, %v4160_v32  ;;  %v2337_v8 = vpop.f32.mrb[29].mxu1 }
 0x204   : > { %v2338_v9 = vadd.f32 %v4160_v32, %v2337_v8  ;;  %v3421_v36 = vpop.f32.mrb[30].mxu1 }
 0x205   : > { %2766 = vst.msk [vmem:[%s4166_s23 + $0xf0] sm:$0xff] %vm1651_vm2, %v2346_v59  ;;  %v2349_v11 = vadd.f32 %v3421_v36, %v4160_v32  ;;  %v2340_v3 = vpop.f32.mrb[31].mxu1 }
 0x206   : > { %2764 = vst.msk [vmem:[%s4166_s23 + $0xe0] sm:$0xff] %vm1651_vm2, %v2338_v9  ;;  %v2341_v12 = vadd.f32 %v4160_v32, %v2340_v3 }
 0x207   : > { %2767 = vst.msk [vmem:[%s4166_s23 + $0xf8] sm:$0xff] %vm1651_vm2, %v2349_v11 }
 0x208   : > { %2765 = vst.msk [vmem:[%s4166_s23 + $0xe8] sm:$0xff] %vm1651_vm2, %v2341_v12 }
 0x20a   : > { %v3424_v14 = vpop.f32.mrb[32].mxu1 }
 0x20b   : > { %v2362_v16 = vadd.f32 %v3424_v14, %v4160_v32  ;;  %v2353_v17 = vpop.f32.mrb[33].mxu1 }
 0x20c   : > { %v2354_v15 = vadd.f32 %v4160_v32, %v2353_v17  ;;  %v3425_v33 = vpop.f32.mrb[34].mxu1 }
 0x20d   : > { %2770 = vst.msk [vmem:[%s4166_s23 + $0x110] sm:$0xff] %vm1651_vm2, %v2362_v16  ;;  %v2365_v20 = vadd.f32 %v3425_v33, %v4160_v32  ;;  %v2356_v21 = vpop.f32.mrb[35].mxu1 }
 0x20e   : > { %2768 = vst.msk [vmem:[%s4166_s23 + $0x100] sm:$0xff] %vm1651_vm2, %v2354_v15  ;;  %v2357_v22 = vadd.f32 %v4160_v32, %v2356_v21 }
 0x20f   : > { %2771 = vst.msk [vmem:[%s4166_s23 + $0x118] sm:$0xff] %vm1651_vm2, %v2365_v20 }
 0x210   : > { %2769 = vst.msk [vmem:[%s4166_s23 + $0x108] sm:$0xff] %vm1651_vm2, %v2357_v22 }
 0x212   : > { %v3428_v23 = vpop.f32.mrb[36].mxu1 }
 0x213   : > { %v2378_v25 = vadd.f32 %v3428_v23, %v4160_v32  ;;  %v2369_v51 = vpop.f32.mrb[37].mxu1 }
 0x214   : > { %v2370_v40 = vadd.f32 %v4160_v32, %v2369_v51  ;;  %v3429_v28 = vpop.f32.mrb[38].mxu1 }
 0x215   : > { %2774 = vst.msk [vmem:[%s4166_s23 + $0x130] sm:$0xff] %vm1651_vm2, %v2378_v25  ;;  %v2381_v58 = vadd.f32 %v3429_v28, %v4160_v32  ;;  %v2372_v19 = vpop.f32.mrb[39].mxu1 }
 0x216   : > { %2772 = vst.msk [vmem:[%s4166_s23 + $0x120] sm:$0xff] %vm1651_vm2, %v2370_v40  ;;  %v2373_v52 = vadd.f32 %v4160_v32, %v2372_v19 }
 0x217   : > { %2775 = vst.msk [vmem:[%s4166_s23 + $0x138] sm:$0xff] %vm1651_vm2, %v2381_v58 }
 0x218   : > { %2773 = vst.msk [vmem:[%s4166_s23 + $0x128] sm:$0xff] %vm1651_vm2, %v2373_v52 }
 0x21a   : > { %v3432_v39 = vpop.f32.mrb[40].mxu1 }
 0x21b   : > { %v2394_v29 = vadd.f32 %v3432_v39, %v4160_v32  ;;  %v2385_v31 = vpop.f32.mrb[41].mxu1 }
 0x21c   : > { %v2386_v50 = vadd.f32 %v4160_v32, %v2385_v31  ;;  %v3433_v43 = vpop.f32.mrb[42].mxu1 }
 0x21d   : > { %2778 = vst.msk [vmem:[%s4166_s23 + $0x150] sm:$0xff] %vm1651_vm2, %v2394_v29  ;;  %v2397_v7 = vadd.f32 %v3433_v43, %v4160_v32  ;;  %v2388_v30 = vpop.f32.mrb[43].mxu1 }
 0x21e   : > { %2776 = vst.msk [vmem:[%s4166_s23 + $0x140] sm:$0xff] %vm1651_vm2, %v2386_v50  ;;  %v2389_v34 = vadd.f32 %v4160_v32, %v2388_v30 }
 0x21f   : > { %2779 = vst.msk [vmem:[%s4166_s23 + $0x158] sm:$0xff] %vm1651_vm2, %v2397_v7 }
 0x220   : > { %2777 = vst.msk [vmem:[%s4166_s23 + $0x148] sm:$0xff] %vm1651_vm2, %v2389_v34 }
 0x222   : > { %v3436_v41 = vpop.f32.mrb[44].mxu1 }
 0x223   : > { %v2410_v53 = vadd.f32 %v3436_v41, %v4160_v32  ;;  %v2401_v13 = vpop.f32.mrb[45].mxu1 }
 0x224   : > { %v2402_v54 = vadd.f32 %v4160_v32, %v2401_v13  ;;  %v3437_v1 = vpop.f32.mrb[46].mxu1 }
 0x225   : > { %2782 = vst.msk [vmem:[%s4166_s23 + $0x170] sm:$0xff] %vm1651_vm2, %v2410_v53  ;;  %v2413_v44 = vadd.f32 %v3437_v1, %v4160_v32  ;;  %v2404_v45 = vpop.f32.mrb[47].mxu1 }
 0x226   : > { %2780 = vst.msk [vmem:[%s4166_s23 + $0x160] sm:$0xff] %vm1651_vm2, %v2402_v54  ;;  %v2405_v4 = vadd.f32 %v4160_v32, %v2404_v45 }
 0x227   : > { %2783 = vst.msk [vmem:[%s4166_s23 + $0x178] sm:$0xff] %vm1651_vm2, %v2413_v44 }
 0x228   : > { %2781 = vst.msk [vmem:[%s4166_s23 + $0x168] sm:$0xff] %vm1651_vm2, %v2405_v4 }
 0x22a   : > { %v3440_v26 = vpop.f32.mrb[48].mxu1 }
 0x22b   : > { %v2426_v47 = vadd.f32 %v3440_v26, %v4160_v32  ;;  %v2417_v55 = vpop.f32.mrb[49].mxu1 }
 0x22c   : > { %v2418_v18 = vadd.f32 %v4160_v32, %v2417_v55  ;;  %v3441_v24 = vpop.f32.mrb[50].mxu1 }
 0x22d   : > { %2786 = vst.msk [vmem:[%s4166_s23 + $0x190] sm:$0xff] %vm1651_vm2, %v2426_v47  ;;  %v2429_v38 = vadd.f32 %v3441_v24, %v4160_v32  ;;  %v2420_v2 = vpop.f32.mrb[51].mxu1 }
 0x22e   : > { %2784 = vst.msk [vmem:[%s4166_s23 + $0x180] sm:$0xff] %vm1651_vm2, %v2418_v18  ;;  %v2421_v42 = vadd.f32 %v4160_v32, %v2420_v2 }
 0x22f   : > { %2787 = vst.msk [vmem:[%s4166_s23 + $0x198] sm:$0xff] %vm1651_vm2, %v2429_v38 }
 0x230   : > { %2785 = vst.msk [vmem:[%s4166_s23 + $0x188] sm:$0xff] %vm1651_vm2, %v2421_v42 }
 0x232   : > { %v3444_v48 = vpop.f32.mrb[52].mxu1 }
 0x233   : > { %v2442_v49 = vadd.f32 %v3444_v48, %v4160_v32  ;;  %v2433_v35 = vpop.f32.mrb[53].mxu1 }
 0x234   : > { %v2434_v37 = vadd.f32 %v4160_v32, %v2433_v35  ;;  %v3445_v46 = vpop.f32.mrb[54].mxu1 }
 0x235   : > { %2790 = vst.msk [vmem:[%s4166_s23 + $0x1b0] sm:$0xff] %vm1651_vm2, %v2442_v49  ;;  %v2445_v5 = vadd.f32 %v3445_v46, %v4160_v32  ;;  %v2436_v56 = vpop.f32.mrb[55].mxu1 }
 0x236   : > { %2788 = vst.msk [vmem:[%s4166_s23 + $0x1a0] sm:$0xff] %vm1651_vm2, %v2434_v37  ;;  %v2437_v10 = vadd.f32 %v4160_v32, %v2436_v56 }
 0x237   : > { %2791 = vst.msk [vmem:[%s4166_s23 + $0x1b8] sm:$0xff] %vm1651_vm2, %v2445_v5 }
 0x238   : > { %2789 = vst.msk [vmem:[%s4166_s23 + $0x1a8] sm:$0xff] %vm1651_vm2, %v2437_v10 }
 0x23a   : > { %v3448_v57 = vpop.f32.mrb[56].mxu1 }
 0x23b   : > { %v2458_v60 = vadd.f32 %v3448_v57, %v4160_v32  ;;  %v2449_v27 = vpop.f32.mrb[57].mxu1 }
 0x23c   : > { %v2450_v63 = vadd.f32 %v4160_v32, %v2449_v27  ;;  %v3449_v6 = vpop.f32.mrb[58].mxu1 }
 0x23d   : > { %2794 = vst.msk [vmem:[%s4166_s23 + $0x1d0] sm:$0xff] %vm1651_vm2, %v2458_v60  ;;  %v2461_v61 = vadd.f32 %v3449_v6, %v4160_v32  ;;  %v2452_v62 = vpop.f32.mrb[59].mxu1 }
 0x23e   : > { %2792 = vst.msk [vmem:[%s4166_s23 + $0x1c0] sm:$0xff] %vm1651_vm2, %v2450_v63  ;;  %v2453_v0 = vadd.f32 %v4160_v32, %v2452_v62 }
 0x23f   : > { %2795 = vst.msk [vmem:[%s4166_s23 + $0x1d8] sm:$0xff] %vm1651_vm2, %v2461_v61 }
 0x240   : > { %2793 = vst.msk [vmem:[%s4166_s23 + $0x1c8] sm:$0xff] %vm1651_vm2, %v2453_v0 }
 0x242   : > { %v3452_v59 = vpop.f32.mrb[60].mxu1 }
 0x243   : > { %v2474_v8 = vadd.f32 %v3452_v59, %v4160_v32  ;;  %v2465_v9 = vpop.f32.mrb[61].mxu1 }
 0x244   : > { %v2466_v36 = vadd.f32 %v4160_v32, %v2465_v9  ;;  %v3453_v11 = vpop.f32.mrb[62].mxu1 }
 0x245   : > { %2798 = vst.msk [vmem:[%s4166_s23 + $0x1f0] sm:$0xff] %vm1651_vm2, %v2474_v8  ;;  %v2477_v3 = vadd.f32 %v3453_v11, %v4160_v32  ;;  %v2468_v12 = vpop.f32.mrb[63].mxu1 }
 0x246   : > { %2796 = vst.msk [vmem:[%s4166_s23 + $0x1e0] sm:$0xff] %vm1651_vm2, %v2466_v36  ;;  %v2469_v14 = vadd.f32 %v4160_v32, %v2468_v12 }
 0x247   : > { %2799 = vst.msk [vmem:[%s4166_s23 + $0x1f8] sm:$0xff] %vm1651_vm2, %v2477_v3 }
 0x248   : > { %2797 = vst.msk [vmem:[%s4166_s23 + $0x1e8] sm:$0xff] %vm1651_vm2, %v2469_v14 }
 0x24a   : > { %v3456_v16 = vpop.f32.mrb[64].mxu1 }
 0x24b   : > { %v2490_v17 = vadd.f32 %v3456_v16, %v4160_v32  ;;  %v2481_v15 = vpop.f32.mrb[65].mxu1 }
 0x24c   : > { %v2482_v33 = vadd.f32 %v4160_v32, %v2481_v15  ;;  %v3457_v20 = vpop.f32.mrb[66].mxu1 }
 0x24d   : > { %2802 = vst.msk [vmem:[%s4166_s23 + $0x210] sm:$0xff] %vm1651_vm2, %v2490_v17  ;;  %v2493_v21 = vadd.f32 %v3457_v20, %v4160_v32  ;;  %v2484_v22 = vpop.f32.mrb[67].mxu1 }
 0x24e   : > { %2800 = vst.msk [vmem:[%s4166_s23 + $0x200] sm:$0xff] %vm1651_vm2, %v2482_v33  ;;  %v2485_v23 = vadd.f32 %v4160_v32, %v2484_v22 }
 0x24f   : > { %2803 = vst.msk [vmem:[%s4166_s23 + $0x218] sm:$0xff] %vm1651_vm2, %v2493_v21 }
 0x250   : > { %2801 = vst.msk [vmem:[%s4166_s23 + $0x208] sm:$0xff] %vm1651_vm2, %v2485_v23 }
 0x252   : > { %v3460_v25 = vpop.f32.mrb[68].mxu1 }
 0x253   : > { %v2506_v51 = vadd.f32 %v3460_v25, %v4160_v32  ;;  %v2497_v40 = vpop.f32.mrb[69].mxu1 }
 0x254   : > { %v2498_v28 = vadd.f32 %v4160_v32, %v2497_v40  ;;  %v3461_v58 = vpop.f32.mrb[70].mxu1 }
 0x255   : > { %2806 = vst.msk [vmem:[%s4166_s23 + $0x230] sm:$0xff] %vm1651_vm2, %v2506_v51  ;;  %v2509_v19 = vadd.f32 %v3461_v58, %v4160_v32  ;;  %v2500_v52 = vpop.f32.mrb[71].mxu1 }
 0x256   : > { %2804 = vst.msk [vmem:[%s4166_s23 + $0x220] sm:$0xff] %vm1651_vm2, %v2498_v28  ;;  %v2501_v39 = vadd.f32 %v4160_v32, %v2500_v52 }
 0x257   : > { %2807 = vst.msk [vmem:[%s4166_s23 + $0x238] sm:$0xff] %vm1651_vm2, %v2509_v19 }
 0x258   : > { %2805 = vst.msk [vmem:[%s4166_s23 + $0x228] sm:$0xff] %vm1651_vm2, %v2501_v39 }
 0x25a   : > { %v3464_v29 = vpop.f32.mrb[72].mxu1 }
 0x25b   : > { %v2522_v31 = vadd.f32 %v3464_v29, %v4160_v32  ;;  %v2513_v50 = vpop.f32.mrb[73].mxu1 }
 0x25c   : > { %v2514_v43 = vadd.f32 %v4160_v32, %v2513_v50  ;;  %v3465_v7 = vpop.f32.mrb[74].mxu1 }
 0x25d   : > { %2810 = vst.msk [vmem:[%s4166_s23 + $0x250] sm:$0xff] %vm1651_vm2, %v2522_v31  ;;  %v2525_v30 = vadd.f32 %v3465_v7, %v4160_v32  ;;  %v2516_v34 = vpop.f32.mrb[75].mxu1 }
 0x25e   : > { %2808 = vst.msk [vmem:[%s4166_s23 + $0x240] sm:$0xff] %vm1651_vm2, %v2514_v43  ;;  %v2517_v41 = vadd.f32 %v4160_v32, %v2516_v34 }
 0x25f   : > { %2811 = vst.msk [vmem:[%s4166_s23 + $0x258] sm:$0xff] %vm1651_vm2, %v2525_v30 }
 0x260   : > { %2809 = vst.msk [vmem:[%s4166_s23 + $0x248] sm:$0xff] %vm1651_vm2, %v2517_v41 }
 0x262   : > { %v3468_v53 = vpop.f32.mrb[76].mxu1 }
 0x263   : > { %v2538_v13 = vadd.f32 %v3468_v53, %v4160_v32  ;;  %v2529_v54 = vpop.f32.mrb[77].mxu1 }
 0x264   : > { %v2530_v1 = vadd.f32 %v4160_v32, %v2529_v54  ;;  %v3469_v44 = vpop.f32.mrb[78].mxu1 }
 0x265   : > { %2814 = vst.msk [vmem:[%s4166_s23 + $0x270] sm:$0xff] %vm1651_vm2, %v2538_v13  ;;  %v2541_v45 = vadd.f32 %v3469_v44, %v4160_v32  ;;  %v2532_v4 = vpop.f32.mrb[79].mxu1 }
 0x266   : > { %2812 = vst.msk [vmem:[%s4166_s23 + $0x260] sm:$0xff] %vm1651_vm2, %v2530_v1  ;;  %v2533_v26 = vadd.f32 %v4160_v32, %v2532_v4 }
 0x267   : > { %2815 = vst.msk [vmem:[%s4166_s23 + $0x278] sm:$0xff] %vm1651_vm2, %v2541_v45 }
 0x268   : > { %2813 = vst.msk [vmem:[%s4166_s23 + $0x268] sm:$0xff] %vm1651_vm2, %v2533_v26 }
 0x26a   : > { %v3472_v47 = vpop.f32.mrb[80].mxu1 }
 0x26b   : > { %v2554_v55 = vadd.f32 %v3472_v47, %v4160_v32  ;;  %v2545_v18 = vpop.f32.mrb[81].mxu1 }
 0x26c   : > { %v2546_v24 = vadd.f32 %v4160_v32, %v2545_v18  ;;  %v3473_v38 = vpop.f32.mrb[82].mxu1 }
 0x26d   : > { %2818 = vst.msk [vmem:[%s4166_s23 + $0x290] sm:$0xff] %vm1651_vm2, %v2554_v55  ;;  %v2557_v2 = vadd.f32 %v3473_v38, %v4160_v32  ;;  %v2548_v42 = vpop.f32.mrb[83].mxu1 }
 0x26e   : > { %2816 = vst.msk [vmem:[%s4166_s23 + $0x280] sm:$0xff] %vm1651_vm2, %v2546_v24  ;;  %v2549_v48 = vadd.f32 %v4160_v32, %v2548_v42 }
 0x26f   : > { %2819 = vst.msk [vmem:[%s4166_s23 + $0x298] sm:$0xff] %vm1651_vm2, %v2557_v2 }
 0x270   : > { %2817 = vst.msk [vmem:[%s4166_s23 + $0x288] sm:$0xff] %vm1651_vm2, %v2549_v48 }
 0x272   : > { %v3476_v49 = vpop.f32.mrb[84].mxu1 }
 0x273   : > { %v2570_v35 = vadd.f32 %v3476_v49, %v4160_v32  ;;  %v2561_v37 = vpop.f32.mrb[85].mxu1 }
 0x274   : > { %v2562_v46 = vadd.f32 %v4160_v32, %v2561_v37  ;;  %v3477_v5 = vpop.f32.mrb[86].mxu1 }
 0x275   : > { %2822 = vst.msk [vmem:[%s4166_s23 + $0x2b0] sm:$0xff] %vm1651_vm2, %v2570_v35  ;;  %v2573_v56 = vadd.f32 %v3477_v5, %v4160_v32  ;;  %v2564_v10 = vpop.f32.mrb[87].mxu1 }
 0x276   : > { %2820 = vst.msk [vmem:[%s4166_s23 + $0x2a0] sm:$0xff] %vm1651_vm2, %v2562_v46  ;;  %v2565_v57 = vadd.f32 %v4160_v32, %v2564_v10 }
 0x277   : > { %2823 = vst.msk [vmem:[%s4166_s23 + $0x2b8] sm:$0xff] %vm1651_vm2, %v2573_v56 }
 0x278   : > { %2821 = vst.msk [vmem:[%s4166_s23 + $0x2a8] sm:$0xff] %vm1651_vm2, %v2565_v57 }
 0x27a   : > { %v3480_v60 = vpop.f32.mrb[88].mxu1 }
 0x27b   : > { %v2586_v27 = vadd.f32 %v3480_v60, %v4160_v32  ;;  %v2577_v63 = vpop.f32.mrb[89].mxu1 }
 0x27c   : > { %v2578_v6 = vadd.f32 %v4160_v32, %v2577_v63  ;;  %v3481_v61 = vpop.f32.mrb[90].mxu1 }
 0x27d   : > { %2826 = vst.msk [vmem:[%s4166_s23 + $0x2d0] sm:$0xff] %vm1651_vm2, %v2586_v27  ;;  %v2589_v62 = vadd.f32 %v3481_v61, %v4160_v32  ;;  %v2580_v0 = vpop.f32.mrb[91].mxu1 }
 0x27e   : > { %2824 = vst.msk [vmem:[%s4166_s23 + $0x2c0] sm:$0xff] %vm1651_vm2, %v2578_v6  ;;  %v2581_v59 = vadd.f32 %v4160_v32, %v2580_v0 }
 0x27f   : > { %2827 = vst.msk [vmem:[%s4166_s23 + $0x2d8] sm:$0xff] %vm1651_vm2, %v2589_v62 }
 0x280   : > { %2825 = vst.msk [vmem:[%s4166_s23 + $0x2c8] sm:$0xff] %vm1651_vm2, %v2581_v59 }
 0x282   : > { %v3484_v8 = vpop.f32.mrb[92].mxu1 }
 0x283   : > { %v2602_v9 = vadd.f32 %v3484_v8, %v4160_v32  ;;  %v2593_v36 = vpop.f32.mrb[93].mxu1 }
 0x284   : > { %v2594_v11 = vadd.f32 %v4160_v32, %v2593_v36  ;;  %v3485_v3 = vpop.f32.mrb[94].mxu1 }
 0x285   : > { %2830 = vst.msk [vmem:[%s4166_s23 + $0x2f0] sm:$0xff] %vm1651_vm2, %v2602_v9  ;;  %v2605_v12 = vadd.f32 %v3485_v3, %v4160_v32  ;;  %v2596_v14 = vpop.f32.mrb[95].mxu1 }
 0x286   : > { %2828 = vst.msk [vmem:[%s4166_s23 + $0x2e0] sm:$0xff] %vm1651_vm2, %v2594_v11  ;;  %v2597_v16 = vadd.f32 %v4160_v32, %v2596_v14 }
 0x287   : > { %2831 = vst.msk [vmem:[%s4166_s23 + $0x2f8] sm:$0xff] %vm1651_vm2, %v2605_v12 }
 0x288   : > { %2829 = vst.msk [vmem:[%s4166_s23 + $0x2e8] sm:$0xff] %vm1651_vm2, %v2597_v16 }
 0x28a   : > { %v3488_v17 = vpop.f32.mrb[96].mxu1 }
 0x28b   : > { %v2618_v15 = vadd.f32 %v3488_v17, %v4160_v32  ;;  %v2609_v33 = vpop.f32.mrb[97].mxu1 }
 0x28c   : > { %v2610_v20 = vadd.f32 %v4160_v32, %v2609_v33  ;;  %v3489_v21 = vpop.f32.mrb[98].mxu1 }
 0x28d   : > { %2834 = vst.msk [vmem:[%s4166_s23 + $0x310] sm:$0xff] %vm1651_vm2, %v2618_v15  ;;  %v2621_v22 = vadd.f32 %v3489_v21, %v4160_v32  ;;  %v2612_v23 = vpop.f32.mrb[99].mxu1 }
 0x28e   : > { %2832 = vst.msk [vmem:[%s4166_s23 + $0x300] sm:$0xff] %vm1651_vm2, %v2610_v20  ;;  %v2613_v25 = vadd.f32 %v4160_v32, %v2612_v23 }
 0x28f   : > { %2835 = vst.msk [vmem:[%s4166_s23 + $0x318] sm:$0xff] %vm1651_vm2, %v2621_v22 }
 0x290   : > { %2833 = vst.msk [vmem:[%s4166_s23 + $0x308] sm:$0xff] %vm1651_vm2, %v2613_v25 }
 0x292   : > { %v3492_v51 = vpop.f32.mrb[100].mxu1 }
 0x293   : > { %v2634_v40 = vadd.f32 %v3492_v51, %v4160_v32  ;;  %v2625_v28 = vpop.f32.mrb[101].mxu1 }
 0x294   : > { %v2626_v58 = vadd.f32 %v4160_v32, %v2625_v28  ;;  %v3493_v19 = vpop.f32.mrb[102].mxu1 }
 0x295   : > { %2838 = vst.msk [vmem:[%s4166_s23 + $0x330] sm:$0xff] %vm1651_vm2, %v2634_v40  ;;  %v2637_v52 = vadd.f32 %v3493_v19, %v4160_v32  ;;  %v2628_v39 = vpop.f32.mrb[103].mxu1 }
 0x296   : > { %2836 = vst.msk [vmem:[%s4166_s23 + $0x320] sm:$0xff] %vm1651_vm2, %v2626_v58  ;;  %v2629_v29 = vadd.f32 %v4160_v32, %v2628_v39 }
 0x297   : > { %2839 = vst.msk [vmem:[%s4166_s23 + $0x338] sm:$0xff] %vm1651_vm2, %v2637_v52 }
 0x298   : > { %2837 = vst.msk [vmem:[%s4166_s23 + $0x328] sm:$0xff] %vm1651_vm2, %v2629_v29 }
 0x29a   : > { %v3496_v31 = vpop.f32.mrb[104].mxu1 }
 0x29b   : > { %v2650_v50 = vadd.f32 %v3496_v31, %v4160_v32  ;;  %v2641_v43 = vpop.f32.mrb[105].mxu1 }
 0x29c   : > { %v2642_v7 = vadd.f32 %v4160_v32, %v2641_v43  ;;  %v3497_v30 = vpop.f32.mrb[106].mxu1 }
 0x29d   : > { %2842 = vst.msk [vmem:[%s4166_s23 + $0x350] sm:$0xff] %vm1651_vm2, %v2650_v50  ;;  %v2653_v34 = vadd.f32 %v3497_v30, %v4160_v32  ;;  %v2644_v41 = vpop.f32.mrb[107].mxu1 }
 0x29e   : > { %2840 = vst.msk [vmem:[%s4166_s23 + $0x340] sm:$0xff] %vm1651_vm2, %v2642_v7  ;;  %v2645_v53 = vadd.f32 %v4160_v32, %v2644_v41 }
 0x29f   : > { %2843 = vst.msk [vmem:[%s4166_s23 + $0x358] sm:$0xff] %vm1651_vm2, %v2653_v34 }
 0x2a0   : > { %2841 = vst.msk [vmem:[%s4166_s23 + $0x348] sm:$0xff] %vm1651_vm2, %v2645_v53 }
 0x2a2   : > { %v3500_v13 = vpop.f32.mrb[108].mxu1 }
 0x2a3   : > { %v2666_v54 = vadd.f32 %v3500_v13, %v4160_v32  ;;  %v2657_v1 = vpop.f32.mrb[109].mxu1 }
 0x2a4   : > { %v2658_v44 = vadd.f32 %v4160_v32, %v2657_v1  ;;  %v3501_v45 = vpop.f32.mrb[110].mxu1 }
 0x2a5   : > { %2846 = vst.msk [vmem:[%s4166_s23 + $0x370] sm:$0xff] %vm1651_vm2, %v2666_v54  ;;  %v2669_v4 = vadd.f32 %v3501_v45, %v4160_v32  ;;  %v2660_v26 = vpop.f32.mrb[111].mxu1 }
 0x2a6   : > { %2844 = vst.msk [vmem:[%s4166_s23 + $0x360] sm:$0xff] %vm1651_vm2, %v2658_v44  ;;  %v2661_v47 = vadd.f32 %v4160_v32, %v2660_v26 }
 0x2a7   : > { %2847 = vst.msk [vmem:[%s4166_s23 + $0x378] sm:$0xff] %vm1651_vm2, %v2669_v4 }
 0x2a8   : > { %2845 = vst.msk [vmem:[%s4166_s23 + $0x368] sm:$0xff] %vm1651_vm2, %v2661_v47 }
 0x2aa   : > { %v3504_v55 = vpop.f32.mrb[112].mxu1 }
 0x2ab   : > { %v2682_v18 = vadd.f32 %v3504_v55, %v4160_v32  ;;  %v2673_v24 = vpop.f32.mrb[113].mxu1 }
 0x2ac   : > { %v2674_v38 = vadd.f32 %v4160_v32, %v2673_v24  ;;  %v3505_v2 = vpop.f32.mrb[114].mxu1 }
 0x2ad   : > { %2850 = vst.msk [vmem:[%s4166_s23 + $0x390] sm:$0xff] %vm1651_vm2, %v2682_v18  ;;  %v2685_v42 = vadd.f32 %v3505_v2, %v4160_v32  ;;  %v2676_v48 = vpop.f32.mrb[115].mxu1 }
 0x2ae   : > { %2848 = vst.msk [vmem:[%s4166_s23 + $0x380] sm:$0xff] %vm1651_vm2, %v2674_v38  ;;  %v2677_v49 = vadd.f32 %v4160_v32, %v2676_v48 }
 0x2af   : > { %2851 = vst.msk [vmem:[%s4166_s23 + $0x398] sm:$0xff] %vm1651_vm2, %v2685_v42 }
 0x2b0   : > { %2849 = vst.msk [vmem:[%s4166_s23 + $0x388] sm:$0xff] %vm1651_vm2, %v2677_v49 }
 0x2b2   : > { %v3508_v35 = vpop.f32.mrb[116].mxu1 }
 0x2b3   : > { %v2698_v37 = vadd.f32 %v3508_v35, %v4160_v32  ;;  %v2689_v46 = vpop.f32.mrb[117].mxu1 }
 0x2b4   : > { %v2690_v5 = vadd.f32 %v4160_v32, %v2689_v46  ;;  %v3509_v56 = vpop.f32.mrb[118].mxu1 }
 0x2b5   : > { %2854 = vst.msk [vmem:[%s4166_s23 + $0x3b0] sm:$0xff] %vm1651_vm2, %v2698_v37  ;;  %v2701_v10 = vadd.f32 %v3509_v56, %v4160_v32  ;;  %v2692_v57 = vpop.f32.mrb[119].mxu1 }
 0x2b6   : > { %2852 = vst.msk [vmem:[%s4166_s23 + $0x3a0] sm:$0xff] %vm1651_vm2, %v2690_v5  ;;  %v2693_v60 = vadd.f32 %v4160_v32, %v2692_v57 }
 0x2b7   : > { %2855 = vst.msk [vmem:[%s4166_s23 + $0x3b8] sm:$0xff] %vm1651_vm2, %v2701_v10 }
 0x2b8   : > { %2853 = vst.msk [vmem:[%s4166_s23 + $0x3a8] sm:$0xff] %vm1651_vm2, %v2693_v60 }
 0x2ba   : > { %v3512_v27 = vpop.f32.mrb[120].mxu1 }
 0x2bb   : > { %v2714_v63 = vadd.f32 %v3512_v27, %v4160_v32  ;;  %v2705_v6 = vpop.f32.mrb[121].mxu1 }
 0x2bc   : > { %v2706_v61 = vadd.f32 %v4160_v32, %v2705_v6  ;;  %v3513_v62 = vpop.f32.mrb[122].mxu1 }
 0x2bd   : > { %2858 = vst.msk [vmem:[%s4166_s23 + $0x3d0] sm:$0xff] %vm1651_vm2, %v2714_v63  ;;  %v2717_v0 = vadd.f32 %v3513_v62, %v4160_v32  ;;  %v2708_v59 = vpop.f32.mrb[123].mxu1 }
 0x2be   : > { %2856 = vst.msk [vmem:[%s4166_s23 + $0x3c0] sm:$0xff] %vm1651_vm2, %v2706_v61  ;;  %v2709_v8 = vadd.f32 %v4160_v32, %v2708_v59 }
 0x2bf   : > { %2859 = vst.msk [vmem:[%s4166_s23 + $0x3d8] sm:$0xff] %vm1651_vm2, %v2717_v0 }
 0x2c0   : > { %2857 = vst.msk [vmem:[%s4166_s23 + $0x3c8] sm:$0xff] %vm1651_vm2, %v2709_v8 }
 0x2c2   : > { %v3516_v9 = vpop.f32.mrb[124].mxu1 }
 0x2c3   : > { %v2730_v36 = vadd.f32 %v3516_v9, %v4160_v32  ;;  %v2721_v11 = vpop.f32.mrb[125].mxu1 }
 0x2c4   : > { %v2722_v3 = vadd.f32 %v4160_v32, %v2721_v11  ;;  %v3517_v12 = vpop.f32.mrb[126].mxu1 }
 0x2c5   : > { %2862 = vst.msk [vmem:[%s4166_s23 + $0x3f0] sm:$0xff] %vm1651_vm2, %v2730_v36  ;;  %v2733_v14 = vadd.f32 %v3517_v12, %v4160_v32  ;;  %v2724_v16 = vpop.f32.mrb[127].mxu1 }
 0x2c6   : > { %2860 = vst.msk [vmem:[%s4166_s23 + $0x3e0] sm:$0xff] %vm1651_vm2, %v2722_v3  ;;  %v2725_v17 = vadd.f32 %v4160_v32, %v2724_v16 }
 0x2c7   : > { %2863 = vst.msk [vmem:[%s4166_s23 + $0x3f8] sm:$0xff] %vm1651_vm2, %v2733_v14 }
 0x2c8   : > { %2861 = vst.msk [vmem:[%s4166_s23 + $0x3e8] sm:$0xff] %vm1651_vm2, %v2725_v17 }
 0x2c9 PF: > { %s17_s24 = sadd.s32 1, %s3625_s24  }
 0x2ca   : > { %p14_p5 = scmp.ge.s32.totalorder %s17_s24, 4  }
 0x2cc   :  { %16 = sbr.rel (!%p14_p5) target bundleno = 1 (0x1), region = 81 }

// kernel: pce_forward.3
= control target key start
LH: loop header
LB: loop body
LE: loop exit
PB: predicated region body
PF: predicated region fallthrough
CT: control target
= control target key end

     0   :  { %s3685_s24 = smov 0   ;;  %s4910_s0 = inlined_call_operand.vmem [shape: bf16[2048,72], index: 0, kind: input, shape index: {}]   ;;  %s4911_s1 = inlined_call_operand.vmem [shape: f32[32,8], index: 1, kind: input, shape index: {}]   ;;  %s4912_s2 = inlined_call_operand.vmem [shape: f32[8,128], index: 2, kind: input, shape index: {}]   ;;  %s4913_s3 = inlined_call_operand.vmem [shape: bf16[72,128], index: 3, kind: input, shape index: {}]   ;;  %s4914_s4 = inlined_call_operand.vmem [shape: f32[1,128], index: 4, kind: input, shape index: {}]   ;;  %s4915_s5 = inlined_call_operand.vmem [shape: bf16[128,16], index: 5, kind: input, shape index: {}]   ;;  %s4916_s6 = inlined_call_operand.vmem [shape: f32[1,16], index: 6, kind: input, shape index: {}]   ;;  %s4917_s7 = inlined_call_operand.vmem [shape: f32[2048,16], index: 7, kind: output, shape index: {}]  }
   0x1 LB: > { %s2951_s25 = sadd.s32 4294967295, %s3642_s24   ;;  %p2955_p0 = scmp.ge.s32.totalorder %s3642_s24, 1  ;;  %s3642_s24 = sphi %s3685_s24, %s17_s24  }
   0x2   : > { %p249_p1 = scmp.lt.s32.totalorder %s3642_s24, 3 }
   0x4   : > { %p250_p2 = pnand %p2955_p0, %p249_p1 }
   0x6   : > { %253 = sbr.rel (%p250_p2) target bundleno = 991 (0x3df), region = 48 }
   0xd   : > { %v3559_v0 = vld [vmem:[%s4913_s3] sm:$0xff]   ;;  %v3560_v1 = vld [vmem:[%s4913_s3 + $0x8] sm:$0xff]   ;;  %s2956_s30 = sshll.u32 %s2951_s25, 7  ;;  %v3561_v2 = vld [vmem:[%s4913_s3 + $0x10] sm:$0xff]   ;;  %vm796_vm0 = vcmask 588800   ;;  %vm989_vm1 = vcmask 1043456  }
   0xe   : > { %3262 = vmatprep.subr.bf16.mxu0 %v3559_v0  ;;  %p287_p3 = scmp.lt.s32.totalorder %s2956_s30, 255  ;;  %v3562_v3 = vld [vmem:[%s4913_s3 + $0x18] sm:$0xff]   ;;  %v3563_v5 = vld [vmem:[%s4913_s3 + $0x20] ss:$0 sps:$4 sm:$0xff]   ;;  %s2958_s22 = sshll.u32 %s2951_s25, 1  ;;  %vm1669_vm2 = vcmask 64512  }
   0xf   : > { %3263 = vmatpush3.bf16.msra.mxu0 %v3559_v0  ;;  %v991_v6 = vsel %vm989_vm1, %v3563_v5, 0  ;;  %v1668_v7 = vld [vmem:[%s4912_s2] sm:$0xff]  ;;  %p293_p4 = scmp.lt.s32.totalorder %s2958_s22, 3  ;;  %vm2754_vm3 = vcmask 130048  }
  0x10   : > { %3264 = vmatprep.subr.bf16.mxu0 %v3560_v1  ;;  %s5069_s30 = smov (!%p287_p3, %s2956_s30), 255  ;;  %v3833_v62 = vld [vmem:[%s4914_s4] ss:$0 sm:$0xff] }
  0x11   : > { %s2957_s12 = sshll.u32 %s5069_s30, 2  ;;  %s5071_s22 = smov (!%p293_p4, %s2958_s22), 3 }
  0x12   : > { %s3713_s15 = scalar_lea.vmem %s4910_s0, %s2957_s12  ;;  %s2959_s23 = sshll.u32 %s5071_s22, 3 }
  0x13   : > { %3265 = vmatpush3.bf16.msra.mxu0 %v3560_v1  ;;  %v3564_v4 = vld [vmem:[%s3713_s15] sm:$0xff]   ;;  %v3565_v8 = vld [vmem:[%s3713_s15 + $0x8] sm:$0xff]   ;;  %v3566_v9 = vld [vmem:[%s3713_s15 + $0x10] sm:$0xff]   ;;  %s296_s27 = scalar_lea.vmem %s4911_s1, %s2959_s23  ;;  %s2961_s22 = sshll.u32 %s5069_s30, 3 }
  0x14   : > { %3266 = vmatprep.subr.bf16.mxu0 %v3561_v2  ;;  %3272 = vmatprep.mubr.msk.bf16.mxu0 %vm796_vm0, %v3564_v4  ;;  %v3567_v10 = vld [vmem:[%s3713_s15 + $0x18] sm:$0xff]   ;;  %v3568_v11 = vld [vmem:[%s3713_s15 + $0x20] sm:$0xff]   ;;  %v3569_v12 = vld [vmem:[%s3713_s15 + $0x28] sm:$0xff]   ;;  %s4494_s28 = scalar_lea.vmem %s4917_s7, %s2961_s22 }
  0x15   : > { %v3570_v13 = vld [vmem:[%s3713_s15 + $0x30] sm:$0xff]   ;;  %v3571_v14 = vld [vmem:[%s3713_s15 + $0x38] sm:$0xff]   ;;  %v3572_v15 = vld [vmem:[%s3713_s15 + $0x40] sm:$0xff]  }
  0x16   : > { %v3573_v16 = vld [vmem:[%s3713_s15 + $0x48] sm:$0xff]   ;;  %v3574_v17 = vld [vmem:[%s3713_s15 + $0x50] sm:$0xff]   ;;  %v3575_v18 = vld [vmem:[%s3713_s15 + $0x58] sm:$0xff]  }
  0x17   : > { %3267 = vmatpush3.bf16.msra.mxu0 %v3561_v2  ;;  %v3576_v19 = vld [vmem:[%s3713_s15 + $0x60] sm:$0xff]   ;;  %v3577_v20 = vld [vmem:[%s3713_s15 + $0x68] sm:$0xff]   ;;  %v3578_v21 = vld [vmem:[%s3713_s15 + $0x70] sm:$0xff]  }
  0x18   : > { %3268 = vmatprep.subr.bf16.mxu0 %v3562_v3  ;;  %v3579_v22 = vld [vmem:[%s3713_s15 + $0x78] sm:$0xff]   ;;  %v3580_v23 = vld [vmem:[%s3713_s15 + $0x80] sm:$0xff]   ;;  %v3581_v24 = vld [vmem:[%s3713_s15 + $0x88] sm:$0xff]  }
  0x19   : > { %v3582_v25 = vld [vmem:[%s3713_s15 + $0x90] sm:$0xff]   ;;  %v3583_v26 = vld [vmem:[%s3713_s15 + $0x98] sm:$0xff]   ;;  %v3584_v27 = vld [vmem:[%s3713_s15 + $0xa0] sm:$0xff]  }
  0x1a   : > { %v3585_v28 = vld [vmem:[%s3713_s15 + $0xa8] sm:$0xff]   ;;  %v3586_v29 = vld [vmem:[%s3713_s15 + $0xb0] sm:$0xff]   ;;  %v3587_v30 = vld [vmem:[%s3713_s15 + $0xb8] sm:$0xff]  }
  0x1b   : > { %3269 = vmatpush3.bf16.msra.mxu0 %v3562_v3  ;;  %v3588_v31 = vld [vmem:[%s3713_s15 + $0xc0] sm:$0xff]   ;;  %v3589_v32 = vld [vmem:[%s3713_s15 + $0xc8] sm:$0xff]   ;;  %v3590_v33 = vld [vmem:[%s3713_s15 + $0xd0] sm:$0xff]  }
  0x1c   : > { %3549 = vmatprep.subr.msk.bf16.mxu0 %vm989_vm1, %v3563_v5  ;;  %v3591_v34 = vld [vmem:[%s3713_s15 + $0xd8] sm:$0xff]   ;;  %v3592_v35 = vld [vmem:[%s3713_s15 + $0xe0] sm:$0xff]   ;;  %v3593_v36 = vld [vmem:[%s3713_s15 + $0xe8] sm:$0xff]  }
  0x1d   : > { %v3594_v37 = vld [vmem:[%s3713_s15 + $0xf0] sm:$0xff]   ;;  %v3595_v38 = vld [vmem:[%s3713_s15 + $0xf8] sm:$0xff]   ;;  %v3596_v39 = vld [vmem:[%s3713_s15 + $0x100] sm:$0xff]  }
  0x1e   : > { %v3597_v40 = vld [vmem:[%s3713_s15 + $0x108] sm:$0xff]   ;;  %v3598_v41 = vld [vmem:[%s3713_s15 + $0x110] sm:$0xff]   ;;  %v3599_v42 = vld [vmem:[%s3713_s15 + $0x118] sm:$0xff]  }
  0x1f   : > { %3271 = vmatpush3.bf16.msra.mxu0 %v991_v6  ;;  %v3600_v43 = vld [vmem:[%s3713_s15 + $0x120] sm:$0xff]   ;;  %v3601_v44 = vld [vmem:[%s3713_s15 + $0x128] sm:$0xff]   ;;  %v3602_v45 = vld [vmem:[%s3713_s15 + $0x130] sm:$0xff]  }
  0x20   : > { %3400 = vmatprep.subr.mxu0 %v1668_v7  ;;  %v3603_v46 = vld [vmem:[%s3713_s15 + $0x138] sm:$0xff]   ;;  %v3604_v47 = vld [vmem:[%s3713_s15 + $0x140] sm:$0xff]   ;;  %v3605_v48 = vld [vmem:[%s3713_s15 + $0x148] sm:$0xff]  }
  0x21   : > { %v3606_v49 = vld [vmem:[%s3713_s15 + $0x150] sm:$0xff]   ;;  %v3607_v50 = vld [vmem:[%s3713_s15 + $0x158] sm:$0xff]   ;;  %v3608_v51 = vld [vmem:[%s3713_s15 + $0x160] sm:$0xff]  }
  0x22   : > { %3273 = vmatmul.mubr.msk.bf16.vlgmr.msra.gmra.mrb[0].mxu0 %vm796_vm0, %v3565_v8  ;;  %v3609_v52 = vld [vmem:[%s3713_s15 + $0x168] sm:$0xff]   ;;  %v3610_v53 = vld [vmem:[%s3713_s15 + $0x170] sm:$0xff]   ;;  %v3611_v54 = vld [vmem:[%s3713_s15 + $0x178] sm:$0xff]  }
  0x23   : > { %3401 = vmatpush3.msra.mxu0 %v1668_v7  ;;  %3276 = vmatprep.mubr.msk.bf16.mxu0 %vm796_vm0, %v3566_v9  ;;  %v3612_v55 = vld [vmem:[%s3713_s15 + $0x180] sm:$0xff]   ;;  %v3613_v56 = vld [vmem:[%s3713_s15 + $0x188] sm:$0xff]   ;;  %v3614_v57 = vld [vmem:[%s3713_s15 + $0x190] sm:$0xff]  }
  0x24   : > { %v3615_v58 = vld [vmem:[%s3713_s15 + $0x198] sm:$0xff]   ;;  %v3616_v59 = vld [vmem:[%s3713_s15 + $0x1a0] sm:$0xff]   ;;  %v3617_v60 = vld [vmem:[%s3713_s15 + $0x1a8] sm:$0xff]  }
  0x25   : > { %v3618_v61 = vld [vmem:[%s3713_s15 + $0x1b0] sm:$0xff]   ;;  %v3619_v2 = vld [vmem:[%s3713_s15 + $0x1b8] sm:$0xff]   ;;  %v3620_v5 = vld [vmem:[%s3713_s15 + $0x1c0] sm:$0xff]  }
  0x2a   : > { %3277 = vmatmul.mubr.msk.bf16.gmra.mrb[4].mxu0 %vm796_vm0, %v3567_v10 }
  0x2b   : > { %3280 = vmatprep.mubr.msk.bf16.mxu0 %vm796_vm0, %v3568_v11 }
  0x32   : > { %3281 = vmatmul.mubr.msk.bf16.gmra.mrb[8].mxu0 %vm796_vm0, %v3569_v12 }
  0x33   : > { %3284 = vmatprep.mubr.msk.bf16.mxu0 %vm796_vm0, %v3570_v13 }
  0x3a   : > { %3285 = vmatmul.mubr.msk.bf16.gmra.mrb[12].mxu0 %vm796_vm0, %v3571_v14 }
  0x3b   : > { %3288 = vmatprep.mubr.msk.bf16.mxu0 %vm796_vm0, %v3572_v15 }
  0x42   : > { %3289 = vmatmul.mubr.msk.bf16.gmra.mrb[16].mxu0 %vm796_vm0, %v3573_v16 }
  0x43   : > { %3292 = vmatprep.mubr.msk.bf16.mxu0 %vm796_vm0, %v3574_v17 }
  0x4a   : > { %3293 = vmatmul.mubr.msk.bf16.gmra.mrb[20].mxu0 %vm796_vm0, %v3575_v18  ;;  %v3621_v18 = vld [vmem:[%s3713_s15 + $0x1c8] sm:$0xff]  }
  0x4b   : > { %3296 = vmatprep.mubr.msk.bf16.mxu0 %vm796_vm0, %v3576_v19 }
  0x52   : > { %3297 = vmatmul.mubr.msk.bf16.gmra.mrb[24].mxu0 %vm796_vm0, %v3577_v20 }
  0x53   : > { %3300 = vmatprep.mubr.msk.bf16.mxu0 %vm796_vm0, %v3578_v21  ;;  %v3622_v21 = vld [vmem:[%s3713_s15 + $0x1d0] sm:$0xff]  }
  0x5a   : > { %3301 = vmatmul.mubr.msk.bf16.gmra.mrb[28].mxu0 %vm796_vm0, %v3579_v22 }
  0x5b   : > { %3304 = vmatprep.mubr.msk.bf16.mxu0 %vm796_vm0, %v3580_v23 }
  0x62   : > { %3305 = vmatmul.mubr.msk.bf16.gmra.mrb[32].mxu0 %vm796_vm0, %v3581_v24 }
  0x63   : > { %3308 = vmatprep.mubr.msk.bf16.mxu0 %vm796_vm0, %v3582_v25 }
  0x6a   : > { %3309 = vmatmul.mubr.msk.bf16.gmra.mrb[36].mxu0 %vm796_vm0, %v3583_v26 }
  0x6b   : > { %3312 = vmatprep.mubr.msk.bf16.mxu0 %vm796_vm0, %v3584_v27 }
  0x72   : > { %3313 = vmatmul.mubr.msk.bf16.gmra.mrb[40].mxu0 %vm796_vm0, %v3585_v28 }
  0x73   : > { %3316 = vmatprep.mubr.msk.bf16.mxu0 %vm796_vm0, %v3586_v29 }
  0x7a   : > { %3317 = vmatmul.mubr.msk.bf16.gmra.mrb[44].mxu0 %vm796_vm0, %v3587_v30 }
  0x7b   : > { %3320 = vmatprep.mubr.msk.bf16.mxu0 %vm796_vm0, %v3588_v31 }
  0x82   : > { %3321 = vmatmul.mubr.msk.bf16.gmra.mrb[48].mxu0 %vm796_vm0, %v3589_v32 }
  0x83   : > { %3324 = vmatprep.mubr.msk.bf16.mxu0 %vm796_vm0, %v3590_v33 }
  0x8a   : > { %3325 = vmatmul.mubr.msk.bf16.gmra.mrb[52].mxu0 %vm796_vm0, %v3591_v34  ;;  %v3623_v34 = vld [vmem:[%s3713_s15 + $0x1d8] sm:$0xff]  }
  0x8b   : > { %3328 = vmatprep.mubr.msk.bf16.mxu0 %vm796_vm0, %v3592_v35 }
  0x92   : > { %3329 = vmatmul.mubr.msk.bf16.gmra.mrb[56].mxu0 %vm796_vm0, %v3593_v36 }
  0x93   : > { %3332 = vmatprep.mubr.msk.bf16.mxu0 %vm796_vm0, %v3594_v37  ;;  %v3624_v37 = vld [vmem:[%s3713_s15 + $0x1e0] sm:$0xff]  }
  0x9a   : > { %3333 = vmatmul.mubr.msk.bf16.gmra.mrb[60].mxu0 %vm796_vm0, %v3595_v38 }
  0x9b   : > { %3336 = vmatprep.mubr.msk.bf16.mxu0 %vm796_vm0, %v3596_v39 }
  0xa2   : > { %3337 = vmatmul.mubr.msk.bf16.gmra.mrb[64].mxu0 %vm796_vm0, %v3597_v40 }
  0xa3   : > { %3340 = vmatprep.mubr.msk.bf16.mxu0 %vm796_vm0, %v3598_v41 }
  0xaa   : > { %3341 = vmatmul.mubr.msk.bf16.gmra.mrb[68].mxu0 %vm796_vm0, %v3599_v42 }
  0xab   : > { %3344 = vmatprep.mubr.msk.bf16.mxu0 %vm796_vm0, %v3600_v43 }
  0xb2   : > { %3345 = vmatmul.mubr.msk.bf16.gmra.mrb[72].mxu0 %vm796_vm0, %v3601_v44 }
  0xb3   : > { %3348 = vmatprep.mubr.msk.bf16.mxu0 %vm796_vm0, %v3602_v45 }
  0xba   : > { %3349 = vmatmul.mubr.msk.bf16.gmra.mrb[76].mxu0 %vm796_vm0, %v3603_v46 }
  0xbb   : > { %3352 = vmatprep.mubr.msk.bf16.mxu0 %vm796_vm0, %v3604_v47 }
  0xc2   : > { %3353 = vmatmul.mubr.msk.bf16.gmra.mrb[80].mxu0 %vm796_vm0, %v3605_v48 }
  0xc3   : > { %3356 = vmatprep.mubr.msk.bf16.mxu0 %vm796_vm0, %v3606_v49 }
  0xca   : > { %3357 = vmatmul.mubr.msk.bf16.gmra.mrb[84].mxu0 %vm796_vm0, %v3607_v50  ;;  %v3625_v50 = vld [vmem:[%s3713_s15 + $0x1e8] sm:$0xff]  }
  0xcb   : > { %3360 = vmatprep.mubr.msk.bf16.mxu0 %vm796_vm0, %v3608_v51 }
  0xd2   : > { %3361 = vmatmul.mubr.msk.bf16.gmra.mrb[88].mxu0 %vm796_vm0, %v3609_v52 }
  0xd3   : > { %3364 = vmatprep.mubr.msk.bf16.mxu0 %vm796_vm0, %v3610_v53  ;;  %v3626_v53 = vld [vmem:[%s3713_s15 + $0x1f0] sm:$0xff]  }
  0xda   : > { %3365 = vmatmul.mubr.msk.bf16.gmra.mrb[92].mxu0 %vm796_vm0, %v3611_v54 }
  0xdb   : > { %3368 = vmatprep.mubr.msk.bf16.mxu0 %vm796_vm0, %v3612_v55 }
  0xe2   : > { %3369 = vmatmul.mubr.msk.bf16.gmra.mrb[96].mxu0 %vm796_vm0, %v3613_v56 }
  0xe3   : > { %3372 = vmatprep.mubr.msk.bf16.mxu0 %vm796_vm0, %v3614_v57 }
  0xea   : > { %3373 = vmatmul.mubr.msk.bf16.gmra.mrb[100].mxu0 %vm796_vm0, %v3615_v58 }
  0xeb   : > { %3376 = vmatprep.mubr.msk.bf16.mxu0 %vm796_vm0, %v3616_v59 }
  0xf2   : > { %3377 = vmatmul.mubr.msk.bf16.gmra.mrb[104].mxu0 %vm796_vm0, %v3617_v60 }
  0xf3   : > { %3380 = vmatprep.mubr.msk.bf16.mxu0 %vm796_vm0, %v3618_v61 }
  0xf5   : > { %v3274_v63 = vpop.f32.mrb[0].mxu0 }
  0xf6   : > { %v1036_v0 = vadd.f32 %v3274_v63, %v3833_v62  ;;  %v1027_v1 = vpop.f32.mrb[1].mxu0 }
  0xf7   : > { %v1028_v3 = vadd.f32 %v3833_v62, %v1027_v1  ;;  %v3275_v4 = vpop.f32.mrb[2].mxu0 }
  0xf8   : > { %v1039_v6 = vadd.f32 %v3275_v4, %v3833_v62  ;;  %v1030_v7 = vpop.f32.mrb[3].mxu0  ;;  %v1540_v9 = vmax.f32 %v1036_v0, 0.0 }
  0xf9   : > { %v1031_v8 = vadd.f32 %v3833_v62, %v1030_v7  ;;  %v1538_v11 = vmax.f32 %v1028_v3, 0.0  ;;  %v3627_v3 = vld [vmem:[%s3713_s15 + $0x1f8] sm:$0xff]  }
  0xfa   : > { %v1541_v10 = vmax.f32 %v1039_v6, 0.0  ;;  %3381 = vmatmul.mubr.msk.bf16.gmra.mrb[108].mxu0 %vm796_vm0, %v3619_v2 }
  0xfb   : > { %v1539_v12 = vmax.f32 %v1031_v8, 0.0  ;;  %3384 = vmatprep.mubr.msk.bf16.mxu0 %vm796_vm0, %v3620_v5  ;;  %v1666_v8 = vld [vmem:[%s296_s27] sm:$0xff] }
  0xfc   : > { %v3844_v13 = vpack.c.bf16 %v1541_v10, %v1540_v9 }
  0xfd   : > { %v3278_v14 = vpop.f32.mrb[4].mxu0  ;;  %v3846_v15 = vpack.c.bf16 %v1539_v12, %v1538_v11 }
  0xfe   : > { %v1052_v16 = vadd.f32 %v3278_v14, %v3833_v62  ;;  %v1043_v17 = vpop.f32.mrb[5].mxu0 }
  0xff   : > { %v1044_v19 = vadd.f32 %v3833_v62, %v1043_v17  ;;  %v3279_v20 = vpop.f32.mrb[6].mxu0 }
 0x100   : > { %v1055_v22 = vadd.f32 %v3279_v20, %v3833_v62  ;;  %v1046_v23 = vpop.f32.mrb[7].mxu0  ;;  %v1544_v25 = vmax.f32 %v1052_v16, 0.0 }
 0x101   : > { %v1047_v24 = vadd.f32 %v3833_v62, %v1046_v23  ;;  %v1542_v27 = vmax.f32 %v1044_v19, 0.0  ;;  %v1667_v23 = vld [vmem:[%s296_s27 + $0x8] sm:$0xff] }
 0x102   : > { %v1545_v26 = vmax.f32 %v1055_v22, 0.0  ;;  %3385 = vmatmul.mubr.msk.bf16.gmra.mrb[112].mxu0 %vm796_vm0, %v3621_v18 }
 0x103   : > { %v1543_v28 = vmax.f32 %v1047_v24, 0.0  ;;  %3388 = vmatprep.mubr.msk.bf16.mxu0 %vm796_vm0, %v3622_v21 }
 0x104   : > { %v3856_v29 = vpack.c.bf16 %v1545_v26, %v1544_v25 }
 0x105   : > { %v3858_v30 = vpack.c.bf16 %v1543_v28, %v1542_v27  ;;  %v3282_v31 = vpop.f32.mrb[8].mxu0 }
 0x106   : > { %v1068_v32 = vadd.f32 %v3282_v31, %v3833_v62  ;;  %v1059_v33 = vpop.f32.mrb[9].mxu0 }
 0x107   : > { %v1060_v35 = vadd.f32 %v3833_v62, %v1059_v33  ;;  %v3283_v36 = vpop.f32.mrb[10].mxu0 }
 0x108   : > { %v1071_v38 = vadd.f32 %v3283_v36, %v3833_v62  ;;  %v1062_v39 = vpop.f32.mrb[11].mxu0  ;;  %v1548_v41 = vmax.f32 %v1068_v32, 0.0 }
 0x109   : > { %v1063_v40 = vadd.f32 %v3833_v62, %v1062_v39  ;;  %v1546_v43 = vmax.f32 %v1060_v35, 0.0 }
 0x10a   : > { %v1549_v42 = vmax.f32 %v1071_v38, 0.0  ;;  %3389 = vmatmul.mubr.msk.bf16.gmra.mrb[116].mxu0 %vm796_vm0, %v3623_v34 }
 0x10b   : > { %v1547_v44 = vmax.f32 %v1063_v40, 0.0  ;;  %3392 = vmatprep.mubr.msk.bf16.mxu0 %vm796_vm0, %v3624_v37 }
 0x10c   : > { %v3870_v45 = vpack.c.bf16 %v1549_v42, %v1548_v41 }
 0x10d   : > { %v3872_v46 = vpack.c.bf16 %v1547_v44, %v1546_v43  ;;  %v3286_v47 = vpop.f32.mrb[12].mxu0 }
 0x10e   : > { %v1084_v48 = vadd.f32 %v3286_v47, %v3833_v62  ;;  %v1075_v49 = vpop.f32.mrb[13].mxu0 }
 0x10f   : > { %v1076_v51 = vadd.f32 %v3833_v62, %v1075_v49  ;;  %v3287_v52 = vpop.f32.mrb[14].mxu0 }
 0x110   : > { %v1087_v54 = vadd.f32 %v3287_v52, %v3833_v62  ;;  %v1078_v55 = vpop.f32.mrb[15].mxu0  ;;  %v1552_v57 = vmax.f32 %v1084_v48, 0.0 }
 0x111   : > { %v1079_v56 = vadd.f32 %v3833_v62, %v1078_v55  ;;  %v1550_v59 = vmax.f32 %v1076_v51, 0.0 }
 0x112   : > { %v1553_v58 = vmax.f32 %v1087_v54, 0.0  ;;  %3393 = vmatmul.mubr.msk.bf16.gmra.mrb[120].mxu0 %vm796_vm0, %v3625_v50 }
 0x113   : > { %v1551_v60 = vmax.f32 %v1079_v56, 0.0  ;;  %3396 = vmatprep.mubr.msk.bf16.mxu0 %vm796_vm0, %v3626_v53 }
 0x114   : > { %v3882_v61 = vpack.c.bf16 %v1553_v58, %v1552_v57 }
 0x115   : > { %v3884_v63 = vpack.c.bf16 %v1551_v60, %v1550_v59  ;;  %v3290_v0 = vpop.f32.mrb[16].mxu0 }
 0x116   : > { %v1100_v1 = vadd.f32 %v3290_v0, %v3833_v62  ;;  %v1091_v2 = vpop.f32.mrb[17].mxu0 }
 0x117   : > { %v1092_v4 = vadd.f32 %v3833_v62, %v1091_v2  ;;  %v3291_v5 = vpop.f32.mrb[18].mxu0 }
 0x118   : > { %v1103_v6 = vadd.f32 %v3291_v5, %v3833_v62  ;;  %v1094_v7 = vpop.f32.mrb[19].mxu0  ;;  %v1556_v10 = vmax.f32 %v1100_v1, 0.0 }
 0x119   : > { %v1095_v9 = vadd.f32 %v3833_v62, %v1094_v7  ;;  %v1554_v12 = vmax.f32 %v1092_v4, 0.0 }
 0x11a   : > { %v1557_v11 = vmax.f32 %v1103_v6, 0.0  ;;  %3397 = vmatmul.mubr.msk.bf16.gmra.mrb[124].mxu0 %vm796_vm0, %v3627_v3 }
 0x11b   : > { %v1555_v14 = vmax.f32 %v1095_v9, 0.0  ;;  %3402 = vmatprep.mubr.msk.f32.mxu0 %vm1669_vm2, %v1666_v8 }
 0x11c   : > { %v3896_v16 = vpack.c.bf16 %v1557_v11, %v1556_v10 }
 0x11d   : > { %v3898_v17 = vpack.c.bf16 %v1555_v14, %v1554_v12  ;;  %v3294_v18 = vpop.f32.mrb[20].mxu0 }
 0x11e   : > { %v1116_v19 = vadd.f32 %v3294_v18, %v3833_v62  ;;  %v1107_v20 = vpop.f32.mrb[21].mxu0 }
 0x11f   : > { %v1108_v21 = vadd.f32 %v3833_v62, %v1107_v20  ;;  %v3295_v22 = vpop.f32.mrb[22].mxu0 }
 0x120   : > { %v1119_v24 = vadd.f32 %v3295_v22, %v3833_v62  ;;  %v1110_v25 = vpop.f32.mrb[23].mxu0  ;;  %v1560_v27 = vmax.f32 %v1116_v19, 0.0 }
 0x121   : > { %v1111_v26 = vadd.f32 %v3833_v62, %v1110_v25  ;;  %v1558_v31 = vmax.f32 %v1108_v21, 0.0 }
 0x122   : > { %v1561_v28 = vmax.f32 %v1119_v24, 0.0  ;;  %3403 = vmatmul.mubr.msk.f32.vlgmr.msra.gmra.mrb[128].mxu0 %vm1669_vm2, %v1667_v23 }
 0x123   : > { %v1559_v32 = vmax.f32 %v1111_v26, 0.0 }
 0x124   : > { %v3905_v33 = vpack.c.bf16 %v1561_v28, %v1560_v27 }
 0x125   : > { %v3907_v34 = vpack.c.bf16 %v1559_v32, %v1558_v31  ;;  %v3298_v35 = vpop.f32.mrb[24].mxu0 }
 0x126   : > { %v1132_v36 = vadd.f32 %v3298_v35, %v3833_v62  ;;  %v1123_v37 = vpop.f32.mrb[25].mxu0 }
 0x127   : > { %v1124_v38 = vadd.f32 %v3833_v62, %v1123_v37  ;;  %v3299_v39 = vpop.f32.mrb[26].mxu0 }
 0x128   : > { %v1135_v40 = vadd.f32 %v3299_v39, %v3833_v62  ;;  %v1126_v41 = vpop.f32.mrb[27].mxu0  ;;  %v1564_v43 = vmax.f32 %v1132_v36, 0.0 }
 0x129   : > { %v1127_v42 = vadd.f32 %v3833_v62, %v1126_v41  ;;  %v1562_v47 = vmax.f32 %v1124_v38, 0.0 }
 0x12a   : > { %v1565_v44 = vmax.f32 %v1135_v40, 0.0 }
 0x12b   : > { %v1563_v48 = vmax.f32 %v1127_v42, 0.0 }
 0x12c   : > { %v3913_v49 = vpack.c.bf16 %v1565_v44, %v1564_v43 }
 0x12d   : > { %v3915_v50 = vpack.c.bf16 %v1563_v48, %v1562_v47  ;;  %v3302_v51 = vpop.f32.mrb[28].mxu0 }
 0x12e   : > { %v1148_v52 = vadd.f32 %v3302_v51, %v3833_v62  ;;  %v1139_v53 = vpop.f32.mrb[29].mxu0 }
 0x12f   : > { %v1140_v54 = vadd.f32 %v3833_v62, %v1139_v53  ;;  %v3303_v55 = vpop.f32.mrb[30].mxu0 }
 0x130   : > { %v1151_v56 = vadd.f32 %v3303_v55, %v3833_v62  ;;  %v1142_v57 = vpop.f32.mrb[31].mxu0  ;;  %v1568_v59 = vmax.f32 %v1148_v52, 0.0 }
 0x131   : > { %v1143_v58 = vadd.f32 %v3833_v62, %v1142_v57  ;;  %v1566_v0 = vmax.f32 %v1140_v54, 0.0 }
 0x132   : > { %v1569_v60 = vmax.f32 %v1151_v56, 0.0 }
 0x133   : > { %v1567_v1 = vmax.f32 %v1143_v58, 0.0 }
 0x134   : > { %v3921_v2 = vpack.c.bf16 %v1569_v60, %v1568_v59 }
 0x135   : > { %v3923_v3 = vpack.c.bf16 %v1567_v1, %v1566_v0  ;;  %v3306_v4 = vpop.f32.mrb[32].mxu0 }
 0x136   : > { %v1164_v5 = vadd.f32 %v3306_v4, %v3833_v62  ;;  %v1155_v6 = vpop.f32.mrb[33].mxu0 }
 0x137   : > { %v1156_v7 = vadd.f32 %v3833_v62, %v1155_v6  ;;  %v3307_v8 = vpop.f32.mrb[34].mxu0 }
 0x138   : > { %v1167_v9 = vadd.f32 %v3307_v8, %v3833_v62  ;;  %v1158_v10 = vpop.f32.mrb[35].mxu0  ;;  %v1572_v12 = vmax.f32 %v1164_v5, 0.0 }
 0x139   : > { %v1159_v11 = vadd.f32 %v3833_v62, %v1158_v10  ;;  %v1570_v18 = vmax.f32 %v1156_v7, 0.0 }
 0x13a   : > { %v1573_v14 = vmax.f32 %v1167_v9, 0.0 }
 0x13b   : > { %v1571_v19 = vmax.f32 %v1159_v11, 0.0 }
 0x13c   : > { %v3929_v20 = vpack.c.bf16 %v1573_v14, %v1572_v12 }
 0x13d   : > { %v3931_v21 = vpack.c.bf16 %v1571_v19, %v1570_v18  ;;  %v3310_v22 = vpop.f32.mrb[36].mxu0 }
 0x13e   : > { %v1180_v23 = vadd.f32 %v3310_v22, %v3833_v62  ;;  %v1171_v24 = vpop.f32.mrb[37].mxu0 }
 0x13f   : > { %v1172_v25 = vadd.f32 %v3833_v62, %v1171_v24  ;;  %v3311_v26 = vpop.f32.mrb[38].mxu0 }
 0x140   : > { %v1183_v27 = vadd.f32 %v3311_v26, %v3833_v62  ;;  %v1174_v28 = vpop.f32.mrb[39].mxu0  ;;  %v1576_v32 = vmax.f32 %v1180_v23, 0.0 }
 0x141   : > { %v1175_v31 = vadd.f32 %v3833_v62, %v1174_v28  ;;  %v1574_v36 = vmax.f32 %v1172_v25, 0.0 }
 0x142   : > { %v1577_v35 = vmax.f32 %v1183_v27, 0.0 }
 0x143   : > { %v1575_v37 = vmax.f32 %v1175_v31, 0.0 }
 0x144   : > { %v3937_v38 = vpack.c.bf16 %v1577_v35, %v1576_v32 }
 0x145   : > { %v3939_v39 = vpack.c.bf16 %v1575_v37, %v1574_v36  ;;  %v3314_v40 = vpop.f32.mrb[40].mxu0 }
 0x146   : > { %v1196_v41 = vadd.f32 %v3314_v40, %v3833_v62  ;;  %v1187_v42 = vpop.f32.mrb[41].mxu0 }
 0x147   : > { %v1188_v43 = vadd.f32 %v3833_v62, %v1187_v42  ;;  %v3315_v44 = vpop.f32.mrb[42].mxu0 }
 0x148   : > { %v1199_v47 = vadd.f32 %v3315_v44, %v3833_v62  ;;  %v1190_v48 = vpop.f32.mrb[43].mxu0  ;;  %v1580_v52 = vmax.f32 %v1196_v41, 0.0 }
 0x149   : > { %v1191_v51 = vadd.f32 %v3833_v62, %v1190_v48  ;;  %v1578_v54 = vmax.f32 %v1188_v43, 0.0 }
 0x14a   : > { %v1581_v53 = vmax.f32 %v1199_v47, 0.0 }
 0x14b   : > { %v1579_v55 = vmax.f32 %v1191_v51, 0.0 }
 0x14c   : > { %v3945_v56 = vpack.c.bf16 %v1581_v53, %v1580_v52 }
 0x14d   : > { %v3947_v57 = vpack.c.bf16 %v1579_v55, %v1578_v54  ;;  %v3318_v58 = vpop.f32.mrb[44].mxu0 }
 0x14e   : > { %v1212_v59 = vadd.f32 %v3318_v58, %v3833_v62  ;;  %v1203_v60 = vpop.f32.mrb[45].mxu0 }
 0x14f   : > { %v1204_v0 = vadd.f32 %v3833_v62, %v1203_v60  ;;  %v3319_v1 = vpop.f32.mrb[46].mxu0 }
 0x150   : > { %v1215_v4 = vadd.f32 %v3319_v1, %v3833_v62  ;;  %v1206_v5 = vpop.f32.mrb[47].mxu0  ;;  %v1584_v7 = vmax.f32 %v1212_v59, 0.0  ;;  %v3628_v1 = vld [vmem:[%s4915_s5] sm:$0xff]  }
 0x151   : > { %v1207_v6 = vadd.f32 %v3833_v62, %v1206_v5  ;;  %v1582_v9 = vmax.f32 %v1204_v0, 0.0  ;;  %3405 = vmatprep.subr.bf16.mxu1 %v3628_v1 }
 0x152   : > { %v1585_v8 = vmax.f32 %v1215_v4, 0.0  ;;  %3406 = vmatpush3.bf16.msra.mxu1 %v3628_v1 }
 0x153   : > { %v1583_v10 = vmax.f32 %v1207_v6, 0.0 }
 0x154   : > { %v3953_v11 = vpack.c.bf16 %v1585_v8, %v1584_v7 }
 0x155   : > { %v3955_v12 = vpack.c.bf16 %v1583_v10, %v1582_v9  ;;  %v3322_v14 = vpop.f32.mrb[48].mxu0 }
 0x156   : > { %v1228_v18 = vadd.f32 %v3322_v14, %v3833_v62  ;;  %v1219_v19 = vpop.f32.mrb[49].mxu0  ;;  %v3629_v14 = vld [vmem:[%s4915_s5 + $0x8] sm:$0xff]  }
 0x157   : > { %v1220_v22 = vadd.f32 %v3833_v62, %v1219_v19  ;;  %v3323_v23 = vpop.f32.mrb[50].mxu0  ;;  %3407 = vmatprep.subr.bf16.mxu1 %v3629_v14 }
 0x158   : > { %v1231_v24 = vadd.f32 %v3323_v23, %v3833_v62  ;;  %v1222_v25 = vpop.f32.mrb[51].mxu0  ;;  %v1588_v27 = vmax.f32 %v1228_v18, 0.0  ;;  %3408 = vmatpush3.bf16.msra.mxu1 %v3629_v14 }
 0x159   : > { %v1223_v26 = vadd.f32 %v3833_v62, %v1222_v25  ;;  %v1586_v31 = vmax.f32 %v1220_v22, 0.0 }
 0x15a   : > { %v1589_v28 = vmax.f32 %v1231_v24, 0.0 }
 0x15b   : > { %v1587_v32 = vmax.f32 %v1223_v26, 0.0 }
 0x15c   : > { %v3961_v35 = vpack.c.bf16 %v1589_v28, %v1588_v27  ;;  %v3630_v27 = vld [vmem:[%s4915_s5 + $0x10] sm:$0xff]  }
 0x15d   : > { %v3963_v36 = vpack.c.bf16 %v1587_v32, %v1586_v31  ;;  %v3326_v37 = vpop.f32.mrb[52].mxu0  ;;  %3409 = vmatprep.subr.bf16.mxu1 %v3630_v27 }
 0x15e   : > { %v1244_v40 = vadd.f32 %v3326_v37, %v3833_v62  ;;  %v1235_v41 = vpop.f32.mrb[53].mxu0  ;;  %3410 = vmatpush3.bf16.msra.mxu1 %v3630_v27 }
 0x15f   : > { %v1236_v42 = vadd.f32 %v3833_v62, %v1235_v41  ;;  %v3327_v43 = vpop.f32.mrb[54].mxu0 }
 0x160   : > { %v1247_v44 = vadd.f32 %v3327_v43, %v3833_v62  ;;  %v1238_v47 = vpop.f32.mrb[55].mxu0  ;;  %v1592_v51 = vmax.f32 %v1244_v40, 0.0  ;;  %v3631_v43 = vld [vmem:[%s4915_s5 + $0x18] sm:$0xff]  }
 0x161   : > { %v1239_v48 = vadd.f32 %v3833_v62, %v1238_v47  ;;  %v1590_v53 = vmax.f32 %v1236_v42, 0.0  ;;  %3411 = vmatprep.subr.bf16.mxu1 %v3631_v43 }
 0x162   : > { %v1593_v52 = vmax.f32 %v1247_v44, 0.0  ;;  %3412 = vmatpush3.bf16.msra.mxu1 %v3631_v43 }
 0x163   : > { %v1591_v54 = vmax.f32 %v1239_v48, 0.0 }
 0x164   : > { %v3969_v55 = vpack.c.bf16 %v1593_v52, %v1592_v51 }
 0x165   : > { %v3971_v58 = vpack.c.bf16 %v1591_v54, %v1590_v53  ;;  %v3330_v59 = vpop.f32.mrb[56].mxu0 }
 0x166   : > { %v1260_v60 = vadd.f32 %v3330_v59, %v3833_v62  ;;  %v1251_v0 = vpop.f32.mrb[57].mxu0 }
 0x167   : > { %v1252_v4 = vadd.f32 %v3833_v62, %v1251_v0  ;;  %v3331_v5 = vpop.f32.mrb[58].mxu0 }
 0x168   : > { %v1263_v6 = vadd.f32 %v3331_v5, %v3833_v62  ;;  %v1254_v7 = vpop.f32.mrb[59].mxu0  ;;  %v1596_v9 = vmax.f32 %v1260_v60, 0.0 }
 0x169   : > { %v1255_v8 = vadd.f32 %v3833_v62, %v1254_v7  ;;  %v1594_v18 = vmax.f32 %v1252_v4, 0.0  ;;  %v3632_v7 = vld [vmem:[%s4915_s5 + $0x20] sm:$0xff]  }
 0x16a   : > { %v1597_v10 = vmax.f32 %v1263_v6, 0.0  ;;  %3413 = vmatprep.subr.bf16.mxu1 %v3632_v7 }
 0x16b   : > { %v1595_v19 = vmax.f32 %v1255_v8, 0.0  ;;  %3414 = vmatpush3.bf16.msra.mxu1 %v3632_v7 }
 0x16c   : > { %v3983_v22 = vpack.c.bf16 %v1597_v10, %v1596_v9 }
 0x16d   : > { %v3985_v23 = vpack.c.bf16 %v1595_v19, %v1594_v18  ;;  %v3334_v24 = vpop.f32.mrb[60].mxu0 }
 0x16e   : > { %v1276_v25 = vadd.f32 %v3334_v24, %v3833_v62  ;;  %v1267_v26 = vpop.f32.mrb[61].mxu0 }
 0x16f   : > { %v1268_v28 = vadd.f32 %v3833_v62, %v1267_v26  ;;  %v3335_v31 = vpop.f32.mrb[62].mxu0 }
 0x170   : > { %v1279_v32 = vadd.f32 %v3335_v31, %v3833_v62  ;;  %v1270_v37 = vpop.f32.mrb[63].mxu0  ;;  %v1600_v41 = vmax.f32 %v1276_v25, 0.0  ;;  %v3633_v25 = vld [vmem:[%s4915_s5 + $0x28] sm:$0xff]  }
 0x171   : > { %v1271_v40 = vadd.f32 %v3833_v62, %v1270_v37  ;;  %v1598_v44 = vmax.f32 %v1268_v28, 0.0  ;;  %3415 = vmatprep.subr.bf16.mxu1 %v3633_v25 }
 0x172   : > { %v1601_v42 = vmax.f32 %v1279_v32, 0.0  ;;  %3416 = vmatpush3.bf16.msra.mxu1 %v3633_v25 }
 0x173   : > { %v1599_v47 = vmax.f32 %v1271_v40, 0.0 }
 0x174   : > { %v3997_v48 = vpack.c.bf16 %v1601_v42, %v1600_v41  ;;  %v3634_v41 = vld [vmem:[%s4915_s5 + $0x30] sm:$0xff]  }
 0x175   : > { %v3999_v51 = vpack.c.bf16 %v1599_v47, %v1598_v44  ;;  %v3338_v52 = vpop.f32.mrb[64].mxu0  ;;  %3417 = vmatprep.subr.bf16.mxu1 %v3634_v41 }
 0x176   : > { %v1292_v53 = vadd.f32 %v3338_v52, %v3833_v62  ;;  %v1283_v54 = vpop.f32.mrb[65].mxu0  ;;  %3418 = vmatpush3.bf16.msra.mxu1 %v3634_v41 }
 0x177   : > { %v1284_v59 = vadd.f32 %v3833_v62, %v1283_v54  ;;  %v3339_v60 = vpop.f32.mrb[66].mxu0 }
 0x178   : > { %v1295_v0 = vadd.f32 %v3339_v60, %v3833_v62  ;;  %v1286_v1 = vpop.f32.mrb[67].mxu0  ;;  %v1604_v5 = vmax.f32 %v1292_v53, 0.0 }
 0x179   : > { %v1287_v4 = vadd.f32 %v3833_v62, %v1286_v1  ;;  %v1602_v8 = vmax.f32 %v1284_v59, 0.0  ;;  %v3635_v59 = vld [vmem:[%s4915_s5 + $0x38] sm:$0xff]  }
 0x17a   : > { %v1605_v6 = vmax.f32 %v1295_v0, 0.0  ;;  %3419 = vmatprep.subr.bf16.mxu1 %v3635_v59 }
 0x17b   : > { %v1603_v9 = vmax.f32 %v1287_v4, 0.0  ;;  %3420 = vmatpush3.bf16.msra.mxu1 %v3635_v59 }
 0x17c   : > { %v4008_v10 = vpack.c.bf16 %v1605_v6, %v1604_v5 }
 0x17d   : > { %v4010_v14 = vpack.c.bf16 %v1603_v9, %v1602_v8  ;;  %v3342_v18 = vpop.f32.mrb[68].mxu0 }
 0x17e   : > { %4942 = vst [vmem:[#allocation2_spill] sm:$0xff] %v4008_v10  ;;  %v1308_v19 = vadd.f32 %v3342_v18, %v3833_v62  ;;  %v1299_v24 = vpop.f32.mrb[69].mxu0 }
 0x17f   : > { %v1300_v26 = vadd.f32 %v3833_v62, %v1299_v24  ;;  %v3343_v27 = vpop.f32.mrb[70].mxu0 }
 0x180   : > { %v1311_v28 = vadd.f32 %v3343_v27, %v3833_v62  ;;  %v1302_v31 = vpop.f32.mrb[71].mxu0  ;;  %v1608_v37 = vmax.f32 %v1308_v19, 0.0 }
 0x181   : > { %v1303_v32 = vadd.f32 %v3833_v62, %v1302_v31  ;;  %v1606_v42 = vmax.f32 %v1300_v26, 0.0 }
 0x182   : > { %v1609_v40 = vmax.f32 %v1311_v28, 0.0 }
 0x183   : > { %v1607_v43 = vmax.f32 %v1303_v32, 0.0 }
 0x184   : > { %v4022_v44 = vpack.c.bf16 %v1609_v40, %v1608_v37 }
 0x185   : > { %v4024_v47 = vpack.c.bf16 %v1607_v43, %v1606_v42  ;;  %v3346_v52 = vpop.f32.mrb[72].mxu0 }
 0x186   : > { %4943 = vst [vmem:[#allocation3_spill] sm:$0xff] %v4022_v44  ;;  %v1324_v53 = vadd.f32 %v3346_v52, %v3833_v62  ;;  %v1315_v54 = vpop.f32.mrb[73].mxu0 }
 0x187   : > { %4944 = vst [vmem:[#allocation4_spill] sm:$0xff] %v4024_v47  ;;  %v1316_v60 = vadd.f32 %v3833_v62, %v1315_v54  ;;  %v3347_v0 = vpop.f32.mrb[74].mxu0 }
 0x188   : > { %v1327_v1 = vadd.f32 %v3347_v0, %v3833_v62  ;;  %v1318_v4 = vpop.f32.mrb[75].mxu0  ;;  %v1612_v6 = vmax.f32 %v1324_v53, 0.0 }
 0x189   : > { %v1319_v5 = vadd.f32 %v3833_v62, %v1318_v4  ;;  %v1610_v8 = vmax.f32 %v1316_v60, 0.0 }
 0x18a   : > { %v1613_v7 = vmax.f32 %v1327_v1, 0.0 }
 0x18b   : > { %v1611_v9 = vmax.f32 %v1319_v5, 0.0 }
 0x18c   : > { %v4033_v18 = vpack.c.bf16 %v1613_v7, %v1612_v6 }
 0x18d   : > { %v4035_v19 = vpack.c.bf16 %v1611_v9, %v1610_v8  ;;  %v3350_v24 = vpop.f32.mrb[76].mxu0 }
 0x18e   : > { %4945 = vst [vmem:[#allocation5_spill] sm:$0xff] %v4033_v18  ;;  %v1340_v25 = vadd.f32 %v3350_v24, %v3833_v62  ;;  %v1331_v26 = vpop.f32.mrb[77].mxu0 }
 0x18f   : > { %4946 = vst [vmem:[#allocation6_spill] sm:$0xff] %v4035_v19  ;;  %v1332_v27 = vadd.f32 %v3833_v62, %v1331_v26  ;;  %v3351_v28 = vpop.f32.mrb[78].mxu0 }
 0x190   : > { %v1343_v31 = vadd.f32 %v3351_v28, %v3833_v62  ;;  %v1334_v32 = vpop.f32.mrb[79].mxu0  ;;  %v1616_v40 = vmax.f32 %v1340_v25, 0.0 }
 0x191   : > { %v1335_v37 = vadd.f32 %v3833_v62, %v1334_v32  ;;  %v1614_v42 = vmax.f32 %v1332_v27, 0.0 }
 0x192   : > { %v1617_v41 = vmax.f32 %v1343_v31, 0.0 }
 0x193   : > { %v1615_v43 = vmax.f32 %v1335_v37, 0.0 }
 0x194   : > { %v4041_v52 = vpack.c.bf16 %v1617_v41, %v1616_v40 }
 0x195   : > { %v4043_v53 = vpack.c.bf16 %v1615_v43, %v1614_v42  ;;  %v3354_v54 = vpop.f32.mrb[80].mxu0 }
 0x196   : > { %4947 = vst [vmem:[#allocation7_spill] sm:$0xff] %v4041_v52  ;;  %v1356_v59 = vadd.f32 %v3354_v54, %v3833_v62  ;;  %v1347_v60 = vpop.f32.mrb[81].mxu0 }
 0x197   : > { %4948 = vst [vmem:[#allocation8_spill] sm:$0xff] %v4043_v53  ;;  %v1348_v0 = vadd.f32 %v3833_v62, %v1347_v60  ;;  %v3355_v1 = vpop.f32.mrb[82].mxu0 }
 0x198   : > { %v1359_v4 = vadd.f32 %v3355_v1, %v3833_v62  ;;  %v1350_v5 = vpop.f32.mrb[83].mxu0  ;;  %v1620_v7 = vmax.f32 %v1356_v59, 0.0 }
 0x199   : > { %v1351_v6 = vadd.f32 %v3833_v62, %v1350_v5  ;;  %v1618_v9 = vmax.f32 %v1348_v0, 0.0 }
 0x19a   : > { %v1621_v8 = vmax.f32 %v1359_v4, 0.0 }
 0x19b   : > { %v1619_v24 = vmax.f32 %v1351_v6, 0.0 }
 0x19c   : > { %v4049_v25 = vpack.c.bf16 %v1621_v8, %v1620_v7 }
 0x19d   : > { %v4051_v26 = vpack.c.bf16 %v1619_v24, %v1618_v9  ;;  %v3358_v27 = vpop.f32.mrb[84].mxu0 }
 0x19e   : > { %4949 = vst [vmem:[#allocation9_spill] sm:$0xff] %v4049_v25  ;;  %v1372_v28 = vadd.f32 %v3358_v27, %v3833_v62  ;;  %v1363_v31 = vpop.f32.mrb[85].mxu0 }
 0x19f   : > { %4950 = vst [vmem:[#allocation10_spill] sm:$0xff] %v4051_v26  ;;  %v1364_v32 = vadd.f32 %v3833_v62, %v1363_v31  ;;  %v3359_v37 = vpop.f32.mrb[86].mxu0 }
 0x1a0   : > { %v1375_v40 = vadd.f32 %v3359_v37, %v3833_v62  ;;  %v1366_v41 = vpop.f32.mrb[87].mxu0  ;;  %v1624_v43 = vmax.f32 %v1372_v28, 0.0 }
 0x1a1   : > { %v1367_v42 = vadd.f32 %v3833_v62, %v1366_v41  ;;  %v1622_v59 = vmax.f32 %v1364_v32, 0.0 }
 0x1a2   : > { %v1625_v54 = vmax.f32 %v1375_v40, 0.0 }
 0x1a3   : > { %v1623_v60 = vmax.f32 %v1367_v42, 0.0 }
 0x1a4   : > { %v4057_v0 = vpack.c.bf16 %v1625_v54, %v1624_v43 }
 0x1a5   : > { %v4059_v1 = vpack.c.bf16 %v1623_v60, %v1622_v59  ;;  %v3362_v4 = vpop.f32.mrb[88].mxu0 }
 0x1a6   : > { %4951 = vst [vmem:[#allocation11_spill] sm:$0xff] %v4057_v0  ;;  %v1388_v5 = vadd.f32 %v3362_v4, %v3833_v62  ;;  %v1379_v6 = vpop.f32.mrb[89].mxu0 }
 0x1a7   : > { %4952 = vst [vmem:[#allocation12_spill] sm:$0xff] %v4059_v1  ;;  %v1380_v7 = vadd.f32 %v3833_v62, %v1379_v6  ;;  %v3363_v8 = vpop.f32.mrb[90].mxu0 }
 0x1a8   : > { %v1391_v9 = vadd.f32 %v3363_v8, %v3833_v62  ;;  %v1382_v24 = vpop.f32.mrb[91].mxu0  ;;  %v1628_v28 = vmax.f32 %v1388_v5, 0.0 }
 0x1a9   : > { %v1383_v27 = vadd.f32 %v3833_v62, %v1382_v24  ;;  %v1626_v32 = vmax.f32 %v1380_v7, 0.0 }
 0x1aa   : > { %v1629_v31 = vmax.f32 %v1391_v9, 0.0 }
 0x1ab   : > { %v1627_v37 = vmax.f32 %v1383_v27, 0.0 }
 0x1ac   : > { %v4065_v40 = vpack.c.bf16 %v1629_v31, %v1628_v28 }
 0x1ad   : > { %v4067_v41 = vpack.c.bf16 %v1627_v37, %v1626_v32  ;;  %v3366_v42 = vpop.f32.mrb[92].mxu0 }
 0x1ae   : > { %4953 = vst [vmem:[#allocation13_spill] sm:$0xff] %v4065_v40  ;;  %v1404_v43 = vadd.f32 %v3366_v42, %v3833_v62  ;;  %v1395_v54 = vpop.f32.mrb[93].mxu0 }
 0x1af   : > { %4954 = vst [vmem:[#allocation14_spill] sm:$0xff] %v4067_v41  ;;  %v1396_v59 = vadd.f32 %v3833_v62, %v1395_v54  ;;  %v3367_v60 = vpop.f32.mrb[94].mxu0 }
 0x1b0   : > { %v1407_v4 = vadd.f32 %v3367_v60, %v3833_v62  ;;  %v1398_v6 = vpop.f32.mrb[95].mxu0  ;;  %v1632_v5 = vmax.f32 %v1404_v43, 0.0 }
 0x1b1   : > { %v1399_v8 = vadd.f32 %v3833_v62, %v1398_v6  ;;  %v1630_v7 = vmax.f32 %v1396_v59, 0.0 }
 0x1b2   : > { %v1633_v9 = vmax.f32 %v1407_v4, 0.0 }
 0x1b3   : > { %v1631_v24 = vmax.f32 %v1399_v8, 0.0 }
 0x1b4   : > { %v4073_v27 = vpack.c.bf16 %v1633_v9, %v1632_v5 }
 0x1b5   : > { %v4075_v28 = vpack.c.bf16 %v1631_v24, %v1630_v7  ;;  %v3370_v31 = vpop.f32.mrb[96].mxu0 }
 0x1b6   : > { %4955 = vst [vmem:[#allocation15_spill] sm:$0xff] %v4073_v27  ;;  %v1420_v32 = vadd.f32 %v3370_v31, %v3833_v62  ;;  %v1411_v37 = vpop.f32.mrb[97].mxu0 }
 0x1b7   : > { %4956 = vst [vmem:[#allocation16_spill] sm:$0xff] %v4075_v28  ;;  %v1412_v42 = vadd.f32 %v3833_v62, %v1411_v37  ;;  %v3371_v54 = vpop.f32.mrb[98].mxu0 }
 0x1b8   : > { %v1423_v60 = vadd.f32 %v3371_v54, %v3833_v62  ;;  %v1414_v40 = vpop.f32.mrb[99].mxu0  ;;  %v1636_v43 = vmax.f32 %v1420_v32, 0.0 }
 0x1b9   : > { %v1415_v6 = vadd.f32 %v3833_v62, %v1414_v40  ;;  %v1634_v59 = vmax.f32 %v1412_v42, 0.0 }
 0x1ba   : > { %v1637_v4 = vmax.f32 %v1423_v60, 0.0 }
 0x1bb   : > { %v1635_v8 = vmax.f32 %v1415_v6, 0.0 }
 0x1bc   : > { %v4081_v5 = vpack.c.bf16 %v1637_v4, %v1636_v43 }
 0x1bd   : > { %v4083_v9 = vpack.c.bf16 %v1635_v8, %v1634_v59  ;;  %v3374_v7 = vpop.f32.mrb[100].mxu0 }
 0x1be   : > { %4957 = vst [vmem:[#allocation17_spill] sm:$0xff] %v4081_v5  ;;  %v1436_v24 = vadd.f32 %v3374_v7, %v3833_v62  ;;  %v1427_v31 = vpop.f32.mrb[101].mxu0 }
 0x1bf   : > { %4958 = vst [vmem:[#allocation18_spill] sm:$0xff] %v4083_v9  ;;  %v1428_v37 = vadd.f32 %v3833_v62, %v1427_v31  ;;  %v3375_v27 = vpop.f32.mrb[102].mxu0 }
 0x1c0   : > { %v1439_v54 = vadd.f32 %v3375_v27, %v3833_v62  ;;  %v1430_v28 = vpop.f32.mrb[103].mxu0  ;;  %v1640_v32 = vmax.f32 %v1436_v24, 0.0 }
 0x1c1   : > { %v1431_v40 = vadd.f32 %v3833_v62, %v1430_v28  ;;  %v1638_v42 = vmax.f32 %v1428_v37, 0.0 }
 0x1c2   : > { %v1641_v60 = vmax.f32 %v1439_v54, 0.0 }
 0x1c3   : > { %v1639_v6 = vmax.f32 %v1431_v40, 0.0 }
 0x1c4   : > { %v4089_v43 = vpack.c.bf16 %v1641_v60, %v1640_v32 }
 0x1c5   : > { %v4091_v4 = vpack.c.bf16 %v1639_v6, %v1638_v42  ;;  %v3378_v59 = vpop.f32.mrb[104].mxu0 }
 0x1c6   : > { %4959 = vst [vmem:[#allocation19_spill] sm:$0xff] %v4089_v43  ;;  %v1452_v8 = vadd.f32 %v3378_v59, %v3833_v62  ;;  %v1443_v7 = vpop.f32.mrb[105].mxu0 }
 0x1c7   : > { %4960 = vst [vmem:[#allocation20_spill] sm:$0xff] %v4091_v4  ;;  %v1444_v31 = vadd.f32 %v3833_v62, %v1443_v7  ;;  %v3379_v41 = vpop.f32.mrb[106].mxu0 }
 0x1c8   : > { %v1455_v27 = vadd.f32 %v3379_v41, %v3833_v62  ;;  %v1446_v5 = vpop.f32.mrb[107].mxu0  ;;  %v1644_v24 = vmax.f32 %v1452_v8, 0.0 }
 0x1c9   : > { %v1447_v28 = vadd.f32 %v3833_v62, %v1446_v5  ;;  %v1642_v37 = vmax.f32 %v1444_v31, 0.0 }
 0x1ca   : > { %v1645_v54 = vmax.f32 %v1455_v27, 0.0 }
 0x1cb   : > { %v1643_v40 = vmax.f32 %v1447_v28, 0.0 }
 0x1cc   : > { %v4097_v32 = vpack.c.bf16 %v1645_v54, %v1644_v24 }
 0x1cd   : > { %v4099_v60 = vpack.c.bf16 %v1643_v40, %v1642_v37  ;;  %v3382_v42 = vpop.f32.mrb[108].mxu0 }
 0x1ce   : > { %4961 = vst [vmem:[#allocation21_spill] sm:$0xff] %v4097_v32  ;;  %v1468_v6 = vadd.f32 %v3382_v42, %v3833_v62  ;;  %v1459_v59 = vpop.f32.mrb[109].mxu0 }
 0x1cf   : > { %4962 = vst [vmem:[#allocation22_spill] sm:$0xff] %v4099_v60  ;;  %v1460_v7 = vadd.f32 %v3833_v62, %v1459_v59  ;;  %v3383_v43 = vpop.f32.mrb[110].mxu0 }
 0x1d0   : > { %v1471_v41 = vadd.f32 %v3383_v43, %v3833_v62  ;;  %v1462_v4 = vpop.f32.mrb[111].mxu0  ;;  %v1648_v8 = vmax.f32 %v1468_v6, 0.0 }
 0x1d1   : > { %v1463_v5 = vadd.f32 %v3833_v62, %v1462_v4  ;;  %v1646_v31 = vmax.f32 %v1460_v7, 0.0 }
 0x1d2   : > { %v1649_v27 = vmax.f32 %v1471_v41, 0.0 }
 0x1d3   : > { %v1647_v28 = vmax.f32 %v1463_v5, 0.0 }
 0x1d4   : > { %v4105_v24 = vpack.c.bf16 %v1649_v27, %v1648_v8 }
 0x1d5   : > { %v4107_v54 = vpack.c.bf16 %v1647_v28, %v1646_v31  ;;  %v3386_v37 = vpop.f32.mrb[112].mxu0 }
 0x1d6   : > { %4963 = vst [vmem:[#allocation23_spill] sm:$0xff] %v4105_v24  ;;  %v1484_v40 = vadd.f32 %v3386_v37, %v3833_v62  ;;  %v1475_v42 = vpop.f32.mrb[113].mxu0 }
 0x1d7   : > { %4964 = vst [vmem:[#allocation24_spill] sm:$0xff] %v4107_v54  ;;  %v1476_v59 = vadd.f32 %v3833_v62, %v1475_v42  ;;  %v3387_v32 = vpop.f32.mrb[114].mxu0 }
 0x1d8   : > { %v1487_v43 = vadd.f32 %v3387_v32, %v3833_v62  ;;  %v1478_v60 = vpop.f32.mrb[115].mxu0  ;;  %v1652_v6 = vmax.f32 %v1484_v40, 0.0 }
 0x1d9   : > { %v1479_v4 = vadd.f32 %v3833_v62, %v1478_v60  ;;  %v1650_v7 = vmax.f32 %v1476_v59, 0.0 }
 0x1da   : > { %v1653_v41 = vmax.f32 %v1487_v43, 0.0 }
 0x1db   : > { %v1651_v5 = vmax.f32 %v1479_v4, 0.0 }
 0x1dc   : > { %v4113_v8 = vpack.c.bf16 %v1653_v41, %v1652_v6 }
 0x1dd   : > { %v4115_v27 = vpack.c.bf16 %v1651_v5, %v1650_v7  ;;  %v3390_v31 = vpop.f32.mrb[116].mxu0 }
 0x1de   : > { %4965 = vst [vmem:[#allocation25_spill] sm:$0xff] %v4113_v8  ;;  %v1500_v28 = vadd.f32 %v3390_v31, %v3833_v62  ;;  %v1491_v37 = vpop.f32.mrb[117].mxu0 }
 0x1df   : > { %4966 = vst [vmem:[#allocation26_spill] sm:$0xff] %v4115_v27  ;;  %v1492_v42 = vadd.f32 %v3833_v62, %v1491_v37  ;;  %v3391_v24 = vpop.f32.mrb[118].mxu0 }
 0x1e0   : > { %v1503_v32 = vadd.f32 %v3391_v24, %v3833_v62  ;;  %v1494_v54 = vpop.f32.mrb[119].mxu0  ;;  %v1656_v40 = vmax.f32 %v1500_v28, 0.0 }
 0x1e1   : > { %v1495_v60 = vadd.f32 %v3833_v62, %v1494_v54  ;;  %v1654_v59 = vmax.f32 %v1492_v42, 0.0 }
 0x1e2   : > { %v1657_v43 = vmax.f32 %v1503_v32, 0.0 }
 0x1e3   : > { %v1655_v4 = vmax.f32 %v1495_v60, 0.0 }
 0x1e4   : > { %v4121_v6 = vpack.c.bf16 %v1657_v43, %v1656_v40  ;;  %v3644_v43 = vmov 1966171168  }
 0x1e5   : > { %v4123_v41 = vpack.c.bf16 %v1655_v4, %v1654_v59  ;;  %v3394_v7 = vpop.f32.mrb[120].mxu0  ;;  %v1819_v59 = vunpack.c.l.s4 %v3644_v43  ;;  %v1821_v4 = vlaneseq }
 0x1e6   : > { %4967 = vst [vmem:[#allocation27_spill] sm:$0xff] %v4121_v6  ;;  %v1516_v5 = vadd.f32 %v3394_v7, %v3833_v62  ;;  %v1507_v31 = vpop.f32.mrb[121].mxu0 }
 0x1e7   : > { %4968 = vst [vmem:[#allocation28_spill] sm:$0xff] %v4123_v41  ;;  %v1508_v37 = vadd.f32 %v3833_v62, %v1507_v31  ;;  %v3395_v8 = vpop.f32.mrb[122].mxu0 }
 0x1e8   : > { %v1519_v24 = vadd.f32 %v3395_v8, %v3833_v62  ;;  %v1510_v27 = vpop.f32.mrb[123].mxu0  ;;  %v1660_v28 = vmax.f32 %v1516_v5, 0.0 }
 0x1e9   : > { %v1511_v54 = vadd.f32 %v3833_v62, %v1510_v27  ;;  %v1658_v42 = vmax.f32 %v1508_v37, 0.0  ;;  %v1822_v37 = vshrl.u32 %v1821_v4, 7 }
 0x1ea   : > { %v1661_v32 = vmax.f32 %v1519_v24, 0.0  ;;  %v1820_v24 = vunpack.c.0.s8 %v1819_v59 }
 0x1eb   : > { %v1659_v60 = vmax.f32 %v1511_v54, 0.0  ;;  %v4141_v4 = vsub.s32 0, %v1822_v37 }
 0x1ec   : > { %v4129_v40 = vpack.c.bf16 %v1661_v32, %v1660_v28 }
 0x1ed   : > { %v4131_v6 = vpack.c.bf16 %v1659_v60, %v1658_v42  ;;  %v3398_v7 = vpop.f32.mrb[124].mxu0  ;;  %v1823_v60 = vsub.s32 %v1820_v24, %v1822_v37 }
 0x1ee   : > { %4969 = vst [vmem:[#allocation29_spill] sm:$0xff] %v4129_v40  ;;  %v1532_v31 = vadd.f32 %v3398_v7, %v3833_v62  ;;  %v1523_v41 = vpop.f32.mrb[125].mxu0 }
 0x1ef   : > { %4970 = vst [vmem:[#allocation30_spill] sm:$0xff] %v4131_v6  ;;  %v1524_v8 = vadd.f32 %v3833_v62, %v1523_v41  ;;  %v3399_v9 = vpop.f32.mrb[126].mxu0 }
 0x1f0   : > { %v1535_v27 = vadd.f32 %v3399_v9, %v3833_v62  ;;  %v1526_v5 = vpop.f32.mrb[127].mxu0  ;;  %v1664_v28 = vmax.f32 %v1532_v31, 0.0 }
 0x1f1   : > { %v1527_v54 = vadd.f32 %v3833_v62, %v1526_v5  ;;  %v1662_v43 = vmax.f32 %v1524_v8, 0.0 }
 0x1f2   : > { %v1665_v32 = vmax.f32 %v1535_v27, 0.0 }
 0x1f3   : > { %v1663_v40 = vmax.f32 %v1527_v54, 0.0 }
 0x1f4   : > { %v4137_v42 = vpack.c.bf16 %v1665_v32, %v1664_v28 }
 0x1f5   : > { %v4139_v6 = vpack.c.bf16 %v1663_v40, %v1662_v43  ;;  %v3404_v7 = vpop.f32.mrb[128].mxu0 }
 0x1f6   : > { %4971 = vst [vmem:[#allocation31_spill] sm:$0xff] %v4137_v42  ;;  %v3098_v0 = vpack.c.bf16 %v3404_v7, %v3404_v7  ;;  %v1742_v41 = vpop.f32.mrb[129].mxu0 }
 0x1f7   : > { %4972 = vst [vmem:[#allocation32_spill] sm:$0xff] %v4139_v6  ;;  %v1815_v1 = vpack.c.bf16 %v3404_v7, %v1742_v41 }
 0x1f8   : > { %v1831_v25 = vrot.slane %v3098_v0, %v1823_v60 }
 0x1f9   : > { %v1824_v9 = vrot.slane %v1815_v1, %v1823_v60 }
 0x1fa   : > { %v1833_v26 = vcombine.high %v1831_v25, %v1831_v25  ;;  %v1847_v59 = vrot.slane %v1831_v25, %v1823_v60 }
 0x1fb   : > { %v1832_v62 = vcombine.high %v1824_v9, %v1824_v9  ;;  %v1840_v31 = vrot.slane %v1824_v9, %v1823_v60 }
 0x1fc   : > { %v1861_v27 = vrot.slane %v1833_v26, %v1823_v60  ;;  %v1863_v8 = vcombine.high %v1847_v59, %v1847_v59  ;;  %v1875_v5 = vunpack.i.h.s16 %v1847_v59  ;;  %v3103_v54 = vpack.i.b16 %v1847_v59, %v1847_v59 }
 0x1fd   : > { %v1854_v28 = vrot.slane %v1832_v62, %v1823_v60  ;;  %v1862_v24 = vcombine.high %v1840_v31, %v1840_v31  ;;  %v1867_v40 = vunpack.i.h.s16 %v1840_v31  ;;  %v3099_v32 = vpack.i.b16 %v1840_v31, %v1840_v31 }
 0x1fe   : > { %v4143_v43 = vcombine.high %v1861_v27, %v1861_v27  ;;  %v1877_v42 = vunpack.i.h.s16 %v1861_v27  ;;  %v1879_v7 = vunpack.i.h.s16 %v1863_v8  ;;  %v1891_v0 = vpack.i.b16 %v1875_v5, %v1875_v5 }
 0x1ff   : > { %v3104_v1 = vpack.i.b16 %v1861_v27, %v1861_v27  ;;  %v3105_v41 = vpack.i.b16 %v1863_v8, %v1863_v8  ;;  %v4146_v25 = vrot.slane %v3103_v54, %v4141_v4  ;;  %v1864_v37 = vcombine.high %v1854_v28, %v1854_v28 }
 0x200   : > { %v1881_v26 = vunpack.i.h.s16 %v4143_v43  ;;  %v4149_v9 = vpack.i.b16 %v1877_v42, %v1877_v42  ;;  %v4151_v59 = vpack.i.b16 %v1879_v7, %v1879_v7  ;;  %v4156_v62 = vrot.slane %v1891_v0, %v4141_v4 }
 0x201   : > { %v4159_v31 = vrot.slane %v3104_v1, %v4141_v4  ;;  %v4162_v27 = vrot.slane %v3105_v41, %v4141_v4  ;;  %v1869_v42 = vunpack.i.h.s16 %v1854_v28  ;;  %v1871_v54 = vunpack.i.h.s16 %v1862_v24 }
 0x202   : > { %v4166_v5 = vpack.i.b16 %v1881_v26, %v1881_v26  ;;  %v1873_v7 = vunpack.i.h.s16 %v1864_v37  ;;  %v1883_v6 = vpack.i.b16 %v1867_v40, %v1867_v40  ;;  %v3100_v0 = vpack.i.b16 %v1854_v28, %v1854_v28 }
 0x203   : > { %v3101_v52 = vpack.i.b16 %v1862_v24, %v1862_v24  ;;  %v1885_v53 = vpack.i.b16 %v1869_v42, %v1869_v42  ;;  %v1887_v1 = vpack.i.b16 %v1871_v54, %v1871_v54  ;;  %v3102_v18 = vpack.i.b16 %v1864_v37, %v1864_v37 }
 0x204   : > { %v1889_v19 = vpack.i.b16 %v1873_v7, %v1873_v7  ;;  %v1905_v41 = vrot.slane %v1883_v6, %v4141_v4  ;;  %v1909_v44 = vrot.slane %v3100_v0, %v4141_v4  ;;  %v1901_v8 = vrot.slane %v3099_v32, %v4141_v4 }
 0x205   : > { %v1917_v26 = vrot.slane %v3101_v52, %v4141_v4  ;;  %v1913_v47 = vrot.slane %v1885_v53, %v4141_v4  ;;  %v1921_v10 = vrot.slane %v1887_v1, %v4141_v4  ;;  %v1925_v40 = vrot.slane %v3102_v18, %v4141_v4 }
 0x206   : > { %v1929_v28 = vrot.slane %v1889_v19, %v4141_v4  ;;  %v1970_v24 = vpack.i.b16 %v1905_v41, %v1905_v41  ;;  %v1977_v42 = vpack.i.b16 %v1909_v44, %v1909_v44  ;;  %v1963_v54 = vpack.i.b16 %v1901_v8, %v1901_v8 }
 0x207   : > { %v1991_v37 = vpack.i.b16 %v1917_v26, %v1917_v26  ;;  %v1984_v7 = vpack.i.b16 %v1913_v47, %v1913_v47  ;;  %v1998_v6 = vpack.i.b16 %v1921_v10, %v1921_v10  ;;  %v2005_v60 = vpack.i.b16 %v1925_v40, %v1925_v40 }
 0x208   : > { %v2012_v0 = vpack.i.b16 %v1929_v28, %v1929_v28  ;;  %v1968_v52 = vrot.slane %v1963_v54, %v4141_v4  ;;  %v4180_v32 = vrot.slane %v1970_v24, %v4141_v4  ;;  %v4183_v53 = vrot.slane %v1977_v42, %v4141_v4  ;;  %v4985_v24 = vld [vmem:[#allocation10_spill] sm:$0xff]  ;;  %v4987_v28 = vld [vmem:[#allocation12_spill] sm:$0xff] }
 0x209   : > { %v4186_v18 = vrot.slane %v1991_v37, %v4141_v4  ;;  %v4189_v19 = vrot.slane %v1984_v7, %v4141_v4  ;;  %v4192_v44 = vrot.slane %v1998_v6, %v4141_v4  ;;  %v4195_v10 = vrot.slane %v2005_v60, %v4141_v4  ;;  %v4978_v37 = vld [vmem:[#allocation4_spill] sm:$0xff]  ;;  %v4986_v60 = vld [vmem:[#allocation9_spill] sm:$0xff] }
 0x20a   : > { %v4198_v47 = vrot.slane %v2012_v0, %v4141_v4  ;;  %v2074_v8 = vmul.bf16 %v1968_v52, %v3846_v15  ;;  %v2075_v1 = vmul.bf16 %v1968_v52, %v3844_v13  ;;  %v2076_v41 = vmul.bf16 %v1968_v52, %v3858_v30 }
 0x20b   : > { %v2077_v26 = vmul.bf16 %v1968_v52, %v3856_v29  ;;  %v2078_v40 = vmul.bf16 %v4180_v32, %v3872_v46  ;;  %v4973_v0 = vpack.i.b16 %v4146_v25, %v4146_v25  ;;  %v1945_v7 = vrot.slane %v4149_v9, %v4141_v4  ;;  %v5009_v46 = vld [vmem:[#allocation32_spill] sm:$0xff] }
 0x20c   : > { %3421 = vmatprep.mubr.bf16.mxu1 %v2074_v8  ;;  %v4974_v8 = vpack.i.b16 %v4156_v62, %v4156_v62  ;;  %v2047_v6 = vpack.i.b16 %v4162_v27, %v4162_v27  ;;  %v1953_v25 = vrot.slane %v4151_v59, %v4141_v4  ;;  %v1961_v62 = vrot.slane %v4166_v5, %v4141_v4 }
 0x20d   : > { %3422 = vmatmul.mubr.bf16.vlgmr.msra.gmra.mrb[0].mxu1 %v2075_v1  ;;  %v4264_v52 = vrot.slane %v4973_v0, %v4141_v4  ;;  %v4976_v0 = vpack.i.b16 %v4143_v43, %v4143_v43  ;;  %v2040_v27 = vpack.i.b16 %v1945_v7, %v1945_v7 }
 0x20e   : > { %3425 = vmatprep.mubr.bf16.mxu1 %v2076_v41  ;;  %v4270_v1 = vrot.slane %v4974_v8, %v4141_v4  ;;  %v2033_v41 = vpack.i.b16 %v4159_v31, %v4159_v31  ;;  %v4977_v8 = vld [vmem:[#allocation2_spill] sm:$0xff]  ;;  %v4306_v59 = vrot.slane %v2047_v6, %v4141_v4  ;;  %v2068_v43 = vpack.i.b16 %v1961_v62, %v1961_v62  ;;  %v4994_v6 = vld [vmem:[#allocation13_spill] sm:$0xff]  ;;  %v4996_v31 = vld [vmem:[#allocation15_spill] sm:$0xff] }
 0x20f   : > { %v1957_v54 = vrot.slane %v4976_v0, %v4141_v4  ;;  %v4317_v7 = vrot.slane %v2040_v27, %v4141_v4  ;;  %v5014_v0 = vmul.bf16 %v4183_v53, %v3907_v34  ;;  %v5019_v34 = vmul.bf16 %v4189_v19, %v3921_v2 }
 0x210   : > { %4975 = vst [vmem:[#allocation33_spill] sm:$0xff] %v4270_v1  ;;  %v4303_v9 = vrot.slane %v2033_v41, %v4141_v4  ;;  %4984 = vst [vmem:[#allocation2_spill] sm:$0xff] %v4306_v59  ;;  %v4334_v27 = vrot.slane %v2068_v43, %v4141_v4  ;;  %v5011_v1 = vmul.bf16 %v4180_v32, %v3882_v61 }
 0x211   : > { %v2061_v13 = vpack.i.b16 %v1957_v54, %v1957_v54  ;;  %v2119_v62 = vmul.bf16 %v4317_v7, %v4994_v6  ;;  %v4995_v54 = vld [vmem:[#allocation16_spill] sm:$0xff]  ;;  %v5001_v6 = vmul.bf16 %v4180_v32, %v3870_v45  ;;  %v5016_v61 = vmul.bf16 %v4189_v19, %v3915_v50 }
 0x212   : > { %v2114_v30 = vmul.bf16 %v4303_v9, %v4985_v24  ;;  %v2115_v29 = vmul.bf16 %v4303_v9, %v4986_v60  ;;  %v2116_v15 = vmul.bf16 %v4303_v9, %v4987_v28  ;;  %v2120_v24 = vmul.bf16 %v4317_v7, %v4995_v54 }
 0x213   : > { %v2121_v60 = vmul.bf16 %v4317_v7, %v4996_v31  ;;  %v5015_v54 = vmul.bf16 %v4183_v53, %v3905_v33  ;;  %v5020_v33 = vmul.bf16 %v4186_v18, %v3931_v21  ;;  %v5021_v50 = vmul.bf16 %v4186_v18, %v3929_v20 }
 0x214   : > { %v5024_v2 = vmul.bf16 %v4192_v44, %v3947_v57  ;;  %v5025_v21 = vmul.bf16 %v4192_v44, %v3945_v56  ;;  %v5026_v20 = vmul.bf16 %v4192_v44, %v3955_v12  ;;  %v5029_v57 = vmul.bf16 %v4195_v10, %v3961_v35 }
 0x215   : > { %3426 = vmatmul.mubr.bf16.gmra.mrb[4].mxu1 %v2077_v26  ;;  %v2054_v26 = vpack.i.b16 %v1953_v25, %v1953_v25  ;;  %v5030_v56 = vmul.bf16 %v4195_v10, %v3971_v58  ;;  %v5031_v12 = vmul.bf16 %v4195_v10, %v3969_v55  ;;  %v5034_v35 = vmul.bf16 %v4198_v47, %v3999_v51 }
 0x216   : > { %3429 = vmatprep.mubr.bf16.mxu1 %v2078_v40  ;;  %v4988_v40 = vld [vmem:[#allocation11_spill] sm:$0xff]  ;;  %v5035_v58 = vmul.bf16 %v4198_v47, %v3997_v48  ;;  %v5036_v55 = vmul.bf16 %v4264_v52, %v4010_v14 }
 0x217   : > { %v2117_v41 = vmul.bf16 %v4303_v9, %v4988_v40  ;;  %v4328_v28 = vrot.slane %v2054_v26, %v4141_v4  ;;  %v4331_v9 = vrot.slane %v2061_v13, %v4141_v4  ;;  %v4993_v40 = vld [vmem:[#allocation14_spill] sm:$0xff]  ;;  %v4998_v13 = vld [vmem:[#allocation21_spill] sm:$0xff]  ;;  %v4999_v4 = vld [vmem:[#allocation24_spill] sm:$0xff] }
 0x218   : > { %v2118_v25 = vmul.bf16 %v4317_v7, %v4993_v40  ;;  %v4997_v26 = vld [vmem:[#allocation22_spill] sm:$0xff]  ;;  %v5010_v7 = vld [vmem:[#allocation31_spill] sm:$0xff] }
 0x219   : > { %v2126_v5 = vmul.bf16 %v4328_v28, %v4997_v26  ;;  %v2127_v59 = vmul.bf16 %v4328_v28, %v4998_v13  ;;  %v2128_v43 = vmul.bf16 %v4328_v28, %v4999_v4  ;;  %v5004_v26 = vld [vmem:[#allocation28_spill] sm:$0xff]  ;;  %v5005_v13 = vld [vmem:[#allocation27_spill] sm:$0xff]  ;;  %v5006_v4 = vmul.bf16 %v4180_v32, %v3884_v63  ;;  %v5007_v40 = vld [vmem:[#allocation30_spill] sm:$0xff] }
 0x21a   : > { %v2133_v42 = vmul.bf16 %v4331_v9, %v5005_v13  ;;  %v2134_v45 = vmul.bf16 %v4334_v27, %v5007_v40  ;;  %v2137_v31 = vmul.bf16 %v4334_v27, %v5010_v7  ;;  %v5012_v63 = vmul.bf16 %v4183_v53, %v3898_v17  ;;  %v5039_v32 = vld [vmem:[#allocation3_spill] sm:$0xff] }
 0x21b   : > { %v5017_v17 = vmul.bf16 %v4189_v19, %v3913_v49  ;;  %v5022_v49 = vmul.bf16 %v4186_v18, %v3939_v39  ;;  %v5027_v39 = vmul.bf16 %v4192_v44, %v3953_v11  ;;  %v5032_v11 = vmul.bf16 %v4198_v47, %v3985_v23  ;;  %v5046_v44 = vld [vmem:[#allocation8_spill] sm:$0xff] }
 0x21c   : > { %v5037_v23 = vmul.bf16 %v4264_v52, %v4977_v8  ;;  %v5040_v51 = vmul.bf16 %v4264_v52, %v5039_v32 }
 0x21d   : > { %3430 = vmatmul.mubr.bf16.gmra.mrb[8].mxu1 %v5001_v6  ;;  %v5008_v6 = vld [vmem:[#allocation29_spill] sm:$0xff] }
 0x21e   : > { %3433 = vmatprep.mubr.bf16.mxu1 %v5006_v4  ;;  %v5013_v4 = vmul.bf16 %v4183_v53, %v3896_v16  ;;  %v5018_v16 = vmul.bf16 %v4189_v19, %v3923_v3  ;;  %v5023_v3 = vmul.bf16 %v4186_v18, %v3937_v38  ;;  %v5028_v38 = vmul.bf16 %v4195_v10, %v3963_v36  ;;  %v5041_v53 = vld [vmem:[#allocation33_spill] sm:$0xff]  ;;  %v5042_v18 = vld [vmem:[#allocation6_spill] sm:$0xff] }
 0x21f   : > { %v5033_v36 = vmul.bf16 %v4198_v47, %v3983_v22  ;;  %v5038_v22 = vmul.bf16 %v4264_v52, %v4978_v37  ;;  %v5043_v48 = vmul.bf16 %v5041_v53, %v5042_v18  ;;  %v5044_v19 = vld [vmem:[#allocation5_spill] sm:$0xff]  ;;  %v5047_v10 = vmul.bf16 %v5041_v53, %v5046_v44  ;;  %v5048_v47 = vld [vmem:[#allocation7_spill] sm:$0xff]  ;;  %v5050_v52 = vld [vmem:[#allocation2_spill] sm:$0xff] }
 0x220   : > { %v5045_v14 = vmul.bf16 %v5041_v53, %v5044_v19  ;;  %v5049_v37 = vmul.bf16 %v5041_v53, %v5048_v47  ;;  %v5066_v13 = vmul.bf16 %v4334_v27, %v5008_v6 }
 0x225   : > { %3434 = vmatmul.mubr.bf16.gmra.mrb[12].mxu1 %v5011_v1  ;;  %v5051_v1 = vld [vmem:[#allocation18_spill] sm:$0xff] }
 0x226   : > { %3437 = vmatprep.mubr.bf16.mxu1 %v5012_v63  ;;  %v5052_v8 = vmul.bf16 %v5050_v52, %v5051_v1  ;;  %v5055_v63 = vld [vmem:[#allocation20_spill] sm:$0xff] }
 0x22d   : > { %3438 = vmatmul.mubr.bf16.gmra.mrb[16].mxu1 %v5013_v4  ;;  %v5056_v4 = vmul.bf16 %v5050_v52, %v5055_v63 }
 0x22e   : > { %3441 = vmatprep.mubr.bf16.mxu1 %v5014_v0  ;;  %v5053_v0 = vld [vmem:[#allocation17_spill] sm:$0xff] }
 0x235   : > { %3442 = vmatmul.mubr.bf16.gmra.mrb[20].mxu1 %v5015_v54  ;;  %v5054_v54 = vmul.bf16 %v5050_v52, %v5053_v0 }
 0x236   : > { %3445 = vmatprep.mubr.bf16.mxu1 %v5016_v61  ;;  %v5059_v61 = vld [vmem:[#allocation23_spill] sm:$0xff] }
 0x23d   : > { %3446 = vmatmul.mubr.bf16.gmra.mrb[24].mxu1 %v5017_v17  ;;  %v5060_v17 = vmul.bf16 %v4328_v28, %v5059_v61 }
 0x23e   : > { %3449 = vmatprep.mubr.bf16.mxu1 %v5018_v16  ;;  %v5061_v16 = vld [vmem:[#allocation26_spill] sm:$0xff] }
 0x245   : > { %3450 = vmatmul.mubr.bf16.gmra.mrb[28].mxu1 %v5019_v34  ;;  %v5062_v34 = vmul.bf16 %v4331_v9, %v5061_v16 }
 0x246   : > { %3453 = vmatprep.mubr.bf16.mxu1 %v5020_v33 }
 0x24d   : > { %3454 = vmatmul.mubr.bf16.gmra.mrb[32].mxu1 %v5021_v50 }
 0x24e   : > { %3457 = vmatprep.mubr.bf16.mxu1 %v5022_v49 }
 0x255   : > { %3458 = vmatmul.mubr.bf16.gmra.mrb[36].mxu1 %v5023_v3 }
 0x256   : > { %3461 = vmatprep.mubr.bf16.mxu1 %v5024_v2 }
 0x25d   : > { %3462 = vmatmul.mubr.bf16.gmra.mrb[40].mxu1 %v5025_v21 }
 0x25e   : > { %3465 = vmatprep.mubr.bf16.mxu1 %v5026_v20 }
 0x265   : > { %3466 = vmatmul.mubr.bf16.gmra.mrb[44].mxu1 %v5027_v39  ;;  %v5063_v39 = vld [vmem:[#allocation25_spill] sm:$0xff] }
 0x266   : > { %3469 = vmatprep.mubr.bf16.mxu1 %v5028_v38  ;;  %v5064_v38 = vmul.bf16 %v4331_v9, %v5063_v39 }
 0x26d   : > { %3470 = vmatmul.mubr.bf16.gmra.mrb[48].mxu1 %v5029_v57  ;;  %v5065_v57 = vmul.bf16 %v4331_v9, %v5004_v26 }
 0x26e   : > { %3473 = vmatprep.mubr.bf16.mxu1 %v5030_v56 }
 0x275   : > { %3474 = vmatmul.mubr.bf16.gmra.mrb[52].mxu1 %v5031_v12 }
 0x276   : > { %3477 = vmatprep.mubr.bf16.mxu1 %v5032_v11 }
 0x27d   : > { %3478 = vmatmul.mubr.bf16.gmra.mrb[56].mxu1 %v5033_v36 }
 0x27e   : > { %3481 = vmatprep.mubr.bf16.mxu1 %v5034_v35 }
 0x285   : > { %3482 = vmatmul.mubr.bf16.gmra.mrb[60].mxu1 %v5035_v58 }
 0x286   : > { %3485 = vmatprep.mubr.bf16.mxu1 %v5036_v55 }
 0x28d   : > { %3486 = vmatmul.mubr.bf16.gmra.mrb[64].mxu1 %v5037_v23 }
 0x28e   : > { %3489 = vmatprep.mubr.bf16.mxu1 %v5038_v22 }
 0x295   : > { %3490 = vmatmul.mubr.bf16.gmra.mrb[68].mxu1 %v5040_v51 }
 0x296   : > { %3493 = vmatprep.mubr.bf16.mxu1 %v5043_v48 }
 0x29d   : > { %3494 = vmatmul.mubr.bf16.gmra.mrb[72].mxu1 %v5045_v14 }
 0x29e   : > { %3497 = vmatprep.mubr.bf16.mxu1 %v5047_v10 }
 0x2a5   : > { %3498 = vmatmul.mubr.bf16.gmra.mrb[76].mxu1 %v5049_v37 }
 0x2a6   : > { %3501 = vmatprep.mubr.bf16.mxu1 %v2114_v30  ;;  %v4489_v30 = vld [vmem:[%s4916_s6] ss:$0 sm:$0xff] }
 0x2ad   : > { %3502 = vmatmul.mubr.bf16.gmra.mrb[80].mxu1 %v2115_v29  ;;  %v5057_v29 = vld [vmem:[#allocation19_spill] sm:$0xff] }
 0x2ae   : > { %3505 = vmatprep.mubr.bf16.mxu1 %v2116_v15  ;;  %v5058_v15 = vmul.bf16 %v5050_v52, %v5057_v29 }
 0x2b5   : > { %3506 = vmatmul.mubr.bf16.gmra.mrb[84].mxu1 %v2117_v41 }
 0x2b6   : > { %3509 = vmatprep.mubr.bf16.mxu1 %v2118_v25 }
 0x2bd   : > { %3510 = vmatmul.mubr.bf16.gmra.mrb[88].mxu1 %v2119_v62 }
 0x2be   : > { %3513 = vmatprep.mubr.bf16.mxu1 %v2120_v24 }
 0x2c5   : > { %3514 = vmatmul.mubr.bf16.gmra.mrb[92].mxu1 %v2121_v60 }
 0x2c6   : > { %3517 = vmatprep.mubr.bf16.mxu1 %v5052_v8 }
 0x2cd   : > { %3518 = vmatmul.mubr.bf16.gmra.mrb[96].mxu1 %v5054_v54 }
 0x2ce   : > { %3521 = vmatprep.mubr.bf16.mxu1 %v5056_v4 }
 0x2d5   : > { %3522 = vmatmul.mubr.bf16.gmra.mrb[100].mxu1 %v5058_v15 }
 0x2d6   : > { %3525 = vmatprep.mubr.bf16.mxu1 %v2126_v5 }
 0x2dd   : > { %3526 = vmatmul.mubr.bf16.gmra.mrb[104].mxu1 %v2127_v59 }
 0x2de   : > { %3529 = vmatprep.mubr.bf16.mxu1 %v2128_v43 }
 0x2e0   : > { %v3423_v41 = vpop.f32.mrb[0].mxu1 }
 0x2e1   : > { %v2252_v59 = vadd.f32 %v3423_v41, %v4489_v30  ;;  %v2243_v5 = vpop.f32.mrb[1].mxu1 }
 0x2e2   : > { %v2244_v25 = vadd.f32 %v4489_v30, %v2243_v5  ;;  %v3424_v62 = vpop.f32.mrb[2].mxu1 }
 0x2e3   : > { %2757 = vst.msk [vmem:[%s4494_s28 + $0x10] sm:$0xff] %vm2754_vm3, %v2252_v59  ;;  %v2255_v24 = vadd.f32 %v3424_v62, %v4489_v30  ;;  %v2246_v60 = vpop.f32.mrb[3].mxu1 }
 0x2e4   : > { %2755 = vst.msk [vmem:[%s4494_s28] sm:$0xff] %vm2754_vm3, %v2244_v25  ;;  %v2247_v43 = vadd.f32 %v4489_v30, %v2246_v60 }
 0x2e5   : > { %2758 = vst.msk [vmem:[%s4494_s28 + $0x18] sm:$0xff] %vm2754_vm3, %v2255_v24  ;;  %3530 = vmatmul.mubr.bf16.gmra.mrb[108].mxu1 %v5060_v17 }
 0x2e6   : > { %2756 = vst.msk [vmem:[%s4494_s28 + $0x8] sm:$0xff] %vm2754_vm3, %v2247_v43  ;;  %3533 = vmatprep.mubr.bf16.mxu1 %v5062_v34 }
 0x2e8   : > { %v3427_v33 = vpop.f32.mrb[4].mxu1 }
 0x2e9   : > { %v2268_v50 = vadd.f32 %v3427_v33, %v4489_v30  ;;  %v2259_v49 = vpop.f32.mrb[5].mxu1 }
 0x2ea   : > { %v2260_v3 = vadd.f32 %v4489_v30, %v2259_v49  ;;  %v3428_v2 = vpop.f32.mrb[6].mxu1 }
 0x2eb   : > { %2761 = vst.msk [vmem:[%s4494_s28 + $0x30] sm:$0xff] %vm2754_vm3, %v2268_v50  ;;  %v2271_v28 = vadd.f32 %v3428_v2, %v4489_v30  ;;  %v2262_v21 = vpop.f32.mrb[7].mxu1 }
 0x2ec   : > { %2759 = vst.msk [vmem:[%s4494_s28 + $0x20] sm:$0xff] %vm2754_vm3, %v2260_v3  ;;  %v2263_v20 = vadd.f32 %v4489_v30, %v2262_v21 }
 0x2ed   : > { %2762 = vst.msk [vmem:[%s4494_s28 + $0x38] sm:$0xff] %vm2754_vm3, %v2271_v28  ;;  %3534 = vmatmul.mubr.bf16.gmra.mrb[112].mxu1 %v5064_v38 }
 0x2ee   : > { %2760 = vst.msk [vmem:[%s4494_s28 + $0x28] sm:$0xff] %vm2754_vm3, %v2263_v20  ;;  %3537 = vmatprep.mubr.bf16.mxu1 %v5065_v57 }
 0x2f0   : > { %v3431_v56 = vpop.f32.mrb[8].mxu1 }
 0x2f1   : > { %v2284_v12 = vadd.f32 %v3431_v56, %v4489_v30  ;;  %v2275_v11 = vpop.f32.mrb[9].mxu1 }
 0x2f2   : > { %v2276_v36 = vadd.f32 %v4489_v30, %v2275_v11  ;;  %v3432_v35 = vpop.f32.mrb[10].mxu1 }
 0x2f3   : > { %2765 = vst.msk [vmem:[%s4494_s28 + $0x50] sm:$0xff] %vm2754_vm3, %v2284_v12  ;;  %v2287_v58 = vadd.f32 %v3432_v35, %v4489_v30  ;;  %v2278_v55 = vpop.f32.mrb[11].mxu1 }
 0x2f4   : > { %2763 = vst.msk [vmem:[%s4494_s28 + $0x40] sm:$0xff] %vm2754_vm3, %v2276_v36  ;;  %v2279_v26 = vadd.f32 %v4489_v30, %v2278_v55 }
 0x2f5   : > { %2766 = vst.msk [vmem:[%s4494_s28 + $0x58] sm:$0xff] %vm2754_vm3, %v2287_v58  ;;  %3538 = vmatmul.mubr.bf16.gmra.mrb[116].mxu1 %v2133_v42 }
 0x2f6   : > { %2764 = vst.msk [vmem:[%s4494_s28 + $0x48] sm:$0xff] %vm2754_vm3, %v2279_v26  ;;  %3541 = vmatprep.mubr.bf16.mxu1 %v2134_v45  ;;  %v5067_v45 = vmul.bf16 %v4334_v27, %v5009_v46 }
 0x2f8   : > { %v3435_v23 = vpop.f32.mrb[12].mxu1 }
 0x2f9   : > { %v2300_v22 = vadd.f32 %v3435_v23, %v4489_v30  ;;  %v2291_v32 = vpop.f32.mrb[13].mxu1 }
 0x2fa   : > { %v2292_v51 = vadd.f32 %v4489_v30, %v2291_v32  ;;  %v3436_v53 = vpop.f32.mrb[14].mxu1 }
 0x2fb   : > { %2769 = vst.msk [vmem:[%s4494_s28 + $0x70] sm:$0xff] %vm2754_vm3, %v2300_v22  ;;  %v2303_v9 = vadd.f32 %v3436_v53, %v4489_v30  ;;  %v2294_v42 = vpop.f32.mrb[15].mxu1 }
 0x2fc   : > { %2767 = vst.msk [vmem:[%s4494_s28 + $0x60] sm:$0xff] %vm2754_vm3, %v2292_v51  ;;  %v2295_v40 = vadd.f32 %v4489_v30, %v2294_v42 }
 0x2fd   : > { %2770 = vst.msk [vmem:[%s4494_s28 + $0x78] sm:$0xff] %vm2754_vm3, %v2303_v9  ;;  %3542 = vmatmul.mubr.bf16.gmra.mrb[120].mxu1 %v5066_v13 }
 0x2fe   : > { %2768 = vst.msk [vmem:[%s4494_s28 + $0x68] sm:$0xff] %vm2754_vm3, %v2295_v40  ;;  %3545 = vmatprep.mubr.bf16.mxu1 %v5067_v45 }
 0x300   : > { %v3439_v18 = vpop.f32.mrb[16].mxu1 }
 0x301   : > { %v2316_v48 = vadd.f32 %v3439_v18, %v4489_v30  ;;  %v2307_v19 = vpop.f32.mrb[17].mxu1 }
 0x302   : > { %v2308_v14 = vadd.f32 %v4489_v30, %v2307_v19  ;;  %v3440_v44 = vpop.f32.mrb[18].mxu1 }
 0x303   : > { %2773 = vst.msk [vmem:[%s4494_s28 + $0x90] sm:$0xff] %vm2754_vm3, %v2316_v48  ;;  %v2319_v6 = vadd.f32 %v3440_v44, %v4489_v30  ;;  %v2310_v10 = vpop.f32.mrb[19].mxu1 }
 0x304   : > { %2771 = vst.msk [vmem:[%s4494_s28 + $0x80] sm:$0xff] %vm2754_vm3, %v2308_v14  ;;  %v2311_v46 = vadd.f32 %v4489_v30, %v2310_v10 }
 0x305   : > { %2774 = vst.msk [vmem:[%s4494_s28 + $0x98] sm:$0xff] %vm2754_vm3, %v2319_v6  ;;  %3546 = vmatmul.mubr.bf16.gmra.mrb[124].mxu1 %v2137_v31 }
 0x306   : > { %2772 = vst.msk [vmem:[%s4494_s28 + $0x88] sm:$0xff] %vm2754_vm3, %v2311_v46 }
 0x308   : > { %v3443_v47 = vpop.f32.mrb[20].mxu1 }
 0x309   : > { %v2332_v37 = vadd.f32 %v3443_v47, %v4489_v30  ;;  %v2323_v52 = vpop.f32.mrb[21].mxu1 }
 0x30a   : > { %v2324_v1 = vadd.f32 %v4489_v30, %v2323_v52  ;;  %v3444_v8 = vpop.f32.mrb[22].mxu1 }
 0x30b   : > { %2777 = vst.msk [vmem:[%s4494_s28 + $0xb0] sm:$0xff] %vm2754_vm3, %v2332_v37  ;;  %v2335_v0 = vadd.f32 %v3444_v8, %v4489_v30  ;;  %v2326_v54 = vpop.f32.mrb[23].mxu1 }
 0x30c   : > { %2775 = vst.msk [vmem:[%s4494_s28 + $0xa0] sm:$0xff] %vm2754_vm3, %v2324_v1  ;;  %v2327_v27 = vadd.f32 %v4489_v30, %v2326_v54 }
 0x30d   : > { %2778 = vst.msk [vmem:[%s4494_s28 + $0xb8] sm:$0xff] %vm2754_vm3, %v2335_v0 }
 0x30e   : > { %2776 = vst.msk [vmem:[%s4494_s28 + $0xa8] sm:$0xff] %vm2754_vm3, %v2327_v27 }
 0x310   : > { %v3447_v31 = vpop.f32.mrb[24].mxu1 }
 0x311   : > { %v2348_v7 = vadd.f32 %v3447_v31, %v4489_v30  ;;  %v2339_v63 = vpop.f32.mrb[25].mxu1 }
 0x312   : > { %v2340_v4 = vadd.f32 %v4489_v30, %v2339_v63  ;;  %v3448_v29 = vpop.f32.mrb[26].mxu1 }
 0x313   : > { %2781 = vst.msk [vmem:[%s4494_s28 + $0xd0] sm:$0xff] %vm2754_vm3, %v2348_v7  ;;  %v2351_v15 = vadd.f32 %v3448_v29, %v4489_v30  ;;  %v2342_v41 = vpop.f32.mrb[27].mxu1 }
 0x314   : > { %2779 = vst.msk [vmem:[%s4494_s28 + $0xc0] sm:$0xff] %vm2754_vm3, %v2340_v4  ;;  %v2343_v59 = vadd.f32 %v4489_v30, %v2342_v41 }
 0x315   : > { %2782 = vst.msk [vmem:[%s4494_s28 + $0xd8] sm:$0xff] %vm2754_vm3, %v2351_v15 }
 0x316   : > { %2780 = vst.msk [vmem:[%s4494_s28 + $0xc8] sm:$0xff] %vm2754_vm3, %v2343_v59 }
 0x318   : > { %v3451_v5 = vpop.f32.mrb[28].mxu1 }
 0x319   : > { %v2364_v25 = vadd.f32 %v3451_v5, %v4489_v30  ;;  %v2355_v62 = vpop.f32.mrb[29].mxu1 }
 0x31a   : > { %v2356_v24 = vadd.f32 %v4489_v30, %v2355_v62  ;;  %v3452_v60 = vpop.f32.mrb[30].mxu1 }
 0x31b   : > { %2785 = vst.msk [vmem:[%s4494_s28 + $0xf0] sm:$0xff] %vm2754_vm3, %v2364_v25  ;;  %v2367_v43 = vadd.f32 %v3452_v60, %v4489_v30  ;;  %v2358_v61 = vpop.f32.mrb[31].mxu1 }
 0x31c   : > { %2783 = vst.msk [vmem:[%s4494_s28 + $0xe0] sm:$0xff] %vm2754_vm3, %v2356_v24  ;;  %v2359_v17 = vadd.f32 %v4489_v30, %v2358_v61 }
 0x31d   : > { %2786 = vst.msk [vmem:[%s4494_s28 + $0xf8] sm:$0xff] %vm2754_vm3, %v2367_v43 }
 0x31e   : > { %2784 = vst.msk [vmem:[%s4494_s28 + $0xe8] sm:$0xff] %vm2754_vm3, %v2359_v17 }
 0x320   : > { %v3455_v16 = vpop.f32.mrb[32].mxu1 }
 0x321   : > { %v2380_v34 = vadd.f32 %v3455_v16, %v4489_v30  ;;  %v2371_v33 = vpop.f32.mrb[33].mxu1 }
 0x322   : > { %v2372_v50 = vadd.f32 %v4489_v30, %v2371_v33  ;;  %v3456_v49 = vpop.f32.mrb[34].mxu1 }
 0x323   : > { %2789 = vst.msk [vmem:[%s4494_s28 + $0x110] sm:$0xff] %vm2754_vm3, %v2380_v34  ;;  %v2383_v3 = vadd.f32 %v3456_v49, %v4489_v30  ;;  %v2374_v2 = vpop.f32.mrb[35].mxu1 }
 0x324   : > { %2787 = vst.msk [vmem:[%s4494_s28 + $0x100] sm:$0xff] %vm2754_vm3, %v2372_v50  ;;  %v2375_v28 = vadd.f32 %v4489_v30, %v2374_v2 }
 0x325   : > { %2790 = vst.msk [vmem:[%s4494_s28 + $0x118] sm:$0xff] %vm2754_vm3, %v2383_v3 }
 0x326   : > { %2788 = vst.msk [vmem:[%s4494_s28 + $0x108] sm:$0xff] %vm2754_vm3, %v2375_v28 }
 0x328   : > { %v3459_v21 = vpop.f32.mrb[36].mxu1 }
 0x329   : > { %v2396_v20 = vadd.f32 %v3459_v21, %v4489_v30  ;;  %v2387_v39 = vpop.f32.mrb[37].mxu1 }
 0x32a   : > { %v2388_v38 = vadd.f32 %v4489_v30, %v2387_v39  ;;  %v3460_v57 = vpop.f32.mrb[38].mxu1 }
 0x32b   : > { %2793 = vst.msk [vmem:[%s4494_s28 + $0x130] sm:$0xff] %vm2754_vm3, %v2396_v20  ;;  %v2399_v56 = vadd.f32 %v3460_v57, %v4489_v30  ;;  %v2390_v12 = vpop.f32.mrb[39].mxu1 }
 0x32c   : > { %2791 = vst.msk [vmem:[%s4494_s28 + $0x120] sm:$0xff] %vm2754_vm3, %v2388_v38  ;;  %v2391_v11 = vadd.f32 %v4489_v30, %v2390_v12 }
 0x32d   : > { %2794 = vst.msk [vmem:[%s4494_s28 + $0x138] sm:$0xff] %vm2754_vm3, %v2399_v56 }
 0x32e   : > { %2792 = vst.msk [vmem:[%s4494_s28 + $0x128] sm:$0xff] %vm2754_vm3, %v2391_v11 }
 0x330   : > { %v3463_v36 = vpop.f32.mrb[40].mxu1 }
 0x331   : > { %v2412_v35 = vadd.f32 %v3463_v36, %v4489_v30  ;;  %v2403_v58 = vpop.f32.mrb[41].mxu1 }
 0x332   : > { %v2404_v55 = vadd.f32 %v4489_v30, %v2403_v58  ;;  %v3464_v26 = vpop.f32.mrb[42].mxu1 }
 0x333   : > { %2797 = vst.msk [vmem:[%s4494_s28 + $0x150] sm:$0xff] %vm2754_vm3, %v2412_v35  ;;  %v2415_v23 = vadd.f32 %v3464_v26, %v4489_v30  ;;  %v2406_v22 = vpop.f32.mrb[43].mxu1 }
 0x334   : > { %2795 = vst.msk [vmem:[%s4494_s28 + $0x140] sm:$0xff] %vm2754_vm3, %v2404_v55  ;;  %v2407_v32 = vadd.f32 %v4489_v30, %v2406_v22 }
 0x335   : > { %2798 = vst.msk [vmem:[%s4494_s28 + $0x158] sm:$0xff] %vm2754_vm3, %v2415_v23 }
 0x336   : > { %2796 = vst.msk [vmem:[%s4494_s28 + $0x148] sm:$0xff] %vm2754_vm3, %v2407_v32 }
 0x338   : > { %v3467_v51 = vpop.f32.mrb[44].mxu1 }
 0x339   : > { %v2428_v53 = vadd.f32 %v3467_v51, %v4489_v30  ;;  %v2419_v9 = vpop.f32.mrb[45].mxu1 }
 0x33a   : > { %v2420_v42 = vadd.f32 %v4489_v30, %v2419_v9  ;;  %v3468_v40 = vpop.f32.mrb[46].mxu1 }
 0x33b   : > { %2801 = vst.msk [vmem:[%s4494_s28 + $0x170] sm:$0xff] %vm2754_vm3, %v2428_v53  ;;  %v2431_v13 = vadd.f32 %v3468_v40, %v4489_v30  ;;  %v2422_v45 = vpop.f32.mrb[47].mxu1 }
 0x33c   : > { %2799 = vst.msk [vmem:[%s4494_s28 + $0x160] sm:$0xff] %vm2754_vm3, %v2420_v42  ;;  %v2423_v18 = vadd.f32 %v4489_v30, %v2422_v45 }
 0x33d   : > { %2802 = vst.msk [vmem:[%s4494_s28 + $0x178] sm:$0xff] %vm2754_vm3, %v2431_v13 }
 0x33e   : > { %2800 = vst.msk [vmem:[%s4494_s28 + $0x168] sm:$0xff] %vm2754_vm3, %v2423_v18 }
 0x340   : > { %v3471_v48 = vpop.f32.mrb[48].mxu1 }
 0x341   : > { %v2444_v19 = vadd.f32 %v3471_v48, %v4489_v30  ;;  %v2435_v14 = vpop.f32.mrb[49].mxu1 }
 0x342   : > { %v2436_v44 = vadd.f32 %v4489_v30, %v2435_v14  ;;  %v3472_v6 = vpop.f32.mrb[50].mxu1 }
 0x343   : > { %2805 = vst.msk [vmem:[%s4494_s28 + $0x190] sm:$0xff] %vm2754_vm3, %v2444_v19  ;;  %v2447_v10 = vadd.f32 %v3472_v6, %v4489_v30  ;;  %v2438_v46 = vpop.f32.mrb[51].mxu1 }
 0x344   : > { %2803 = vst.msk [vmem:[%s4494_s28 + $0x180] sm:$0xff] %vm2754_vm3, %v2436_v44  ;;  %v2439_v47 = vadd.f32 %v4489_v30, %v2438_v46 }
 0x345   : > { %2806 = vst.msk [vmem:[%s4494_s28 + $0x198] sm:$0xff] %vm2754_vm3, %v2447_v10 }
 0x346   : > { %2804 = vst.msk [vmem:[%s4494_s28 + $0x188] sm:$0xff] %vm2754_vm3, %v2439_v47 }
 0x348   : > { %v3475_v37 = vpop.f32.mrb[52].mxu1 }
 0x349   : > { %v2460_v52 = vadd.f32 %v3475_v37, %v4489_v30  ;;  %v2451_v1 = vpop.f32.mrb[53].mxu1 }
 0x34a   : > { %v2452_v8 = vadd.f32 %v4489_v30, %v2451_v1  ;;  %v3476_v0 = vpop.f32.mrb[54].mxu1 }
 0x34b   : > { %2809 = vst.msk [vmem:[%s4494_s28 + $0x1b0] sm:$0xff] %vm2754_vm3, %v2460_v52  ;;  %v2463_v54 = vadd.f32 %v3476_v0, %v4489_v30  ;;  %v2454_v27 = vpop.f32.mrb[55].mxu1 }
 0x34c   : > { %2807 = vst.msk [vmem:[%s4494_s28 + $0x1a0] sm:$0xff] %vm2754_vm3, %v2452_v8  ;;  %v2455_v31 = vadd.f32 %v4489_v30, %v2454_v27 }
 0x34d   : > { %2810 = vst.msk [vmem:[%s4494_s28 + $0x1b8] sm:$0xff] %vm2754_vm3, %v2463_v54 }
 0x34e   : > { %2808 = vst.msk [vmem:[%s4494_s28 + $0x1a8] sm:$0xff] %vm2754_vm3, %v2455_v31 }
 0x350   : > { %v3479_v7 = vpop.f32.mrb[56].mxu1 }
 0x351   : > { %v2476_v63 = vadd.f32 %v3479_v7, %v4489_v30  ;;  %v2467_v4 = vpop.f32.mrb[57].mxu1 }
 0x352   : > { %v2468_v29 = vadd.f32 %v4489_v30, %v2467_v4  ;;  %v3480_v15 = vpop.f32.mrb[58].mxu1 }
 0x353   : > { %2813 = vst.msk [vmem:[%s4494_s28 + $0x1d0] sm:$0xff] %vm2754_vm3, %v2476_v63  ;;  %v2479_v41 = vadd.f32 %v3480_v15, %v4489_v30  ;;  %v2470_v59 = vpop.f32.mrb[59].mxu1 }
 0x354   : > { %2811 = vst.msk [vmem:[%s4494_s28 + $0x1c0] sm:$0xff] %vm2754_vm3, %v2468_v29  ;;  %v2471_v5 = vadd.f32 %v4489_v30, %v2470_v59 }
 0x355   : > { %2814 = vst.msk [vmem:[%s4494_s28 + $0x1d8] sm:$0xff] %vm2754_vm3, %v2479_v41 }
 0x356   : > { %2812 = vst.msk [vmem:[%s4494_s28 + $0x1c8] sm:$0xff] %vm2754_vm3, %v2471_v5 }
 0x358   : > { %v3483_v25 = vpop.f32.mrb[60].mxu1 }
 0x359   : > { %v2492_v62 = vadd.f32 %v3483_v25, %v4489_v30  ;;  %v2483_v24 = vpop.f32.mrb[61].mxu1 }
 0x35a   : > { %v2484_v60 = vadd.f32 %v4489_v30, %v2483_v24  ;;  %v3484_v43 = vpop.f32.mrb[62].mxu1 }
 0x35b   : > { %2817 = vst.msk [vmem:[%s4494_s28 + $0x1f0] sm:$0xff] %vm2754_vm3, %v2492_v62  ;;  %v2495_v61 = vadd.f32 %v3484_v43, %v4489_v30  ;;  %v2486_v17 = vpop.f32.mrb[63].mxu1 }
 0x35c   : > { %2815 = vst.msk [vmem:[%s4494_s28 + $0x1e0] sm:$0xff] %vm2754_vm3, %v2484_v60  ;;  %v2487_v16 = vadd.f32 %v4489_v30, %v2486_v17 }
 0x35d   : > { %2818 = vst.msk [vmem:[%s4494_s28 + $0x1f8] sm:$0xff] %vm2754_vm3, %v2495_v61 }
 0x35e   : > { %2816 = vst.msk [vmem:[%s4494_s28 + $0x1e8] sm:$0xff] %vm2754_vm3, %v2487_v16 }
 0x360   : > { %v3487_v34 = vpop.f32.mrb[64].mxu1 }
 0x361   : > { %v2508_v33 = vadd.f32 %v3487_v34, %v4489_v30  ;;  %v2499_v50 = vpop.f32.mrb[65].mxu1 }
 0x362   : > { %v2500_v49 = vadd.f32 %v4489_v30, %v2499_v50  ;;  %v3488_v3 = vpop.f32.mrb[66].mxu1 }
 0x363   : > { %2821 = vst.msk [vmem:[%s4494_s28 + $0x210] sm:$0xff] %vm2754_vm3, %v2508_v33  ;;  %v2511_v2 = vadd.f32 %v3488_v3, %v4489_v30  ;;  %v2502_v28 = vpop.f32.mrb[67].mxu1 }
 0x364   : > { %2819 = vst.msk [vmem:[%s4494_s28 + $0x200] sm:$0xff] %vm2754_vm3, %v2500_v49  ;;  %v2503_v21 = vadd.f32 %v4489_v30, %v2502_v28 }
 0x365   : > { %2822 = vst.msk [vmem:[%s4494_s28 + $0x218] sm:$0xff] %vm2754_vm3, %v2511_v2 }
 0x366   : > { %2820 = vst.msk [vmem:[%s4494_s28 + $0x208] sm:$0xff] %vm2754_vm3, %v2503_v21 }
 0x368   : > { %v3491_v20 = vpop.f32.mrb[68].mxu1 }
 0x369   : > { %v2524_v39 = vadd.f32 %v3491_v20, %v4489_v30  ;;  %v2515_v38 = vpop.f32.mrb[69].mxu1 }
 0x36a   : > { %v2516_v57 = vadd.f32 %v4489_v30, %v2515_v38  ;;  %v3492_v56 = vpop.f32.mrb[70].mxu1 }
 0x36b   : > { %2825 = vst.msk [vmem:[%s4494_s28 + $0x230] sm:$0xff] %vm2754_vm3, %v2524_v39  ;;  %v2527_v12 = vadd.f32 %v3492_v56, %v4489_v30  ;;  %v2518_v11 = vpop.f32.mrb[71].mxu1 }
 0x36c   : > { %2823 = vst.msk [vmem:[%s4494_s28 + $0x220] sm:$0xff] %vm2754_vm3, %v2516_v57  ;;  %v2519_v36 = vadd.f32 %v4489_v30, %v2518_v11 }
 0x36d   : > { %2826 = vst.msk [vmem:[%s4494_s28 + $0x238] sm:$0xff] %vm2754_vm3, %v2527_v12 }
 0x36e   : > { %2824 = vst.msk [vmem:[%s4494_s28 + $0x228] sm:$0xff] %vm2754_vm3, %v2519_v36 }
 0x370   : > { %v3495_v35 = vpop.f32.mrb[72].mxu1 }
 0x371   : > { %v2540_v58 = vadd.f32 %v3495_v35, %v4489_v30  ;;  %v2531_v55 = vpop.f32.mrb[73].mxu1 }
 0x372   : > { %v2532_v26 = vadd.f32 %v4489_v30, %v2531_v55  ;;  %v3496_v23 = vpop.f32.mrb[74].mxu1 }
 0x373   : > { %2829 = vst.msk [vmem:[%s4494_s28 + $0x250] sm:$0xff] %vm2754_vm3, %v2540_v58  ;;  %v2543_v22 = vadd.f32 %v3496_v23, %v4489_v30  ;;  %v2534_v32 = vpop.f32.mrb[75].mxu1 }
 0x374   : > { %2827 = vst.msk [vmem:[%s4494_s28 + $0x240] sm:$0xff] %vm2754_vm3, %v2532_v26  ;;  %v2535_v51 = vadd.f32 %v4489_v30, %v2534_v32 }
 0x375   : > { %2830 = vst.msk [vmem:[%s4494_s28 + $0x258] sm:$0xff] %vm2754_vm3, %v2543_v22 }
 0x376   : > { %2828 = vst.msk [vmem:[%s4494_s28 + $0x248] sm:$0xff] %vm2754_vm3, %v2535_v51 }
 0x378   : > { %v3499_v53 = vpop.f32.mrb[76].mxu1 }
 0x379   : > { %v2556_v9 = vadd.f32 %v3499_v53, %v4489_v30  ;;  %v2547_v42 = vpop.f32.mrb[77].mxu1 }
 0x37a   : > { %v2548_v40 = vadd.f32 %v4489_v30, %v2547_v42  ;;  %v3500_v13 = vpop.f32.mrb[78].mxu1 }
 0x37b   : > { %2833 = vst.msk [vmem:[%s4494_s28 + $0x270] sm:$0xff] %vm2754_vm3, %v2556_v9  ;;  %v2559_v45 = vadd.f32 %v3500_v13, %v4489_v30  ;;  %v2550_v18 = vpop.f32.mrb[79].mxu1 }
 0x37c   : > { %2831 = vst.msk [vmem:[%s4494_s28 + $0x260] sm:$0xff] %vm2754_vm3, %v2548_v40  ;;  %v2551_v48 = vadd.f32 %v4489_v30, %v2550_v18 }
 0x37d   : > { %2834 = vst.msk [vmem:[%s4494_s28 + $0x278] sm:$0xff] %vm2754_vm3, %v2559_v45 }
 0x37e   : > { %2832 = vst.msk [vmem:[%s4494_s28 + $0x268] sm:$0xff] %vm2754_vm3, %v2551_v48 }
 0x380   : > { %v3503_v19 = vpop.f32.mrb[80].mxu1 }
 0x381   : > { %v2572_v14 = vadd.f32 %v3503_v19, %v4489_v30  ;;  %v2563_v44 = vpop.f32.mrb[81].mxu1 }
 0x382   : > { %v2564_v6 = vadd.f32 %v4489_v30, %v2563_v44  ;;  %v3504_v10 = vpop.f32.mrb[82].mxu1 }
 0x383   : > { %2837 = vst.msk [vmem:[%s4494_s28 + $0x290] sm:$0xff] %vm2754_vm3, %v2572_v14  ;;  %v2575_v46 = vadd.f32 %v3504_v10, %v4489_v30  ;;  %v2566_v47 = vpop.f32.mrb[83].mxu1 }
 0x384   : > { %2835 = vst.msk [vmem:[%s4494_s28 + $0x280] sm:$0xff] %vm2754_vm3, %v2564_v6  ;;  %v2567_v37 = vadd.f32 %v4489_v30, %v2566_v47 }
 0x385   : > { %2838 = vst.msk [vmem:[%s4494_s28 + $0x298] sm:$0xff] %vm2754_vm3, %v2575_v46 }
 0x386   : > { %2836 = vst.msk [vmem:[%s4494_s28 + $0x288] sm:$0xff] %vm2754_vm3, %v2567_v37 }
 0x388   : > { %v3507_v52 = vpop.f32.mrb[84].mxu1 }
 0x389   : > { %v2588_v1 = vadd.f32 %v3507_v52, %v4489_v30  ;;  %v2579_v8 = vpop.f32.mrb[85].mxu1 }
 0x38a   : > { %v2580_v0 = vadd.f32 %v4489_v30, %v2579_v8  ;;  %v3508_v54 = vpop.f32.mrb[86].mxu1 }
 0x38b   : > { %2841 = vst.msk [vmem:[%s4494_s28 + $0x2b0] sm:$0xff] %vm2754_vm3, %v2588_v1  ;;  %v2591_v27 = vadd.f32 %v3508_v54, %v4489_v30  ;;  %v2582_v31 = vpop.f32.mrb[87].mxu1 }
 0x38c   : > { %2839 = vst.msk [vmem:[%s4494_s28 + $0x2a0] sm:$0xff] %vm2754_vm3, %v2580_v0  ;;  %v2583_v7 = vadd.f32 %v4489_v30, %v2582_v31 }
 0x38d   : > { %2842 = vst.msk [vmem:[%s4494_s28 + $0x2b8] sm:$0xff] %vm2754_vm3, %v2591_v27 }
 0x38e   : > { %2840 = vst.msk [vmem:[%s4494_s28 + $0x2a8] sm:$0xff] %vm2754_vm3, %v2583_v7 }
 0x390   : > { %v3511_v63 = vpop.f32.mrb[88].mxu1 }
 0x391   : > { %v2604_v4 = vadd.f32 %v3511_v63, %v4489_v30  ;;  %v2595_v29 = vpop.f32.mrb[89].mxu1 }
 0x392   : > { %v2596_v15 = vadd.f32 %v4489_v30, %v2595_v29  ;;  %v3512_v41 = vpop.f32.mrb[90].mxu1 }
 0x393   : > { %2845 = vst.msk [vmem:[%s4494_s28 + $0x2d0] sm:$0xff] %vm2754_vm3, %v2604_v4  ;;  %v2607_v59 = vadd.f32 %v3512_v41, %v4489_v30  ;;  %v2598_v5 = vpop.f32.mrb[91].mxu1 }
 0x394   : > { %2843 = vst.msk [vmem:[%s4494_s28 + $0x2c0] sm:$0xff] %vm2754_vm3, %v2596_v15  ;;  %v2599_v25 = vadd.f32 %v4489_v30, %v2598_v5 }
 0x395   : > { %2846 = vst.msk [vmem:[%s4494_s28 + $0x2d8] sm:$0xff] %vm2754_vm3, %v2607_v59 }
 0x396   : > { %2844 = vst.msk [vmem:[%s4494_s28 + $0x2c8] sm:$0xff] %vm2754_vm3, %v2599_v25 }
 0x398   : > { %v3515_v62 = vpop.f32.mrb[92].mxu1 }
 0x399   : > { %v2620_v24 = vadd.f32 %v3515_v62, %v4489_v30  ;;  %v2611_v60 = vpop.f32.mrb[93].mxu1 }
 0x39a   : > { %v2612_v43 = vadd.f32 %v4489_v30, %v2611_v60  ;;  %v3516_v61 = vpop.f32.mrb[94].mxu1 }
 0x39b   : > { %2849 = vst.msk [vmem:[%s4494_s28 + $0x2f0] sm:$0xff] %vm2754_vm3, %v2620_v24  ;;  %v2623_v17 = vadd.f32 %v3516_v61, %v4489_v30  ;;  %v2614_v16 = vpop.f32.mrb[95].mxu1 }
 0x39c   : > { %2847 = vst.msk [vmem:[%s4494_s28 + $0x2e0] sm:$0xff] %vm2754_vm3, %v2612_v43  ;;  %v2615_v34 = vadd.f32 %v4489_v30, %v2614_v16 }
 0x39d   : > { %2850 = vst.msk [vmem:[%s4494_s28 + $0x2f8] sm:$0xff] %vm2754_vm3, %v2623_v17 }
 0x39e   : > { %2848 = vst.msk [vmem:[%s4494_s28 + $0x2e8] sm:$0xff] %vm2754_vm3, %v2615_v34 }
 0x3a0   : > { %v3519_v33 = vpop.f32.mrb[96].mxu1 }
 0x3a1   : > { %v2636_v50 = vadd.f32 %v3519_v33, %v4489_v30  ;;  %v2627_v49 = vpop.f32.mrb[97].mxu1 }
 0x3a2   : > { %v2628_v3 = vadd.f32 %v4489_v30, %v2627_v49  ;;  %v3520_v2 = vpop.f32.mrb[98].mxu1 }
 0x3a3   : > { %2853 = vst.msk [vmem:[%s4494_s28 + $0x310] sm:$0xff] %vm2754_vm3, %v2636_v50  ;;  %v2639_v28 = vadd.f32 %v3520_v2, %v4489_v30  ;;  %v2630_v21 = vpop.f32.mrb[99].mxu1 }
 0x3a4   : > { %2851 = vst.msk [vmem:[%s4494_s28 + $0x300] sm:$0xff] %vm2754_vm3, %v2628_v3  ;;  %v2631_v20 = vadd.f32 %v4489_v30, %v2630_v21 }
 0x3a5   : > { %2854 = vst.msk [vmem:[%s4494_s28 + $0x318] sm:$0xff] %vm2754_vm3, %v2639_v28 }
 0x3a6   : > { %2852 = vst.msk [vmem:[%s4494_s28 + $0x308] sm:$0xff] %vm2754_vm3, %v2631_v20 }
 0x3a8   : > { %v3523_v39 = vpop.f32.mrb[100].mxu1 }
 0x3a9   : > { %v2652_v38 = vadd.f32 %v3523_v39, %v4489_v30  ;;  %v2643_v57 = vpop.f32.mrb[101].mxu1 }
 0x3aa   : > { %v2644_v56 = vadd.f32 %v4489_v30, %v2643_v57  ;;  %v3524_v12 = vpop.f32.mrb[102].mxu1 }
 0x3ab   : > { %2857 = vst.msk [vmem:[%s4494_s28 + $0x330] sm:$0xff] %vm2754_vm3, %v2652_v38  ;;  %v2655_v11 = vadd.f32 %v3524_v12, %v4489_v30  ;;  %v2646_v36 = vpop.f32.mrb[103].mxu1 }
 0x3ac   : > { %2855 = vst.msk [vmem:[%s4494_s28 + $0x320] sm:$0xff] %vm2754_vm3, %v2644_v56  ;;  %v2647_v35 = vadd.f32 %v4489_v30, %v2646_v36 }
 0x3ad   : > { %2858 = vst.msk [vmem:[%s4494_s28 + $0x338] sm:$0xff] %vm2754_vm3, %v2655_v11 }
 0x3ae   : > { %2856 = vst.msk [vmem:[%s4494_s28 + $0x328] sm:$0xff] %vm2754_vm3, %v2647_v35 }
 0x3b0   : > { %v3527_v58 = vpop.f32.mrb[104].mxu1 }
 0x3b1   : > { %v2668_v55 = vadd.f32 %v3527_v58, %v4489_v30  ;;  %v2659_v26 = vpop.f32.mrb[105].mxu1 }
 0x3b2   : > { %v2660_v23 = vadd.f32 %v4489_v30, %v2659_v26  ;;  %v3528_v22 = vpop.f32.mrb[106].mxu1 }
 0x3b3   : > { %2861 = vst.msk [vmem:[%s4494_s28 + $0x350] sm:$0xff] %vm2754_vm3, %v2668_v55  ;;  %v2671_v32 = vadd.f32 %v3528_v22, %v4489_v30  ;;  %v2662_v51 = vpop.f32.mrb[107].mxu1 }
 0x3b4   : > { %2859 = vst.msk [vmem:[%s4494_s28 + $0x340] sm:$0xff] %vm2754_vm3, %v2660_v23  ;;  %v2663_v53 = vadd.f32 %v4489_v30, %v2662_v51 }
 0x3b5   : > { %2862 = vst.msk [vmem:[%s4494_s28 + $0x358] sm:$0xff] %vm2754_vm3, %v2671_v32 }
 0x3b6   : > { %2860 = vst.msk [vmem:[%s4494_s28 + $0x348] sm:$0xff] %vm2754_vm3, %v2663_v53 }
 0x3b8   : > { %v3531_v9 = vpop.f32.mrb[108].mxu1 }
 0x3b9   : > { %v2684_v42 = vadd.f32 %v3531_v9, %v4489_v30  ;;  %v2675_v40 = vpop.f32.mrb[109].mxu1 }
 0x3ba   : > { %v2676_v13 = vadd.f32 %v4489_v30, %v2675_v40  ;;  %v3532_v45 = vpop.f32.mrb[110].mxu1 }
 0x3bb   : > { %2865 = vst.msk [vmem:[%s4494_s28 + $0x370] sm:$0xff] %vm2754_vm3, %v2684_v42  ;;  %v2687_v18 = vadd.f32 %v3532_v45, %v4489_v30  ;;  %v2678_v48 = vpop.f32.mrb[111].mxu1 }
 0x3bc   : > { %2863 = vst.msk [vmem:[%s4494_s28 + $0x360] sm:$0xff] %vm2754_vm3, %v2676_v13  ;;  %v2679_v19 = vadd.f32 %v4489_v30, %v2678_v48 }
 0x3bd   : > { %2866 = vst.msk [vmem:[%s4494_s28 + $0x378] sm:$0xff] %vm2754_vm3, %v2687_v18 }
 0x3be   : > { %2864 = vst.msk [vmem:[%s4494_s28 + $0x368] sm:$0xff] %vm2754_vm3, %v2679_v19 }
 0x3c0   : > { %v3535_v14 = vpop.f32.mrb[112].mxu1 }
 0x3c1   : > { %v2700_v44 = vadd.f32 %v3535_v14, %v4489_v30  ;;  %v2691_v6 = vpop.f32.mrb[113].mxu1 }
 0x3c2   : > { %v2692_v10 = vadd.f32 %v4489_v30, %v2691_v6  ;;  %v3536_v46 = vpop.f32.mrb[114].mxu1 }
 0x3c3   : > { %2869 = vst.msk [vmem:[%s4494_s28 + $0x390] sm:$0xff] %vm2754_vm3, %v2700_v44  ;;  %v2703_v47 = vadd.f32 %v3536_v46, %v4489_v30  ;;  %v2694_v37 = vpop.f32.mrb[115].mxu1 }
 0x3c4   : > { %2867 = vst.msk [vmem:[%s4494_s28 + $0x380] sm:$0xff] %vm2754_vm3, %v2692_v10  ;;  %v2695_v52 = vadd.f32 %v4489_v30, %v2694_v37 }
 0x3c5   : > { %2870 = vst.msk [vmem:[%s4494_s28 + $0x398] sm:$0xff] %vm2754_vm3, %v2703_v47 }
 0x3c6   : > { %2868 = vst.msk [vmem:[%s4494_s28 + $0x388] sm:$0xff] %vm2754_vm3, %v2695_v52 }
 0x3c8   : > { %v3539_v1 = vpop.f32.mrb[116].mxu1 }
 0x3c9   : > { %v2716_v8 = vadd.f32 %v3539_v1, %v4489_v30  ;;  %v2707_v0 = vpop.f32.mrb[117].mxu1 }
 0x3ca   : > { %v2708_v54 = vadd.f32 %v4489_v30, %v2707_v0  ;;  %v3540_v27 = vpop.f32.mrb[118].mxu1 }
 0x3cb   : > { %2873 = vst.msk [vmem:[%s4494_s28 + $0x3b0] sm:$0xff] %vm2754_vm3, %v2716_v8  ;;  %v2719_v31 = vadd.f32 %v3540_v27, %v4489_v30  ;;  %v2710_v7 = vpop.f32.mrb[119].mxu1 }
 0x3cc   : > { %2871 = vst.msk [vmem:[%s4494_s28 + $0x3a0] sm:$0xff] %vm2754_vm3, %v2708_v54  ;;  %v2711_v63 = vadd.f32 %v4489_v30, %v2710_v7 }
 0x3cd   : > { %2874 = vst.msk [vmem:[%s4494_s28 + $0x3b8] sm:$0xff] %vm2754_vm3, %v2719_v31 }
 0x3ce   : > { %2872 = vst.msk [vmem:[%s4494_s28 + $0x3a8] sm:$0xff] %vm2754_vm3, %v2711_v63 }
 0x3d0   : > { %v3543_v4 = vpop.f32.mrb[120].mxu1 }
 0x3d1   : > { %v2732_v29 = vadd.f32 %v3543_v4, %v4489_v30  ;;  %v2723_v15 = vpop.f32.mrb[121].mxu1 }
 0x3d2   : > { %v2724_v41 = vadd.f32 %v4489_v30, %v2723_v15  ;;  %v3544_v59 = vpop.f32.mrb[122].mxu1 }
 0x3d3   : > { %2877 = vst.msk [vmem:[%s4494_s28 + $0x3d0] sm:$0xff] %vm2754_vm3, %v2732_v29  ;;  %v2735_v5 = vadd.f32 %v3544_v59, %v4489_v30  ;;  %v2726_v25 = vpop.f32.mrb[123].mxu1 }
 0x3d4   : > { %2875 = vst.msk [vmem:[%s4494_s28 + $0x3c0] sm:$0xff] %vm2754_vm3, %v2724_v41  ;;  %v2727_v62 = vadd.f32 %v4489_v30, %v2726_v25 }
 0x3d5   : > { %2878 = vst.msk [vmem:[%s4494_s28 + $0x3d8] sm:$0xff] %vm2754_vm3, %v2735_v5 }
 0x3d6   : > { %2876 = vst.msk [vmem:[%s4494_s28 + $0x3c8] sm:$0xff] %vm2754_vm3, %v2727_v62 }
 0x3d8   : > { %v3547_v24 = vpop.f32.mrb[124].mxu1 }
 0x3d9   : > { %v2748_v60 = vadd.f32 %v3547_v24, %v4489_v30  ;;  %v2739_v43 = vpop.f32.mrb[125].mxu1 }
 0x3da   : > { %v2740_v61 = vadd.f32 %v4489_v30, %v2739_v43  ;;  %v3548_v17 = vpop.f32.mrb[126].mxu1 }
 0x3db   : > { %2881 = vst.msk [vmem:[%s4494_s28 + $0x3f0] sm:$0xff] %vm2754_vm3, %v2748_v60  ;;  %v2751_v16 = vadd.f32 %v3548_v17, %v4489_v30  ;;  %v2742_v34 = vpop.f32.mrb[127].mxu1 }
 0x3dc   : > { %2879 = vst.msk [vmem:[%s4494_s28 + $0x3e0] sm:$0xff] %vm2754_vm3, %v2740_v61  ;;  %v2743_v33 = vadd.f32 %v4489_v30, %v2742_v34 }
 0x3dd   : > { %2882 = vst.msk [vmem:[%s4494_s28 + $0x3f8] sm:$0xff] %vm2754_vm3, %v2751_v16 }
 0x3de   : > { %2880 = vst.msk [vmem:[%s4494_s28 + $0x3e8] sm:$0xff] %vm2754_vm3, %v2743_v33 }
 0x3df PF: > { %s17_s24 = sadd.s32 1, %s3642_s24  }
 0x3e0   : > { %p14_p5 = scmp.ge.s32.totalorder %s17_s24, 4  }
 0x3e2   :  { %16 = sbr.rel (!%p14_p5) target bundleno = 1 (0x1), region = 81 }

</bundles_post_ra>
